<compile_context>
chip_gen: v7x
topology: tpu7x:2x2x1
jax: 0.10.0
libtpu: 0.0.40
codegen_flags: <defaults>
</compile_context>

<pallas_src>
import functools

import jax
import jax.numpy as jnp
from jax.experimental import pallas as pl
from jax.experimental.pallas import tpu as pltpu


def _vae_kernel(x_ref, eps_ref,
                w1_ref, b1_ref, w2_ref, b2_ref,
                wml_ref, bml_ref,
                w3_ref, b3_ref, w4_ref, b4_ref, w5_ref, b5_ref,
                recon_ref, ml_ref, *, latent_dim):
    x = x_ref[...]                                            # f32 [TB, image_dim]

    # --- Encoder (bf16 weights, f32 accumulate, f32 nonlinearities) ---
    h = jnp.dot(x.astype(jnp.bfloat16), w1_ref[...],
                preferred_element_type=jnp.float32) + b1_ref[...]
    h = jnp.maximum(h, 0.0)                                   # relu(fc1)
    h = jnp.dot(h.astype(jnp.bfloat16), w2_ref[...],
                preferred_element_type=jnp.float32) + b2_ref[...]
    h = jnp.maximum(h, 0.0)                                   # relu(fc2)

    # Fused mu||logvar head: one [256, 2*latent] matmul, then split.
    ml = jnp.dot(h.astype(jnp.bfloat16), wml_ref[...],
                 preferred_element_type=jnp.float32) + bml_ref[...]
    mu = ml[:, :latent_dim]
    logvar = ml[:, latent_dim:]

    # --- Reparameterize: z = mu + eps * exp(0.5 * logvar) (f32) ---
    std = jnp.exp(0.5 * logvar)
    z = mu + eps_ref[...] * std

    # --- Decoder ---
    d = jnp.dot(z.astype(jnp.bfloat16), w3_ref[...],
                preferred_element_type=jnp.float32) + b3_ref[...]
    d = jnp.maximum(d, 0.0)                                   # relu(fc3)
    d = jnp.dot(d.astype(jnp.bfloat16), w4_ref[...],
                preferred_element_type=jnp.float32) + b4_ref[...]
    d = jnp.maximum(d, 0.0)                                   # relu(fc4)
    logits = jnp.dot(d.astype(jnp.bfloat16), w5_ref[...],
                     preferred_element_type=jnp.float32) + b5_ref[...]
    recon_ref[...] = jax.nn.sigmoid(logits)                   # sigmoid(fc5), f32

    ml_ref[...] = ml                                          # [TB, 2*latent] (mu||logvar)


def _round_up(x, m):
    return ((x + m - 1) // m) * m


def _init_linear(key, fan_in, fan_out):
    """Deterministic init mimicking torch.nn.Linear default (Kaiming-uniform).
    Weight stored [in, out] (so kernel does x @ W + b); weight cast to bf16."""
    kw, kb = jax.random.split(key)
    bound = 1.0 / jnp.sqrt(jnp.float32(fan_in))
    w = jax.random.uniform(kw, (fan_in, fan_out), jnp.float32, -bound, bound)
    b = jax.random.uniform(kb, (1, fan_out), jnp.float32, -bound, bound)
    return w, b


def init_vae_params(key, image_dim, latent_dim):
    keys = jax.random.split(key, 7)
    w1, b1 = _init_linear(keys[0], image_dim, 512)
    w2, b2 = _init_linear(keys[1], 512, 256)
    wmu, bmu = _init_linear(keys[2], 256, latent_dim)
    wlv, blv = _init_linear(keys[3], 256, latent_dim)
    w3, b3 = _init_linear(keys[4], latent_dim, 256)
    w4, b4 = _init_linear(keys[5], 256, 512)
    w5, b5 = _init_linear(keys[6], 512, image_dim)

    p = {
        # bf16 weights (halves the dominant HBM->VMEM weight transfer).
        "w1": w1.astype(jnp.bfloat16), "b1": b1,
        "w2": w2.astype(jnp.bfloat16), "b2": b2,
        # fused mu||logvar head: [256, 2*latent]
        "wml": jnp.concatenate([wmu, wlv], axis=1).astype(jnp.bfloat16),
        "bml": jnp.concatenate([bmu, blv], axis=1),
        "w3": w3.astype(jnp.bfloat16), "b3": b3,
        "w4": w4.astype(jnp.bfloat16), "b4": b4,
        "w5": w5.astype(jnp.bfloat16), "b5": b5,
    }
    return p


def vae_forward(x, eps, params, image_dim, latent_dim, *, max_batch_tile=256):
    """x: NCHW (or any shape with prod(trailing dims) == image_dim); eps: [B, latent]."""
    xf = x.reshape(-1, image_dim).astype(jnp.float32)
    epsf = eps.astype(jnp.float32)
    B = xf.shape[0]

    # Batch tile: multiple of 8 sublanes, capped so VMEM stays bounded even
    # on v7x (64 MiB physical). Pad batch so the tile evenly divides it.
    TB = min(max_batch_tile, _round_up(B, 8))
    B_pad = _round_up(B, TB)
    if B_pad != B:
        xf = jnp.pad(xf, ((0, B_pad - B), (0, 0)))
        epsf = jnp.pad(epsf, ((0, B_pad - B), (0, 0)))

    grid = (B_pad // TB,)

    def batch_spec(cols):
        # tiled along batch, pipelined/double-buffered across grid steps
        return pl.BlockSpec((TB, cols), lambda i: (i, 0))

    def resident_spec(shape):
        # same block every grid step -> weights DMA'd once, stay in VMEM
        return pl.BlockSpec(shape, lambda i: (0, 0))

    ld2 = 2 * latent_dim
    in_specs = [
        batch_spec(image_dim),                                   # x
        batch_spec(latent_dim),                                  # eps
        resident_spec((image_dim, 512)), resident_spec((1, 512)),   # w1, b1
        resident_spec((512, 256)),       resident_spec((1, 256)),   # w2, b2
        resident_spec((256, ld2)),       resident_spec((1, ld2)),   # wml, bml
        resident_spec((latent_dim, 256)), resident_spec((1, 256)),  # w3, b3
        resident_spec((256, 512)),       resident_spec((1, 512)),   # w4, b4
        resident_spec((512, image_dim)), resident_spec((1, image_dim)),  # w5, b5
    ]
    out_specs = (batch_spec(image_dim), batch_spec(ld2))
    out_shape = (
        jax.ShapeDtypeStruct((B_pad, image_dim), jnp.float32),   # reconstruction
        jax.ShapeDtypeStruct((B_pad, ld2), jnp.float32),         # mu || logvar
    )

    # Advisory cost estimate so XLA schedules neighbors around the call.
    mults = (image_dim * 512 + 512 * 256 + 256 * ld2
             + latent_dim * 256 + 256 * 512 + 512 * image_dim)
    bias_elems = 512 + 256 + ld2 + 256 + 512 + image_dim
    cost = pl.CostEstimate(
        flops=2 * B_pad * mults,
        transcendentals=B_pad * (latent_dim + image_dim),
        bytes_accessed=(2 * mults + 4 * bias_elems
                        + B_pad * (2 * image_dim + latent_dim + ld2) * 4),
    )

    recon, ml = pl.pallas_call(
        functools.partial(_vae_kernel, latent_dim=latent_dim),
        out_shape=out_shape,
        grid=grid,
        in_specs=in_specs,
        out_specs=out_specs,
        compiler_params=pltpu.CompilerParams(
            dimension_semantics=("parallel",)),   # shards batch tiles across TCs on v7x
        cost_estimate=cost,
    )(
        xf, epsf,
        params["w1"], params["b1"], params["w2"], params["b2"],
        params["wml"], params["bml"],
        params["w3"], params["b3"], params["w4"], params["b4"],
        params["w5"], params["b5"],
    )

    recon = recon[:B]
    mu = ml[:B, :latent_dim]
    logvar = ml[:B, latent_dim:]
    return recon, mu, logvar


if __name__ == "__main__":
    # Small shapes consistent with the module: x is NCHW, image_dim = C*H*W.
    B, C, H, W = 2, 4, 16, 16
    image_dim = C * H * W      # 1024
    latent_dim = 32

    key = jax.random.PRNGKey(0)
    k_x, k_eps, k_params = jax.random.split(key, 3)

    x = jax.random.normal(k_x, (B, C, H, W), dtype=jnp.float32)
    # eps plays the role of torch.randn_like(std) in reparameterize
    # (sampled once here so the kernel is deterministic).
    eps = jax.random.normal(k_eps, (B, latent_dim), dtype=jnp.float32)

    params = init_vae_params(k_params, image_dim, latent_dim)

    recon, mu, logvar = vae_forward(x, eps, params, image_dim, latent_dim)
    jax.block_until_ready((recon, mu, logvar))

    assert recon.shape == (B, image_dim)
    assert mu.shape == (B, latent_dim)
    assert logvar.shape == (B, latent_dim)
    assert bool(jnp.all(jnp.isfinite(recon)))
    assert bool(jnp.all((recon >= 0.0) & (recon <= 1.0)))
    print("KERNEL_OK")
</pallas_src>

<mosaic_0001>
module attributes {stable_mosaic.version = 11 : i64} {
  func.func @_vae_kernel(%arg0: i32, %arg1: memref<8x1024xf32, #tpu.memory_space<vmem>>, %arg2: memref<8x32xf32, #tpu.memory_space<vmem>>, %arg3: memref<1024x512xbf16, #tpu.memory_space<vmem>>, %arg4: memref<1x512xf32, #tpu.memory_space<vmem>>, %arg5: memref<512x256xbf16, #tpu.memory_space<vmem>>, %arg6: memref<1x256xf32, #tpu.memory_space<vmem>>, %arg7: memref<256x64xbf16, #tpu.memory_space<vmem>>, %arg8: memref<1x64xf32, #tpu.memory_space<vmem>>, %arg9: memref<32x256xbf16, #tpu.memory_space<vmem>>, %arg10: memref<1x256xf32, #tpu.memory_space<vmem>>, %arg11: memref<256x512xbf16, #tpu.memory_space<vmem>>, %arg12: memref<1x512xf32, #tpu.memory_space<vmem>>, %arg13: memref<512x1024xbf16, #tpu.memory_space<vmem>>, %arg14: memref<1x1024xf32, #tpu.memory_space<vmem>>, %arg15: memref<8x1024xf32, #tpu.memory_space<vmem>>, %arg16: memref<8x64xf32, #tpu.memory_space<vmem>>) attributes {dimension_semantics = [#tpu.dimension_semantics<parallel>], iteration_bounds = array<i64: 1>, scalar_prefetch = 0 : i64, scratch_operands = 0 : i64, tpu.core_type = #tpu.core_type<tc>, window_params = [{transform_indices = @transform_0, window_bounds = array<i64: 8, 1024>}, {transform_indices = @transform_1, window_bounds = array<i64: 8, 32>}, {pipeline_mode = #tpu.pipeline_mode<synchronous>, transform_indices = @transform_2, window_bounds = array<i64: 1024, 512>}, {pipeline_mode = #tpu.pipeline_mode<synchronous>, transform_indices = @transform_3, window_bounds = array<i64: 1, 512>}, {pipeline_mode = #tpu.pipeline_mode<synchronous>, transform_indices = @transform_4, window_bounds = array<i64: 512, 256>}, {pipeline_mode = #tpu.pipeline_mode<synchronous>, transform_indices = @transform_5, window_bounds = array<i64: 1, 256>}, {pipeline_mode = #tpu.pipeline_mode<synchronous>, transform_indices = @transform_6, window_bounds = array<i64: 256, 64>}, {pipeline_mode = #tpu.pipeline_mode<synchronous>, transform_indices = @transform_7, window_bounds = array<i64: 1, 64>}, {pipeline_mode = #tpu.pipeline_mode<synchronous>, transform_indices = @transform_8, window_bounds = array<i64: 32, 256>}, {pipeline_mode = #tpu.pipeline_mode<synchronous>, transform_indices = @transform_9, window_bounds = array<i64: 1, 256>}, {pipeline_mode = #tpu.pipeline_mode<synchronous>, transform_indices = @transform_10, window_bounds = array<i64: 256, 512>}, {pipeline_mode = #tpu.pipeline_mode<synchronous>, transform_indices = @transform_11, window_bounds = array<i64: 1, 512>}, {pipeline_mode = #tpu.pipeline_mode<synchronous>, transform_indices = @transform_12, window_bounds = array<i64: 512, 1024>}, {pipeline_mode = #tpu.pipeline_mode<synchronous>, transform_indices = @transform_13, window_bounds = array<i64: 1, 1024>}, {transform_indices = @transform_14, window_bounds = array<i64: 8, 1024>}, {transform_indices = @transform_15, window_bounds = array<i64: 8, 64>}]} {
    %c0 = arith.constant 0 : index
    %c0_0 = arith.constant 0 : index
    %0 = vector.load %arg1[%c0, %c0_0] : memref<8x1024xf32, #tpu.memory_space<vmem>>, vector<8x1024xf32>
    %1 = arith.truncf %0 : vector<8x1024xf32> to vector<8x1024xbf16>
    %c0_1 = arith.constant 0 : index
    %c0_2 = arith.constant 0 : index
    %2 = vector.load %arg3[%c0_1, %c0_2] : memref<1024x512xbf16, #tpu.memory_space<vmem>>, vector<1024x512xbf16>
    %cst = arith.constant dense<0.000000e+00> : vector<8x512xf32>
    %3 = tpu.matmul %1, %2, %cst {dimension_numbers = #tpu.dot_dimension_numbers<[1], [0], [0], [1], [0, 0, 1, 1], [], []>} : vector<8x1024xbf16>, vector<1024x512xbf16>, vector<8x512xf32> -> vector<8x512xf32>
    %c0_3 = arith.constant 0 : index
    %c0_4 = arith.constant 0 : index
    %4 = vector.load %arg4[%c0_3, %c0_4] : memref<1x512xf32, #tpu.memory_space<vmem>>, vector<1x512xf32>
    %5 = vector.broadcast %4 : vector<1x512xf32> to vector<8x512xf32>
    %6 = arith.addf %3, %5 : vector<8x512xf32>
    %cst_5 = arith.constant 0.000000e+00 : f32
    %7 = vector.broadcast %cst_5 : f32 to vector<8x512xf32>
    %8 = arith.maximumf %6, %7 : vector<8x512xf32>
    %9 = arith.truncf %8 : vector<8x512xf32> to vector<8x512xbf16>
    %c0_6 = arith.constant 0 : index
    %c0_7 = arith.constant 0 : index
    %10 = vector.load %arg5[%c0_6, %c0_7] : memref<512x256xbf16, #tpu.memory_space<vmem>>, vector<512x256xbf16>
    %cst_8 = arith.constant dense<0.000000e+00> : vector<8x256xf32>
    %11 = tpu.matmul %9, %10, %cst_8 {dimension_numbers = #tpu.dot_dimension_numbers<[1], [0], [0], [1], [0, 0, 1, 1], [], []>} : vector<8x512xbf16>, vector<512x256xbf16>, vector<8x256xf32> -> vector<8x256xf32>
    %c0_9 = arith.constant 0 : index
    %c0_10 = arith.constant 0 : index
    %12 = vector.load %arg6[%c0_9, %c0_10] : memref<1x256xf32, #tpu.memory_space<vmem>>, vector<1x256xf32>
    %13 = vector.broadcast %12 : vector<1x256xf32> to vector<8x256xf32>
    %14 = arith.addf %11, %13 : vector<8x256xf32>
    %cst_11 = arith.constant 0.000000e+00 : f32
    %15 = vector.broadcast %cst_11 : f32 to vector<8x256xf32>
    %16 = arith.maximumf %14, %15 : vector<8x256xf32>
    %17 = arith.truncf %16 : vector<8x256xf32> to vector<8x256xbf16>
    %c0_12 = arith.constant 0 : index
    %c0_13 = arith.constant 0 : index
    %18 = vector.load %arg7[%c0_12, %c0_13] : memref<256x64xbf16, #tpu.memory_space<vmem>>, vector<256x64xbf16>
    %cst_14 = arith.constant dense<0.000000e+00> : vector<8x64xf32>
    %19 = tpu.matmul %17, %18, %cst_14 {dimension_numbers = #tpu.dot_dimension_numbers<[1], [0], [0], [1], [0, 0, 1, 1], [], []>} : vector<8x256xbf16>, vector<256x64xbf16>, vector<8x64xf32> -> vector<8x64xf32>
    %c0_15 = arith.constant 0 : index
    %c0_16 = arith.constant 0 : index
    %20 = vector.load %arg8[%c0_15, %c0_16] : memref<1x64xf32, #tpu.memory_space<vmem>>, vector<1x64xf32>
    %21 = vector.broadcast %20 : vector<1x64xf32> to vector<8x64xf32>
    %22 = arith.addf %19, %21 : vector<8x64xf32>
    %23 = vector.extract_strided_slice %22 {offsets = [0, 0], sizes = [8, 32], strides = [1, 1]} : vector<8x64xf32> to vector<8x32xf32>
    %24 = vector.extract_strided_slice %22 {offsets = [0, 32], sizes = [8, 32], strides = [1, 1]} : vector<8x64xf32> to vector<8x32xf32>
    %cst_17 = arith.constant 5.000000e-01 : f32
    %25 = vector.broadcast %cst_17 : f32 to vector<8x32xf32>
    %26 = arith.mulf %25, %24 : vector<8x32xf32>
    %27 = math.exp %26 : vector<8x32xf32>
    %c0_18 = arith.constant 0 : index
    %c0_19 = arith.constant 0 : index
    %28 = vector.load %arg2[%c0_18, %c0_19] : memref<8x32xf32, #tpu.memory_space<vmem>>, vector<8x32xf32>
    %29 = arith.mulf %28, %27 : vector<8x32xf32>
    %30 = arith.addf %23, %29 : vector<8x32xf32>
    %31 = arith.truncf %30 : vector<8x32xf32> to vector<8x32xbf16>
    %c0_20 = arith.constant 0 : index
    %c0_21 = arith.constant 0 : index
    %32 = vector.load %arg9[%c0_20, %c0_21] : memref<32x256xbf16, #tpu.memory_space<vmem>>, vector<32x256xbf16>
    %cst_22 = arith.constant dense<0.000000e+00> : vector<8x256xf32>
    %33 = tpu.matmul %31, %32, %cst_22 {dimension_numbers = #tpu.dot_dimension_numbers<[1], [0], [0], [1], [0, 0, 1, 1], [], []>} : vector<8x32xbf16>, vector<32x256xbf16>, vector<8x256xf32> -> vector<8x256xf32>
    %c0_23 = arith.constant 0 : index
    %c0_24 = arith.constant 0 : index
    %34 = vector.load %arg10[%c0_23, %c0_24] : memref<1x256xf32, #tpu.memory_space<vmem>>, vector<1x256xf32>
    %35 = vector.broadcast %34 : vector<1x256xf32> to vector<8x256xf32>
    %36 = arith.addf %33, %35 : vector<8x256xf32>
    %cst_25 = arith.constant 0.000000e+00 : f32
    %37 = vector.broadcast %cst_25 : f32 to vector<8x256xf32>
    %38 = arith.maximumf %36, %37 : vector<8x256xf32>
    %39 = arith.truncf %38 : vector<8x256xf32> to vector<8x256xbf16>
    %c0_26 = arith.constant 0 : index
    %c0_27 = arith.constant 0 : index
    %40 = vector.load %arg11[%c0_26, %c0_27] : memref<256x512xbf16, #tpu.memory_space<vmem>>, vector<256x512xbf16>
    %cst_28 = arith.constant dense<0.000000e+00> : vector<8x512xf32>
    %41 = tpu.matmul %39, %40, %cst_28 {dimension_numbers = #tpu.dot_dimension_numbers<[1], [0], [0], [1], [0, 0, 1, 1], [], []>} : vector<8x256xbf16>, vector<256x512xbf16>, vector<8x512xf32> -> vector<8x512xf32>
    %c0_29 = arith.constant 0 : index
    %c0_30 = arith.constant 0 : index
    %42 = vector.load %arg12[%c0_29, %c0_30] : memref<1x512xf32, #tpu.memory_space<vmem>>, vector<1x512xf32>
    %43 = vector.broadcast %42 : vector<1x512xf32> to vector<8x512xf32>
    %44 = arith.addf %41, %43 : vector<8x512xf32>
    %cst_31 = arith.constant 0.000000e+00 : f32
    %45 = vector.broadcast %cst_31 : f32 to vector<8x512xf32>
    %46 = arith.maximumf %44, %45 : vector<8x512xf32>
    %47 = arith.truncf %46 : vector<8x512xf32> to vector<8x512xbf16>
    %c0_32 = arith.constant 0 : index
    %c0_33 = arith.constant 0 : index
    %48 = vector.load %arg13[%c0_32, %c0_33] : memref<512x1024xbf16, #tpu.memory_space<vmem>>, vector<512x1024xbf16>
    %cst_34 = arith.constant dense<0.000000e+00> : vector<8x1024xf32>
    %49 = tpu.matmul %47, %48, %cst_34 {dimension_numbers = #tpu.dot_dimension_numbers<[1], [0], [0], [1], [0, 0, 1, 1], [], []>} : vector<8x512xbf16>, vector<512x1024xbf16>, vector<8x1024xf32> -> vector<8x1024xf32>
    %c0_35 = arith.constant 0 : index
    %c0_36 = arith.constant 0 : index
    %50 = vector.load %arg14[%c0_35, %c0_36] : memref<1x1024xf32, #tpu.memory_space<vmem>>, vector<1x1024xf32>
    %51 = vector.broadcast %50 : vector<1x1024xf32> to vector<8x1024xf32>
    %52 = arith.addf %49, %51 : vector<8x1024xf32>
    %53 = arith.negf %52 : vector<8x1024xf32>
    %54 = math.exp %53 : vector<8x1024xf32>
    %cst_37 = arith.constant 1.000000e+00 : f32
    %55 = vector.broadcast %cst_37 : f32 to vector<8x1024xf32>
    %56 = arith.addf %55, %54 : vector<8x1024xf32>
    %57 = arith.divf %55, %56 : vector<8x1024xf32>
    %c0_38 = arith.constant 0 : index
    %c0_39 = arith.constant 0 : index
    %58 = vector.load %arg15[%c0_38, %c0_39] : memref<8x1024xf32, #tpu.memory_space<vmem>>, vector<8x1024xf32>
    tpu.vector_store %arg15[%c0_38, %c0_39], %57 {strides = array<i32>} : memref<8x1024xf32, #tpu.memory_space<vmem>>, vector<8x1024xf32>,
    %c0_40 = arith.constant 0 : index
    %c0_41 = arith.constant 0 : index
    %59 = vector.load %arg16[%c0_40, %c0_41] : memref<8x64xf32, #tpu.memory_space<vmem>>, vector<8x64xf32>
    tpu.vector_store %arg16[%c0_40, %c0_41], %22 {strides = array<i32>} : memref<8x64xf32, #tpu.memory_space<vmem>>, vector<8x64xf32>,
    return
  }
  func.func @transform_0(%arg0: i32) -> (i32, i32) {
    %c0_i32 = arith.constant 0 : i32
    %c0_i32_0 = arith.constant 0 : i32
    return %arg0, %c0_i32 : i32, i32
  }
  func.func @transform_1(%arg0: i32) -> (i32, i32) {
    %c0_i32 = arith.constant 0 : i32
    %c0_i32_0 = arith.constant 0 : i32
    return %arg0, %c0_i32 : i32, i32
  }
  func.func @transform_2(%arg0: i32) -> (i32, i32) {
    %c0_i32 = arith.constant 0 : i32
    %c0_i32_0 = arith.constant 0 : i32
    %c0_i32_1 = arith.constant 0 : i32
    return %c0_i32, %c0_i32_0 : i32, i32
  }
  func.func @transform_3(%arg0: i32) -> (i32, i32) {
    %c0_i32 = arith.constant 0 : i32
    %c0_i32_0 = arith.constant 0 : i32
    %c0_i32_1 = arith.constant 0 : i32
    return %c0_i32, %c0_i32_0 : i32, i32
  }
  func.func @transform_4(%arg0: i32) -> (i32, i32) {
    %c0_i32 = arith.constant 0 : i32
    %c0_i32_0 = arith.constant 0 : i32
    %c0_i32_1 = arith.constant 0 : i32
    return %c0_i32, %c0_i32_0 : i32, i32
  }
  func.func @transform_5(%arg0: i32) -> (i32, i32) {
    %c0_i32 = arith.constant 0 : i32
    %c0_i32_0 = arith.constant 0 : i32
    %c0_i32_1 = arith.constant 0 : i32
    return %c0_i32, %c0_i32_0 : i32, i32
  }
  func.func @transform_6(%arg0: i32) -> (i32, i32) {
    %c0_i32 = arith.constant 0 : i32
    %c0_i32_0 = arith.constant 0 : i32
    %c0_i32_1 = arith.constant 0 : i32
    return %c0_i32, %c0_i32_0 : i32, i32
  }
  func.func @transform_7(%arg0: i32) -> (i32, i32) {
    %c0_i32 = arith.constant 0 : i32
    %c0_i32_0 = arith.constant 0 : i32
    %c0_i32_1 = arith.constant 0 : i32
    return %c0_i32, %c0_i32_0 : i32, i32
  }
  func.func @transform_8(%arg0: i32) -> (i32, i32) {
    %c0_i32 = arith.constant 0 : i32
    %c0_i32_0 = arith.constant 0 : i32
    %c0_i32_1 = arith.constant 0 : i32
    return %c0_i32, %c0_i32_0 : i32, i32
  }
  func.func @transform_9(%arg0: i32) -> (i32, i32) {
    %c0_i32 = arith.constant 0 : i32
    %c0_i32_0 = arith.constant 0 : i32
    %c0_i32_1 = arith.constant 0 : i32
    return %c0_i32, %c0_i32_0 : i32, i32
  }
  func.func @transform_10(%arg0: i32) -> (i32, i32) {
    %c0_i32 = arith.constant 0 : i32
    %c0_i32_0 = arith.constant 0 : i32
    %c0_i32_1 = arith.constant 0 : i32
    return %c0_i32, %c0_i32_0 : i32, i32
  }
  func.func @transform_11(%arg0: i32) -> (i32, i32) {
    %c0_i32 = arith.constant 0 : i32
    %c0_i32_0 = arith.constant 0 : i32
    %c0_i32_1 = arith.constant 0 : i32
    return %c0_i32, %c0_i32_0 : i32, i32
  }
  func.func @transform_12(%arg0: i32) -> (i32, i32) {
    %c0_i32 = arith.constant 0 : i32
    %c0_i32_0 = arith.constant 0 : i32
    %c0_i32_1 = arith.constant 0 : i32
    return %c0_i32, %c0_i32_0 : i32, i32
  }
  func.func @transform_13(%arg0: i32) -> (i32, i32) {
    %c0_i32 = arith.constant 0 : i32
    %c0_i32_0 = arith.constant 0 : i32
    %c0_i32_1 = arith.constant 0 : i32
    return %c0_i32, %c0_i32_0 : i32, i32
  }
  func.func @transform_14(%arg0: i32) -> (i32, i32) {
    %c0_i32 = arith.constant 0 : i32
    %c0_i32_0 = arith.constant 0 : i32
    return %arg0, %c0_i32 : i32, i32
  }
  func.func @transform_15(%arg0: i32) -> (i32, i32) {
    %c0_i32 = arith.constant 0 : i32
    %c0_i32_0 = arith.constant 0 : i32
    return %arg0, %c0_i32 : i32, i32
  }
}

</mosaic_0001>

<bundles_post_ra>
// kernel: tpu_custom_call.1
= control target key start
LH: loop header
LB: loop body
LE: loop exit
PB: predicated region body
PF: predicated region fallthrough
CT: control target
= control target key end

     0   :  { %21 = vsyncpa [#allocation3], 0  ;;  %s7186_s0 = inlined_call_operand.vmem [shape: f32[8,1024], index: 0, kind: input, shape index: {}]   ;;  %s7187_s1 = inlined_call_operand.vmem [shape: f32[8,32], index: 1, kind: input, shape index: {}]   ;;  %s7188_s2 = inlined_call_operand.hbm [shape: bf16[1024,512], index: 2, kind: input, shape index: {}]   ;;  %s7189_s3 = inlined_call_operand.vmem [shape: f32[1,512], index: 3, kind: input, shape index: {}]   ;;  %s7190_s4 = inlined_call_operand.hbm [shape: bf16[512,256], index: 4, kind: input, shape index: {}]   ;;  %s7191_s5 = inlined_call_operand.vmem [shape: f32[1,256], index: 5, kind: input, shape index: {}]   ;;  %s7192_s6 = inlined_call_operand.vmem [shape: bf16[256,64], index: 6, kind: input, shape index: {}]   ;;  %s7193_s7 = inlined_call_operand.vmem [shape: f32[1,64], index: 7, kind: input, shape index: {}]   ;;  %s7194_s8 = inlined_call_operand.vmem [shape: bf16[32,256], index: 8, kind: input, shape index: {}]   ;;  %s7195_s9 = inlined_call_operand.vmem [shape: f32[1,256], index: 9, kind: input, shape index: {}]   ;;  %s7196_s10 = inlined_call_operand.hbm [shape: bf16[256,512], index: 10, kind: input, shape index: {}]   ;;  %s7197_s11 = inlined_call_operand.vmem [shape: f32[1,512], index: 11, kind: input, shape index: {}]   ;;  %s7198_s12 = inlined_call_operand.hbm [shape: bf16[512,1024], index: 12, kind: input, shape index: {}]   ;;  %s7199_s13 = inlined_call_operand.vmem [shape: f32[1,1024], index: 13, kind: input, shape index: {}]   ;;  %s7200_s14 = inlined_call_operand.hbm [shape: f32[8,1024], index: 14, kind: output, shape index: {0}]   ;;  %s7201_s15 = inlined_call_operand.hbm [shape: f32[8,64], index: 15, kind: output, shape index: {1}]  }
   0x1   :  { %22 = vsyncpa [#allocation6], 0 }
   0x2   :  { %23 = vsyncpa [#allocation9], 0 }
   0x3   :  { %24 = vsyncpa [#allocation4], 0 }
   0x4   :  { %25 = vsyncpa [#allocation12], 0  ;;  %s6799_s18 = smov [#allocation5]   ;;  %s6657_s22 = scalar_lea.hbm %s7190_s4, 8192 }
   0x5   :  { %s49_s19 = sshll.u32 %s6799_s18, 4  ;;  %p6658_p0 = scmp.ne.s32.totalorder %s7190_s4, %s6657_s22  ;;  %s50_s19 = int_to_ptr.vmem [resolvable:$true] %s49_s19 }
   0x6   :  { %p6661_p1 = scmp.lt.u32.totalorder %s6657_s22, %s7190_s4 }
   0x8   :  { %p6663_p2 = pnand %p6661_p1, %p6658_p0 }
   0xa   :  { %6666 = shalt.err (!%p6663_p2)
}
   0xb   :  { %s6667_s27 = scalar_lea.vmem %s50_s19, 8192  ;;  %p6672_p4 = scmp.lt.s32.totalorder %s50_s19, %s50_s19 }
   0xc   :  { %p6668_p3 = scmp.ne.s32.totalorder %s50_s19, %s6667_s27  ;;  %p6673_p5 = scmp.lt.s32.totalorder %s6667_s27, %s6667_s27 }
   0xe   :  { %p6674_p6 = por %p6673_p5, %p6672_p4 }
  0x10   :  { %p6675_p7 = pnand %p6674_p6, %p6668_p3 }
  0x12   :  { %6678 = shalt.err (!%p6675_p7)
}
  0x13   :  { %s6800_s28 = smov 128   ;;  %s6801_s29 = smov 8  }
  0x14   :  { %55 = dma.hbm_to_vmem [thread:$0]  %s7190_s4, 8192, %s50_s19, [#allocation6], %s6800_s28, %s6800_s28, %s6801_s29  }
  0x15   :  { %s6802_s17 = smov [#allocation2]   ;;  %s6679_s22 = scalar_lea.hbm %s7188_s2, 32768 }
  0x16   :  { %s35_s18 = sshll.u32 %s6802_s17, 4  ;;  %p6680_p8 = scmp.ne.s32.totalorder %s7188_s2, %s6679_s22  ;;  %s36_s18 = int_to_ptr.vmem [resolvable:$true] %s35_s18 }
  0x17   :  { %p6683_p9 = scmp.lt.u32.totalorder %s6679_s22, %s7188_s2 }
  0x19   :  { %p6685_p10 = pnand %p6683_p9, %p6680_p8 }
  0x1b   :  { %6688 = shalt.err (!%p6685_p10)
}
  0x1c   :  { %s6689_s27 = scalar_lea.vmem %s36_s18, 32768  ;;  %p6694_p12 = scmp.lt.s32.totalorder %s36_s18, %s36_s18 }
  0x1d   :  { %p6690_p11 = scmp.ne.s32.totalorder %s36_s18, %s6689_s27  ;;  %p6695_p13 = scmp.lt.s32.totalorder %s6689_s27, %s6689_s27 }
  0x1f   :  { %p6696_p0 = por %p6695_p13, %p6694_p12 }
  0x21   :  { %p6697_p1 = pnand %p6696_p0, %p6690_p11 }
  0x23   :  { %6700 = shalt.err (!%p6697_p1)
}
  0x24   :  { %s6803_s4 = smov 256   ;;  %s6804_s19 = smov 16  }
  0x25   :  { %41 = dma.hbm_to_vmem [thread:$0]  %s7188_s2, 32768, %s36_s18, [#allocation3], %s6803_s4, %s6803_s4, %s6804_s19  }
  0x26   :  { %s6805_s30 = smov [#allocation7]   ;;  %s6806_s17 = smov [#allocation8]  }
  0x27   :  { %s71_s16 = sshll.u32 %s6805_s30, 4  ;;  %s85_s20 = sshll.u32 %s6806_s17, 4  ;;  %s72_s16 = int_to_ptr.vmem [resolvable:$true] %s71_s16  ;;  %s6917_s20 = int_to_ptr.vmem [resolvable:$true] %s85_s20 }
  0x28   :  { %s6701_s23 = scalar_lea.hbm %s7196_s10, 8192 }
  0x29   :  { %p6702_p2 = scmp.ne.s32.totalorder %s7196_s10, %s6701_s23  ;;  %p6705_p3 = scmp.lt.u32.totalorder %s6701_s23, %s7196_s10 }
  0x2b   :  { %p6707_p4 = pnand %p6705_p3, %p6702_p2 }
  0x2d   :  { %6710 = shalt.err (!%p6707_p4)
}
  0x2e   :  { %s6711_s2 = scalar_lea.vmem %s72_s16, 8192  ;;  %p6716_p6 = scmp.lt.s32.totalorder %s72_s16, %s72_s16 }
  0x2f   :  { %p6712_p5 = scmp.ne.s32.totalorder %s72_s16, %s6711_s2  ;;  %p6717_p7 = scmp.lt.s32.totalorder %s6711_s2, %s6711_s2 }
  0x31   :  { %p6718_p8 = por %p6717_p7, %p6716_p6 }
  0x33   :  { %p6719_p9 = pnand %p6718_p8, %p6712_p5 }
  0x35   :  { %6722 = shalt.err (!%p6719_p9)
}
  0x36   :  { %77 = dma.hbm_to_vmem [thread:$0]  %s7196_s10, 8192, %s72_s16, [#allocation6], %s6803_s4, %s6803_s4, %s6804_s19  }
  0x37   :  { %s6723_s17 = scalar_lea.hbm %s7198_s12, 32768 }
  0x38   :  { %p6724_p10 = scmp.ne.s32.totalorder %s7198_s12, %s6723_s17  ;;  %p6727_p11 = scmp.lt.u32.totalorder %s6723_s17, %s7198_s12 }
  0x3a   :  { %p6729_p12 = pnand %p6727_p11, %p6724_p10 }
  0x3c   :  { %6732 = shalt.err (!%p6729_p12)
}
  0x3d   :  { %s6733_s25 = scalar_lea.vmem %s6917_s20, 32768  ;;  %p6738_p0 = scmp.lt.s32.totalorder %s6917_s20, %s6917_s20 }
  0x3e   :  { %p6734_p13 = scmp.ne.s32.totalorder %s6917_s20, %s6733_s25  ;;  %p6739_p1 = scmp.lt.s32.totalorder %s6733_s25, %s6733_s25 }
  0x40   :  { %p6740_p2 = por %p6739_p1, %p6738_p0 }
  0x42   :  { %p6741_p3 = pnand %p6740_p2, %p6734_p13 }
  0x44   :  { %6744 = shalt.err (!%p6741_p3)
}
  0x45   :  { %s6807_s10 = smov 512   ;;  %s6808_s4 = smov 32  }
  0x46   :  { %91 = dma.hbm_to_vmem [thread:$0]  %s7198_s12, 32768, %s6917_s20, [#allocation9], %s6807_s10, %s6807_s10, %s6808_s4  }
  0x47   :  { %6789 = dma.done.wait [#allocation3], 32768  }
  0x48   :  { %6790 = vsyncadd [#allocation3], 4294934528 }
  0x49   :  { %6791 = dma.done.wait [#allocation6], 16384  }
  0x4a   :  { %6792 = vsyncadd [#allocation6], 4294950912 }
  0x4b   :  { %6793 = dma.done.wait [#allocation9], 32768  }
  0x4c   :  { %6794 = vsyncadd [#allocation9], 4294934528  ;;  %v6025_v0 = vld [vmem:[#allocation2 + $0x4] ss:$16 sps:$4 sm:$0xff]   ;;  %v6027_v1 = vld [vmem:[#allocation2 + $0xc] ss:$16 sps:$4 sm:$0xff]  }
  0x4d   :  { %1681 = vmatprep.subr.bf16.mxu0 %v6025_v0  ;;  %v6029_v2 = vld [vmem:[#allocation2] ss:$16 sps:$4 sm:$0xff]   ;;  %v6030_v3 = vld [vmem:[#allocation2 + $0x8] ss:$16 sps:$4 sm:$0xff]   ;;  %1845 = vmatprep.subr.bf16.mxu1 %v6027_v1  ;;  %v6031_v4 = vld [vmem:[#allocation2 + $0x24] ss:$16 sps:$4 sm:$0xff]  }
  0x4e   :  { %1682 = vmatpush1.bf16.msra.mxu0 %v6029_v2  ;;  %1846 = vmatpush1.bf16.msra.mxu1 %v6030_v3  ;;  %v6033_v5 = vld [vmem:[#allocation2 + $0x2c] ss:$16 sps:$4 sm:$0xff]   ;;  %v6035_v6 = vld [vmem:[#allocation2 + $0x20] ss:$16 sps:$4 sm:$0xff]   ;;  %v6036_v7 = vld [vmem:[#allocation2 + $0x28] ss:$16 sps:$4 sm:$0xff]  }
  0x4f   :  { %1683 = vmatprep.subr.bf16.mxu0 %v6031_v4  ;;  %1847 = vmatprep.subr.bf16.mxu1 %v6033_v5  ;;  %v6037_v8 = vld [vmem:[#allocation2 + $0x44] ss:$16 sps:$4 sm:$0xff]   ;;  %v6039_v9 = vld [vmem:[#allocation2 + $0x4c] ss:$16 sps:$4 sm:$0xff]   ;;  %v6041_v10 = vld [vmem:[#allocation2 + $0x40] ss:$16 sps:$4 sm:$0xff]  }
  0x50   :  { %v6042_v11 = vld [vmem:[#allocation2 + $0x48] ss:$16 sps:$4 sm:$0xff]   ;;  %v6043_v12 = vld [vmem:[#allocation2 + $0x64] ss:$16 sps:$4 sm:$0xff]   ;;  %v6045_v13 = vld [vmem:[#allocation2 + $0x6c] ss:$16 sps:$4 sm:$0xff]  }
  0x51   :  { %v6047_v14 = vld [vmem:[#allocation2 + $0x60] ss:$16 sps:$4 sm:$0xff]   ;;  %v6048_v15 = vld [vmem:[#allocation2 + $0x68] ss:$16 sps:$4 sm:$0xff]   ;;  %v6049_v16 = vld [vmem:[#allocation2 + $0x84] ss:$16 sps:$4 sm:$0xff]  }
  0x52   :  { %1684 = vmatpush1.bf16.msra.mxu0 %v6035_v6  ;;  %1848 = vmatpush1.bf16.msra.mxu1 %v6036_v7  ;;  %v6051_v17 = vld [vmem:[#allocation2 + $0x8c] ss:$16 sps:$4 sm:$0xff]   ;;  %v6053_v18 = vld [vmem:[#allocation2 + $0x80] ss:$16 sps:$4 sm:$0xff]   ;;  %v6054_v19 = vld [vmem:[#allocation2 + $0x88] ss:$16 sps:$4 sm:$0xff]  }
  0x53   :  { %1685 = vmatprep.subr.bf16.mxu0 %v6037_v8  ;;  %1849 = vmatprep.subr.bf16.mxu1 %v6039_v9  ;;  %v6055_v20 = vld [vmem:[#allocation2 + $0xa4] ss:$16 sps:$4 sm:$0xff]   ;;  %v6057_v21 = vld [vmem:[#allocation2 + $0xac] ss:$16 sps:$4 sm:$0xff]   ;;  %v6059_v22 = vld [vmem:[#allocation2 + $0xa0] ss:$16 sps:$4 sm:$0xff]  }
  0x54   :  { %v6060_v23 = vld [vmem:[#allocation2 + $0xa8] ss:$16 sps:$4 sm:$0xff]   ;;  %v6061_v24 = vld [vmem:[#allocation2 + $0xc4] ss:$16 sps:$4 sm:$0xff]   ;;  %v6063_v25 = vld [vmem:[#allocation2 + $0xcc] ss:$16 sps:$4 sm:$0xff]  }
  0x55   :  { %v6065_v26 = vld [vmem:[#allocation2 + $0xc0] ss:$16 sps:$4 sm:$0xff]   ;;  %v6066_v27 = vld [vmem:[#allocation2 + $0xc8] ss:$16 sps:$4 sm:$0xff]   ;;  %v6067_v28 = vld [vmem:[#allocation2 + $0xe4] ss:$16 sps:$4 sm:$0xff]  }
  0x56   :  { %1686 = vmatpush1.bf16.msra.mxu0 %v6041_v10  ;;  %1850 = vmatpush1.bf16.msra.mxu1 %v6042_v11  ;;  %v6069_v29 = vld [vmem:[#allocation2 + $0xec] ss:$16 sps:$4 sm:$0xff]   ;;  %v6071_v30 = vld [vmem:[#allocation2 + $0xe0] ss:$16 sps:$4 sm:$0xff]   ;;  %v6072_v31 = vld [vmem:[#allocation2 + $0xe8] ss:$16 sps:$4 sm:$0xff]  }
  0x57   :  { %1687 = vmatprep.subr.bf16.mxu0 %v6043_v12  ;;  %1851 = vmatprep.subr.bf16.mxu1 %v6045_v13  ;;  %v6073_v32 = vld [vmem:[#allocation2 + $0x104] ss:$16 sps:$4 sm:$0xff]   ;;  %v6075_v33 = vld [vmem:[#allocation2 + $0x10c] ss:$16 sps:$4 sm:$0xff]   ;;  %v6077_v34 = vld [vmem:[#allocation2 + $0x100] ss:$16 sps:$4 sm:$0xff]  }
  0x58   :  { %v6078_v35 = vld [vmem:[#allocation2 + $0x108] ss:$16 sps:$4 sm:$0xff]   ;;  %v6079_v36 = vld [vmem:[#allocation2 + $0x124] ss:$16 sps:$4 sm:$0xff]   ;;  %v6081_v37 = vld [vmem:[#allocation2 + $0x12c] ss:$16 sps:$4 sm:$0xff]  }
  0x59   :  { %v6083_v38 = vld [vmem:[#allocation2 + $0x120] ss:$16 sps:$4 sm:$0xff]   ;;  %v6084_v39 = vld [vmem:[#allocation2 + $0x128] ss:$16 sps:$4 sm:$0xff]   ;;  %v6085_v40 = vld [vmem:[#allocation2 + $0x144] ss:$16 sps:$4 sm:$0xff]  }
  0x5a   :  { %1688 = vmatpush1.bf16.msra.mxu0 %v6047_v14  ;;  %1852 = vmatpush1.bf16.msra.mxu1 %v6048_v15  ;;  %v6087_v41 = vld [vmem:[#allocation2 + $0x14c] ss:$16 sps:$4 sm:$0xff]   ;;  %v6089_v42 = vld [vmem:[#allocation2 + $0x140] ss:$16 sps:$4 sm:$0xff]   ;;  %v6090_v43 = vld [vmem:[#allocation2 + $0x148] ss:$16 sps:$4 sm:$0xff]  }
  0x5b   :  { %1689 = vmatprep.subr.bf16.mxu0 %v6049_v16  ;;  %1853 = vmatprep.subr.bf16.mxu1 %v6051_v17  ;;  %v6091_v44 = vld [vmem:[#allocation2 + $0x164] ss:$16 sps:$4 sm:$0xff]   ;;  %v6093_v45 = vld [vmem:[#allocation2 + $0x16c] ss:$16 sps:$4 sm:$0xff]   ;;  %v6095_v47 = vld [vmem:[#allocation2 + $0x160] ss:$16 sps:$4 sm:$0xff]  }
  0x5c   :  { %v108_v46 = vld [vmem:[%s7186_s0 + $0x8] sm:$0xff]  ;;  %v6097_v50 = vld [vmem:[#allocation2 + $0x184] ss:$16 sps:$4 sm:$0xff]   ;;  %v6101_v52 = vld [vmem:[#allocation2 + $0x180] ss:$16 sps:$4 sm:$0xff]   ;;  %vm5228_vm0 = vcmask 523264  }
  0x5d   :  { %v116_v48 = vpack.c.bf16 %v108_v46, %v108_v46  ;;  %v6096_v49 = vld [vmem:[#allocation2 + $0x168] ss:$16 sps:$4 sm:$0xff]   ;;  %v6099_v51 = vld [vmem:[#allocation2 + $0x18c] ss:$16 sps:$4 sm:$0xff]   ;;  %v6103_v54 = vld [vmem:[#allocation2 + $0x1a4] ss:$16 sps:$4 sm:$0xff]  }
  0x5e   :  { %1690 = vmatpush1.bf16.msra.mxu0 %v6053_v18  ;;  %1854 = vmatpush1.bf16.msra.mxu1 %v6054_v19  ;;  %v6102_v53 = vld [vmem:[#allocation2 + $0x188] ss:$16 sps:$4 sm:$0xff]   ;;  %v6105_v55 = vld [vmem:[#allocation2 + $0x1ac] ss:$16 sps:$4 sm:$0xff]   ;;  %v6107_v56 = vld [vmem:[#allocation2 + $0x1a0] ss:$16 sps:$4 sm:$0xff]  }
  0x5f   :  { %1691 = vmatprep.subr.bf16.mxu0 %v6055_v20  ;;  %1855 = vmatprep.subr.bf16.mxu1 %v6057_v21  ;;  %v6108_v57 = vld [vmem:[#allocation2 + $0x1a8] ss:$16 sps:$4 sm:$0xff]   ;;  %v6109_v58 = vld [vmem:[#allocation2 + $0x1c4] ss:$16 sps:$4 sm:$0xff]   ;;  %v6111_v59 = vld [vmem:[#allocation2 + $0x1cc] ss:$16 sps:$4 sm:$0xff]  }
  0x60   :  { %1713 = vmatprep.mubr.bf16.mxu0 %v116_v48  ;;  %1877 = vmatprep.mubr.bf16.mxu1 %v116_v48  ;;  %v6113_v60 = vld [vmem:[#allocation2 + $0x1c0] ss:$16 sps:$4 sm:$0xff]   ;;  %v6114_v61 = vld [vmem:[#allocation2 + $0x1c8] ss:$16 sps:$4 sm:$0xff]   ;;  %v6115_v62 = vld [vmem:[#allocation2 + $0x1e4] ss:$16 sps:$4 sm:$0xff]  }
  0x61   :  { %v6117_v63 = vld [vmem:[#allocation2 + $0x1ec] ss:$16 sps:$4 sm:$0xff]   ;;  %v6119_v0 = vld [vmem:[#allocation2 + $0x1e0] ss:$16 sps:$4 sm:$0xff]   ;;  %v6120_v1 = vld [vmem:[#allocation2 + $0x1e8] ss:$16 sps:$4 sm:$0xff]  }
  0x62   :  { %1692 = vmatpush1.bf16.msra.mxu0 %v6059_v22  ;;  %1856 = vmatpush1.bf16.msra.mxu1 %v6060_v23  ;;  %v107_v2 = vld [vmem:[%s7186_s0] sm:$0xff]  ;;  %v6126_v4 = vld [vmem:[#allocation2 + $0x20c] ss:$16 sps:$4 sm:$0xff]   ;;  %v6124_v7 = vld [vmem:[#allocation2 + $0x208] ss:$16 sps:$4 sm:$0xff]   ;;  %vm2721_vm1 = vcmask 261120  }
  0x63   :  { %1693 = vmatprep.subr.bf16.mxu0 %v6061_v24  ;;  %1857 = vmatprep.subr.bf16.mxu1 %v6063_v25  ;;  %v6123_v3 = vld [vmem:[#allocation2 + $0x204] ss:$16 sps:$4 sm:$0xff]   ;;  %v115_v5 = vpack.c.bf16 %v107_v2, %v107_v2  ;;  %v6121_v6 = vld [vmem:[#allocation2 + $0x200] ss:$16 sps:$4 sm:$0xff]   ;;  %v6132_v9 = vld [vmem:[#allocation2 + $0x22c] ss:$16 sps:$4 sm:$0xff]  }
  0x64   :  { %v6129_v8 = vld [vmem:[#allocation2 + $0x224] ss:$16 sps:$4 sm:$0xff]   ;;  %v6127_v10 = vld [vmem:[#allocation2 + $0x220] ss:$16 sps:$4 sm:$0xff]   ;;  %v6130_v11 = vld [vmem:[#allocation2 + $0x228] ss:$16 sps:$4 sm:$0xff]  }
  0x65   :  { %v6135_v12 = vld [vmem:[#allocation2 + $0x244] ss:$16 sps:$4 sm:$0xff]   ;;  %v6138_v13 = vld [vmem:[#allocation2 + $0x24c] ss:$16 sps:$4 sm:$0xff]   ;;  %v6133_v14 = vld [vmem:[#allocation2 + $0x240] ss:$16 sps:$4 sm:$0xff]  }
  0x66   :  { %1694 = vmatpush1.bf16.msra.mxu0 %v6065_v26  ;;  %1858 = vmatpush1.bf16.msra.mxu1 %v6066_v27  ;;  %v6136_v15 = vld [vmem:[#allocation2 + $0x248] ss:$16 sps:$4 sm:$0xff]   ;;  %v6141_v16 = vld [vmem:[#allocation2 + $0x264] ss:$16 sps:$4 sm:$0xff]   ;;  %v6144_v17 = vld [vmem:[#allocation2 + $0x26c] ss:$16 sps:$4 sm:$0xff]  }
  0x67   :  { %1695 = vmatprep.subr.bf16.mxu0 %v6067_v28  ;;  %1859 = vmatprep.subr.bf16.mxu1 %v6069_v29  ;;  %v6139_v18 = vld [vmem:[#allocation2 + $0x260] ss:$16 sps:$4 sm:$0xff]   ;;  %v6142_v19 = vld [vmem:[#allocation2 + $0x268] ss:$16 sps:$4 sm:$0xff]   ;;  %v6147_v20 = vld [vmem:[#allocation2 + $0x284] ss:$16 sps:$4 sm:$0xff]  }
  0x68   :  { %v6150_v21 = vld [vmem:[#allocation2 + $0x28c] ss:$16 sps:$4 sm:$0xff]   ;;  %v6145_v22 = vld [vmem:[#allocation2 + $0x280] ss:$16 sps:$4 sm:$0xff]   ;;  %v6148_v23 = vld [vmem:[#allocation2 + $0x288] ss:$16 sps:$4 sm:$0xff]  }
  0x69   :  { %v6153_v24 = vld [vmem:[#allocation2 + $0x2a4] ss:$16 sps:$4 sm:$0xff]   ;;  %v6156_v25 = vld [vmem:[#allocation2 + $0x2ac] ss:$16 sps:$4 sm:$0xff]   ;;  %v6151_v26 = vld [vmem:[#allocation2 + $0x2a0] ss:$16 sps:$4 sm:$0xff]  }
  0x6a   :  { %1696 = vmatpush1.bf16.msra.mxu0 %v6071_v30  ;;  %1860 = vmatpush1.bf16.msra.mxu1 %v6072_v31  ;;  %v6154_v27 = vld [vmem:[#allocation2 + $0x2a8] ss:$16 sps:$4 sm:$0xff]   ;;  %v6159_v28 = vld [vmem:[#allocation2 + $0x2c4] ss:$16 sps:$4 sm:$0xff]   ;;  %v6162_v29 = vld [vmem:[#allocation2 + $0x2cc] ss:$16 sps:$4 sm:$0xff]  }
  0x6b   :  { %1697 = vmatprep.subr.bf16.mxu0 %v6073_v32  ;;  %1861 = vmatprep.subr.bf16.mxu1 %v6075_v33  ;;  %v110_v30 = vld [vmem:[%s7186_s0 + $0x18] sm:$0xff]  ;;  %v6157_v31 = vld [vmem:[#allocation2 + $0x2c0] ss:$16 sps:$4 sm:$0xff]   ;;  %v6183_v46 = vld [vmem:[#allocation2 + $0x344] ss:$16 sps:$4 sm:$0xff]  }
  0x6c   :  { %v118_v32 = vpack.c.bf16 %v110_v30, %v110_v30  ;;  %v6160_v33 = vld [vmem:[#allocation2 + $0x2c8] ss:$16 sps:$4 sm:$0xff]   ;;  %v6181_v48 = vld [vmem:[#allocation2 + $0x340] ss:$16 sps:$4 sm:$0xff]   ;;  %v6213_v2 = vld [vmem:[#allocation2 + $0x3e4] ss:$16 sps:$4 sm:$0xff]  }
  0x6d   :  { %v6249_v30 = vld [vmem:[#allocation2 + $0x4a4] ss:$16 sps:$4 sm:$0xff]  }
  0x6e   :  { %1698 = vmatpush1.bf16.msra.mxu0 %v6077_v34  ;;  %1862 = vmatpush1.bf16.msra.mxu1 %v6078_v35  ;;  %v6165_v34 = vld [vmem:[#allocation2 + $0x2e4] ss:$16 sps:$4 sm:$0xff]   ;;  %v6168_v35 = vld [vmem:[#allocation2 + $0x2ec] ss:$16 sps:$4 sm:$0xff]  }
  0x6f   :  { %1699 = vmatprep.subr.bf16.mxu0 %v6079_v36  ;;  %1863 = vmatprep.subr.bf16.mxu1 %v6081_v37  ;;  %v6163_v36 = vld [vmem:[#allocation2 + $0x2e0] ss:$16 sps:$4 sm:$0xff]   ;;  %v6166_v37 = vld [vmem:[#allocation2 + $0x2e8] ss:$16 sps:$4 sm:$0xff]  }
  0x72   :  { %1700 = vmatpush1.bf16.msra.mxu0 %v6083_v38  ;;  %1864 = vmatpush1.bf16.msra.mxu1 %v6084_v39  ;;  %v6171_v38 = vld [vmem:[#allocation2 + $0x304] ss:$16 sps:$4 sm:$0xff]   ;;  %v6174_v39 = vld [vmem:[#allocation2 + $0x30c] ss:$16 sps:$4 sm:$0xff]  }
  0x73   :  { %1701 = vmatprep.subr.bf16.mxu0 %v6085_v40  ;;  %1865 = vmatprep.subr.bf16.mxu1 %v6087_v41  ;;  %v6169_v40 = vld [vmem:[#allocation2 + $0x300] ss:$16 sps:$4 sm:$0xff]   ;;  %v6172_v41 = vld [vmem:[#allocation2 + $0x308] ss:$16 sps:$4 sm:$0xff]  }
  0x76   :  { %1702 = vmatpush1.bf16.msra.mxu0 %v6089_v42  ;;  %1866 = vmatpush1.bf16.msra.mxu1 %v6090_v43  ;;  %v6177_v42 = vld [vmem:[#allocation2 + $0x324] ss:$16 sps:$4 sm:$0xff]   ;;  %v6180_v43 = vld [vmem:[#allocation2 + $0x32c] ss:$16 sps:$4 sm:$0xff]  }
  0x77   :  { %1703 = vmatprep.subr.bf16.mxu0 %v6091_v44  ;;  %1867 = vmatprep.subr.bf16.mxu1 %v6093_v45  ;;  %v6175_v44 = vld [vmem:[#allocation2 + $0x320] ss:$16 sps:$4 sm:$0xff]   ;;  %v6178_v45 = vld [vmem:[#allocation2 + $0x328] ss:$16 sps:$4 sm:$0xff]  }
  0x7a   :  { %1704 = vmatpush1.bf16.msra.mxu0 %v6095_v47  ;;  %1868 = vmatpush1.bf16.msra.mxu1 %v6096_v49  ;;  %v6186_v47 = vld [vmem:[#allocation2 + $0x34c] ss:$16 sps:$4 sm:$0xff]   ;;  %v6184_v49 = vld [vmem:[#allocation2 + $0x348] ss:$16 sps:$4 sm:$0xff]  }
  0x7b   :  { %1705 = vmatprep.subr.bf16.mxu0 %v6097_v50  ;;  %1869 = vmatprep.subr.bf16.mxu1 %v6099_v51  ;;  %v6189_v50 = vld [vmem:[#allocation2 + $0x364] ss:$16 sps:$4 sm:$0xff]   ;;  %v6192_v51 = vld [vmem:[#allocation2 + $0x36c] ss:$16 sps:$4 sm:$0xff]  }
  0x7e   :  { %1706 = vmatpush1.bf16.msra.mxu0 %v6101_v52  ;;  %1870 = vmatpush1.bf16.msra.mxu1 %v6102_v53  ;;  %v6187_v52 = vld [vmem:[#allocation2 + $0x360] ss:$16 sps:$4 sm:$0xff]   ;;  %v6190_v53 = vld [vmem:[#allocation2 + $0x368] ss:$16 sps:$4 sm:$0xff]  }
  0x7f   :  { %1707 = vmatprep.subr.bf16.mxu0 %v6103_v54  ;;  %1871 = vmatprep.subr.bf16.mxu1 %v6105_v55  ;;  %v6195_v54 = vld [vmem:[#allocation2 + $0x384] ss:$16 sps:$4 sm:$0xff]   ;;  %v6198_v55 = vld [vmem:[#allocation2 + $0x38c] ss:$16 sps:$4 sm:$0xff]  }
  0x82   :  { %1708 = vmatpush1.bf16.msra.mxu0 %v6107_v56  ;;  %1872 = vmatpush1.bf16.msra.mxu1 %v6108_v57  ;;  %v6193_v56 = vld [vmem:[#allocation2 + $0x380] ss:$16 sps:$4 sm:$0xff]   ;;  %v6196_v57 = vld [vmem:[#allocation2 + $0x388] ss:$16 sps:$4 sm:$0xff]  }
  0x83   :  { %1709 = vmatprep.subr.bf16.mxu0 %v6109_v58  ;;  %1873 = vmatprep.subr.bf16.mxu1 %v6111_v59  ;;  %v6201_v58 = vld [vmem:[#allocation2 + $0x3a4] ss:$16 sps:$4 sm:$0xff]   ;;  %v6204_v59 = vld [vmem:[#allocation2 + $0x3ac] ss:$16 sps:$4 sm:$0xff]  }
  0x86   :  { %1710 = vmatpush1.bf16.msra.mxu0 %v6113_v60  ;;  %1874 = vmatpush1.bf16.msra.mxu1 %v6114_v61  ;;  %v6199_v60 = vld [vmem:[#allocation2 + $0x3a0] ss:$16 sps:$4 sm:$0xff]   ;;  %v6202_v61 = vld [vmem:[#allocation2 + $0x3a8] ss:$16 sps:$4 sm:$0xff]  }
  0x87   :  { %1711 = vmatprep.subr.bf16.mxu0 %v6115_v62  ;;  %1875 = vmatprep.subr.bf16.mxu1 %v6117_v63  ;;  %v6207_v62 = vld [vmem:[#allocation2 + $0x3c4] ss:$16 sps:$4 sm:$0xff]   ;;  %v6210_v63 = vld [vmem:[#allocation2 + $0x3cc] ss:$16 sps:$4 sm:$0xff]  }
  0x8a   :  { %1712 = vmatpush1.bf16.msra.mxu0 %v6119_v0  ;;  %1876 = vmatpush1.bf16.msra.mxu1 %v6120_v1  ;;  %v6205_v0 = vld [vmem:[#allocation2 + $0x3c0] ss:$16 sps:$4 sm:$0xff]   ;;  %v6208_v1 = vld [vmem:[#allocation2 + $0x3c8] ss:$16 sps:$4 sm:$0xff]  }
  0x8b   :  { %1722 = vmatprep.subr.bf16.mxu0 %v6123_v3  ;;  %1886 = vmatprep.subr.bf16.mxu1 %v6126_v4  ;;  %v6216_v3 = vld [vmem:[#allocation2 + $0x3ec] ss:$16 sps:$4 sm:$0xff]   ;;  %v6211_v4 = vld [vmem:[#allocation2 + $0x3e0] ss:$16 sps:$4 sm:$0xff]  }
  0x8d   :  { %1714 = vmatmul.mubr.bf16.vlgmr.msra.gmra.mrb[0].mxu0 %v115_v5  ;;  %1878 = vmatmul.mubr.bf16.vlgmr.msra.gmra.mrb[0].mxu1 %v115_v5  ;;  %v6214_v5 = vld [vmem:[#allocation2 + $0x3e8] ss:$16 sps:$4 sm:$0xff]  }
  0x8e   :  { %1723 = vmatpush1.bf16.msra.mxu0 %v6121_v6  ;;  %1887 = vmatpush1.bf16.msra.mxu1 %v6124_v7  ;;  %v6219_v6 = vld [vmem:[#allocation2 + $0x404] ss:$16 sps:$4 sm:$0xff]  }
  0x8f   :  { %1724 = vmatprep.subr.bf16.mxu0 %v6129_v8  ;;  %1888 = vmatprep.subr.bf16.mxu1 %v6132_v9  ;;  %v109_v7 = vld [vmem:[%s7186_s0 + $0x10] sm:$0xff]  ;;  %v6222_v8 = vld [vmem:[#allocation2 + $0x40c] ss:$16 sps:$4 sm:$0xff]  }
  0x90   :  { %1754 = vmatprep.mubr.bf16.mxu0 %v118_v32  ;;  %1918 = vmatprep.mubr.bf16.mxu1 %v118_v32  ;;  %v6217_v9 = vld [vmem:[#allocation2 + $0x400] ss:$16 sps:$4 sm:$0xff]  }
  0x91   :  { %v6247_v32 = vld [vmem:[#allocation2 + $0x4a0] ss:$16 sps:$4 sm:$0xff]  }
  0x92   :  { %1725 = vmatpush1.bf16.msra.mxu0 %v6127_v10  ;;  %1889 = vmatpush1.bf16.msra.mxu1 %v6130_v11  ;;  %v6220_v10 = vld [vmem:[#allocation2 + $0x408] ss:$16 sps:$4 sm:$0xff]   ;;  %v117_v11 = vpack.c.bf16 %v109_v7, %v109_v7  ;;  %v6312_v7 = vld [vmem:[#allocation2 + $0x5ec] ss:$16 sps:$4 sm:$0xff]  }
  0x93   :  { %1726 = vmatprep.subr.bf16.mxu0 %v6135_v12  ;;  %1890 = vmatprep.subr.bf16.mxu1 %v6138_v13  ;;  %v6225_v12 = vld [vmem:[#allocation2 + $0x424] ss:$16 sps:$4 sm:$0xff]   ;;  %v6228_v13 = vld [vmem:[#allocation2 + $0x42c] ss:$16 sps:$4 sm:$0xff]  }
  0x96   :  { %1727 = vmatpush1.bf16.msra.mxu0 %v6133_v14  ;;  %1891 = vmatpush1.bf16.msra.mxu1 %v6136_v15  ;;  %v112_v14 = vld [vmem:[%s7186_s0 + $0x28] sm:$0xff] }
  0x97   :  { %1728 = vmatprep.subr.bf16.mxu0 %v6141_v16  ;;  %1892 = vmatprep.subr.bf16.mxu1 %v6144_v17  ;;  %v120_v15 = vpack.c.bf16 %v112_v14, %v112_v14  ;;  %v6223_v16 = vld [vmem:[#allocation2 + $0x420] ss:$16 sps:$4 sm:$0xff]   ;;  %v6226_v17 = vld [vmem:[#allocation2 + $0x428] ss:$16 sps:$4 sm:$0xff]  }
  0x98   :  { %v6316_v14 = vld [vmem:[#allocation2 + $0x608] ss:$16 sps:$4 sm:$0xff]  }
  0x9a   :  { %1729 = vmatpush1.bf16.msra.mxu0 %v6139_v18  ;;  %1893 = vmatpush1.bf16.msra.mxu1 %v6142_v19  ;;  %v6231_v18 = vld [vmem:[#allocation2 + $0x444] ss:$16 sps:$4 sm:$0xff]   ;;  %v6234_v19 = vld [vmem:[#allocation2 + $0x44c] ss:$16 sps:$4 sm:$0xff]  }
  0x9b   :  { %1730 = vmatprep.subr.bf16.mxu0 %v6147_v20  ;;  %1894 = vmatprep.subr.bf16.mxu1 %v6150_v21  ;;  %v6229_v20 = vld [vmem:[#allocation2 + $0x440] ss:$16 sps:$4 sm:$0xff]   ;;  %v6232_v21 = vld [vmem:[#allocation2 + $0x448] ss:$16 sps:$4 sm:$0xff]  }
  0x9e   :  { %1731 = vmatpush1.bf16.msra.mxu0 %v6145_v22  ;;  %1895 = vmatpush1.bf16.msra.mxu1 %v6148_v23  ;;  %v6237_v22 = vld [vmem:[#allocation2 + $0x464] ss:$16 sps:$4 sm:$0xff]   ;;  %v6240_v23 = vld [vmem:[#allocation2 + $0x46c] ss:$16 sps:$4 sm:$0xff]  }
  0x9f   :  { %1732 = vmatprep.subr.bf16.mxu0 %v6153_v24  ;;  %1896 = vmatprep.subr.bf16.mxu1 %v6156_v25  ;;  %v6235_v24 = vld [vmem:[#allocation2 + $0x460] ss:$16 sps:$4 sm:$0xff]   ;;  %v6238_v25 = vld [vmem:[#allocation2 + $0x468] ss:$16 sps:$4 sm:$0xff]  }
  0xa2   :  { %1733 = vmatpush1.bf16.msra.mxu0 %v6151_v26  ;;  %1897 = vmatpush1.bf16.msra.mxu1 %v6154_v27  ;;  %v6243_v26 = vld [vmem:[#allocation2 + $0x484] ss:$16 sps:$4 sm:$0xff]   ;;  %v6246_v27 = vld [vmem:[#allocation2 + $0x48c] ss:$16 sps:$4 sm:$0xff]  }
  0xa3   :  { %1734 = vmatprep.subr.bf16.mxu0 %v6159_v28  ;;  %1898 = vmatprep.subr.bf16.mxu1 %v6162_v29  ;;  %v6241_v28 = vld [vmem:[#allocation2 + $0x480] ss:$16 sps:$4 sm:$0xff]   ;;  %v6244_v29 = vld [vmem:[#allocation2 + $0x488] ss:$16 sps:$4 sm:$0xff]  }
  0xa6   :  { %1735 = vmatpush1.bf16.msra.mxu0 %v6157_v31  ;;  %1899 = vmatpush1.bf16.msra.mxu1 %v6160_v33  ;;  %v6252_v31 = vld [vmem:[#allocation2 + $0x4ac] ss:$16 sps:$4 sm:$0xff]   ;;  %v6250_v33 = vld [vmem:[#allocation2 + $0x4a8] ss:$16 sps:$4 sm:$0xff]  }
  0xa7   :  { %1736 = vmatprep.subr.bf16.mxu0 %v6165_v34  ;;  %1900 = vmatprep.subr.bf16.mxu1 %v6168_v35  ;;  %v6255_v34 = vld [vmem:[#allocation2 + $0x4c4] ss:$16 sps:$4 sm:$0xff]   ;;  %v6258_v35 = vld [vmem:[#allocation2 + $0x4cc] ss:$16 sps:$4 sm:$0xff]  }
  0xaa   :  { %1737 = vmatpush1.bf16.msra.mxu0 %v6163_v36  ;;  %1901 = vmatpush1.bf16.msra.mxu1 %v6166_v37  ;;  %v6253_v36 = vld [vmem:[#allocation2 + $0x4c0] ss:$16 sps:$4 sm:$0xff]   ;;  %v6256_v37 = vld [vmem:[#allocation2 + $0x4c8] ss:$16 sps:$4 sm:$0xff]  }
  0xab   :  { %1738 = vmatprep.subr.bf16.mxu0 %v6171_v38  ;;  %1902 = vmatprep.subr.bf16.mxu1 %v6174_v39  ;;  %v6261_v38 = vld [vmem:[#allocation2 + $0x4e4] ss:$16 sps:$4 sm:$0xff]   ;;  %v6264_v39 = vld [vmem:[#allocation2 + $0x4ec] ss:$16 sps:$4 sm:$0xff]  }
  0xae   :  { %1739 = vmatpush1.bf16.msra.mxu0 %v6169_v40  ;;  %1903 = vmatpush1.bf16.msra.mxu1 %v6172_v41  ;;  %v6259_v40 = vld [vmem:[#allocation2 + $0x4e0] ss:$16 sps:$4 sm:$0xff]   ;;  %v6262_v41 = vld [vmem:[#allocation2 + $0x4e8] ss:$16 sps:$4 sm:$0xff]  }
  0xaf   :  { %1740 = vmatprep.subr.bf16.mxu0 %v6177_v42  ;;  %1904 = vmatprep.subr.bf16.mxu1 %v6180_v43  ;;  %v6267_v42 = vld [vmem:[#allocation2 + $0x504] ss:$16 sps:$4 sm:$0xff]   ;;  %v6270_v43 = vld [vmem:[#allocation2 + $0x50c] ss:$16 sps:$4 sm:$0xff]  }
  0xb2   :  { %1741 = vmatpush1.bf16.msra.mxu0 %v6175_v44  ;;  %1905 = vmatpush1.bf16.msra.mxu1 %v6178_v45  ;;  %v6265_v44 = vld [vmem:[#allocation2 + $0x500] ss:$16 sps:$4 sm:$0xff]   ;;  %v6268_v45 = vld [vmem:[#allocation2 + $0x508] ss:$16 sps:$4 sm:$0xff]  }
  0xb3   :  { %1742 = vmatprep.subr.bf16.mxu0 %v6183_v46  ;;  %1906 = vmatprep.subr.bf16.mxu1 %v6186_v47  ;;  %v6273_v46 = vld [vmem:[#allocation2 + $0x524] ss:$16 sps:$4 sm:$0xff]   ;;  %v6276_v47 = vld [vmem:[#allocation2 + $0x52c] ss:$16 sps:$4 sm:$0xff]  }
  0xb6   :  { %1743 = vmatpush1.bf16.msra.mxu0 %v6181_v48  ;;  %1907 = vmatpush1.bf16.msra.mxu1 %v6184_v49  ;;  %v6271_v48 = vld [vmem:[#allocation2 + $0x520] ss:$16 sps:$4 sm:$0xff]   ;;  %v6274_v49 = vld [vmem:[#allocation2 + $0x528] ss:$16 sps:$4 sm:$0xff]  }
  0xb7   :  { %1744 = vmatprep.subr.bf16.mxu0 %v6189_v50  ;;  %1908 = vmatprep.subr.bf16.mxu1 %v6192_v51  ;;  %v6279_v50 = vld [vmem:[#allocation2 + $0x544] ss:$16 sps:$4 sm:$0xff]   ;;  %v6282_v51 = vld [vmem:[#allocation2 + $0x54c] ss:$16 sps:$4 sm:$0xff]  }
  0xba   :  { %1745 = vmatpush1.bf16.msra.mxu0 %v6187_v52  ;;  %1909 = vmatpush1.bf16.msra.mxu1 %v6190_v53  ;;  %v6277_v52 = vld [vmem:[#allocation2 + $0x540] ss:$16 sps:$4 sm:$0xff]   ;;  %v6280_v53 = vld [vmem:[#allocation2 + $0x548] ss:$16 sps:$4 sm:$0xff]  }
  0xbb   :  { %1746 = vmatprep.subr.bf16.mxu0 %v6195_v54  ;;  %1910 = vmatprep.subr.bf16.mxu1 %v6198_v55  ;;  %v6285_v54 = vld [vmem:[#allocation2 + $0x564] ss:$16 sps:$4 sm:$0xff]   ;;  %v6288_v55 = vld [vmem:[#allocation2 + $0x56c] ss:$16 sps:$4 sm:$0xff]  }
  0xbe   :  { %1747 = vmatpush1.bf16.msra.mxu0 %v6193_v56  ;;  %1911 = vmatpush1.bf16.msra.mxu1 %v6196_v57  ;;  %v6283_v56 = vld [vmem:[#allocation2 + $0x560] ss:$16 sps:$4 sm:$0xff]   ;;  %v6286_v57 = vld [vmem:[#allocation2 + $0x568] ss:$16 sps:$4 sm:$0xff]  }
  0xbf   :  { %1748 = vmatprep.subr.bf16.mxu0 %v6201_v58  ;;  %1912 = vmatprep.subr.bf16.mxu1 %v6204_v59  ;;  %v6291_v58 = vld [vmem:[#allocation2 + $0x584] ss:$16 sps:$4 sm:$0xff]   ;;  %v6294_v59 = vld [vmem:[#allocation2 + $0x58c] ss:$16 sps:$4 sm:$0xff]  }
  0xc2   :  { %1749 = vmatpush1.bf16.msra.mxu0 %v6199_v60  ;;  %1913 = vmatpush1.bf16.msra.mxu1 %v6202_v61  ;;  %v6289_v60 = vld [vmem:[#allocation2 + $0x580] ss:$16 sps:$4 sm:$0xff]   ;;  %v6292_v61 = vld [vmem:[#allocation2 + $0x588] ss:$16 sps:$4 sm:$0xff]  }
  0xc3   :  { %1750 = vmatprep.subr.bf16.mxu0 %v6207_v62  ;;  %1914 = vmatprep.subr.bf16.mxu1 %v6210_v63  ;;  %v6297_v62 = vld [vmem:[#allocation2 + $0x5a4] ss:$16 sps:$4 sm:$0xff]   ;;  %v6300_v63 = vld [vmem:[#allocation2 + $0x5ac] ss:$16 sps:$4 sm:$0xff]  }
  0xc6   :  { %1751 = vmatpush1.bf16.msra.mxu0 %v6205_v0  ;;  %1915 = vmatpush1.bf16.msra.mxu1 %v6208_v1  ;;  %v6295_v0 = vld [vmem:[#allocation2 + $0x5a0] ss:$16 sps:$4 sm:$0xff]   ;;  %v6298_v1 = vld [vmem:[#allocation2 + $0x5a8] ss:$16 sps:$4 sm:$0xff]  }
  0xc7   :  { %1752 = vmatprep.subr.bf16.mxu0 %v6213_v2  ;;  %1916 = vmatprep.subr.bf16.mxu1 %v6216_v3  ;;  %v6303_v2 = vld [vmem:[#allocation2 + $0x5c4] ss:$16 sps:$4 sm:$0xff]   ;;  %v6306_v3 = vld [vmem:[#allocation2 + $0x5cc] ss:$16 sps:$4 sm:$0xff]  }
  0xca   :  { %1753 = vmatpush1.bf16.msra.mxu0 %v6211_v4  ;;  %1917 = vmatpush1.bf16.msra.mxu1 %v6214_v5  ;;  %v6301_v4 = vld [vmem:[#allocation2 + $0x5c0] ss:$16 sps:$4 sm:$0xff]   ;;  %v6304_v5 = vld [vmem:[#allocation2 + $0x5c8] ss:$16 sps:$4 sm:$0xff]  }
  0xcb   :  { %1763 = vmatprep.subr.bf16.mxu0 %v6219_v6  ;;  %1927 = vmatprep.subr.bf16.mxu1 %v6222_v8  ;;  %v6309_v6 = vld [vmem:[#allocation2 + $0x5e4] ss:$16 sps:$4 sm:$0xff]   ;;  %v6307_v8 = vld [vmem:[#allocation2 + $0x5e0] ss:$16 sps:$4 sm:$0xff]  }
  0xcd   :  { %1755 = vmatmul.mubr.bf16.vlgmr.msra.gmra.mrb[0].mxu0 %v117_v11  ;;  %1919 = vmatmul.mubr.bf16.vlgmr.msra.gmra.mrb[0].mxu1 %v117_v11  ;;  %v111_v11 = vld [vmem:[%s7186_s0 + $0x20] sm:$0xff] }
  0xce   :  { %1764 = vmatpush1.bf16.msra.mxu0 %v6217_v9  ;;  %1928 = vmatpush1.bf16.msra.mxu1 %v6220_v10  ;;  %v6310_v9 = vld [vmem:[#allocation2 + $0x5e8] ss:$16 sps:$4 sm:$0xff]   ;;  %v6315_v10 = vld [vmem:[#allocation2 + $0x604] ss:$16 sps:$4 sm:$0xff]  }
  0xcf   :  { %1765 = vmatprep.subr.bf16.mxu0 %v6225_v12  ;;  %1929 = vmatprep.subr.bf16.mxu1 %v6228_v13  ;;  %v6318_v12 = vld [vmem:[#allocation2 + $0x60c] ss:$16 sps:$4 sm:$0xff]   ;;  %v6313_v13 = vld [vmem:[#allocation2 + $0x600] ss:$16 sps:$4 sm:$0xff]  }
  0xd0   :  { %1795 = vmatprep.mubr.bf16.mxu0 %v120_v15  ;;  %1959 = vmatprep.mubr.bf16.mxu1 %v120_v15  ;;  %v119_v15 = vpack.c.bf16 %v111_v11, %v111_v11  ;;  %v6408_v11 = vld [vmem:[#allocation2 + $0x7ec] ss:$16 sps:$4 sm:$0xff]  }
  0xd2   :  { %1766 = vmatpush1.bf16.msra.mxu0 %v6223_v16  ;;  %1930 = vmatpush1.bf16.msra.mxu1 %v6226_v17  ;;  %v6321_v16 = vld [vmem:[#allocation2 + $0x624] ss:$16 sps:$4 sm:$0xff]   ;;  %v114_v17 = vld [vmem:[%s7186_s0 + $0x38] sm:$0xff] }
  0xd3   :  { %1767 = vmatprep.subr.bf16.mxu0 %v6231_v18  ;;  %1931 = vmatprep.subr.bf16.mxu1 %v6234_v19  ;;  %v6324_v18 = vld [vmem:[#allocation2 + $0x62c] ss:$16 sps:$4 sm:$0xff]   ;;  %v6319_v19 = vld [vmem:[#allocation2 + $0x620] ss:$16 sps:$4 sm:$0xff]  }
  0xd6   :  { %1768 = vmatpush1.bf16.msra.mxu0 %v6229_v20  ;;  %1932 = vmatpush1.bf16.msra.mxu1 %v6232_v21  ;;  %v6322_v20 = vld [vmem:[#allocation2 + $0x628] ss:$16 sps:$4 sm:$0xff]   ;;  %v122_v21 = vpack.c.bf16 %v114_v17, %v114_v17 }
  0xd7   :  { %1769 = vmatprep.subr.bf16.mxu0 %v6237_v22  ;;  %1933 = vmatprep.subr.bf16.mxu1 %v6240_v23  ;;  %v6327_v22 = vld [vmem:[#allocation2 + $0x644] ss:$16 sps:$4 sm:$0xff]   ;;  %v6330_v23 = vld [vmem:[#allocation2 + $0x64c] ss:$16 sps:$4 sm:$0xff]   ;;  %v6409_v17 = vld [vmem:[#allocation5] ss:$8 sps:$4 sm:$0xff]  }
  0xda   :  { %1770 = vmatpush1.bf16.msra.mxu0 %v6235_v24  ;;  %1934 = vmatpush1.bf16.msra.mxu1 %v6238_v25  ;;  %v6325_v24 = vld [vmem:[#allocation2 + $0x640] ss:$16 sps:$4 sm:$0xff]   ;;  %v6328_v25 = vld [vmem:[#allocation2 + $0x648] ss:$16 sps:$4 sm:$0xff]  }
  0xdb   :  { %1771 = vmatprep.subr.bf16.mxu0 %v6243_v26  ;;  %1935 = vmatprep.subr.bf16.mxu1 %v6246_v27  ;;  %v6333_v26 = vld [vmem:[#allocation2 + $0x664] ss:$16 sps:$4 sm:$0xff]   ;;  %v6336_v27 = vld [vmem:[#allocation2 + $0x66c] ss:$16 sps:$4 sm:$0xff]  }
  0xde   :  { %1772 = vmatpush1.bf16.msra.mxu0 %v6241_v28  ;;  %1936 = vmatpush1.bf16.msra.mxu1 %v6244_v29  ;;  %v6331_v28 = vld [vmem:[#allocation2 + $0x660] ss:$16 sps:$4 sm:$0xff]   ;;  %v6334_v29 = vld [vmem:[#allocation2 + $0x668] ss:$16 sps:$4 sm:$0xff]  }
  0xdf   :  { %1773 = vmatprep.subr.bf16.mxu0 %v6249_v30  ;;  %1937 = vmatprep.subr.bf16.mxu1 %v6252_v31  ;;  %v6339_v30 = vld [vmem:[#allocation2 + $0x684] ss:$16 sps:$4 sm:$0xff]   ;;  %v6342_v31 = vld [vmem:[#allocation2 + $0x68c] ss:$16 sps:$4 sm:$0xff]  }
  0xe2   :  { %1774 = vmatpush1.bf16.msra.mxu0 %v6247_v32  ;;  %1938 = vmatpush1.bf16.msra.mxu1 %v6250_v33  ;;  %v6337_v32 = vld [vmem:[#allocation2 + $0x680] ss:$16 sps:$4 sm:$0xff]   ;;  %v6340_v33 = vld [vmem:[#allocation2 + $0x688] ss:$16 sps:$4 sm:$0xff]  }
  0xe3   :  { %1775 = vmatprep.subr.bf16.mxu0 %v6255_v34  ;;  %1939 = vmatprep.subr.bf16.mxu1 %v6258_v35  ;;  %v6345_v34 = vld [vmem:[#allocation2 + $0x6a4] ss:$16 sps:$4 sm:$0xff]   ;;  %v6348_v35 = vld [vmem:[#allocation2 + $0x6ac] ss:$16 sps:$4 sm:$0xff]  }
  0xe6   :  { %1776 = vmatpush1.bf16.msra.mxu0 %v6253_v36  ;;  %1940 = vmatpush1.bf16.msra.mxu1 %v6256_v37  ;;  %v6343_v36 = vld [vmem:[#allocation2 + $0x6a0] ss:$16 sps:$4 sm:$0xff]   ;;  %v6346_v37 = vld [vmem:[#allocation2 + $0x6a8] ss:$16 sps:$4 sm:$0xff]  }
  0xe7   :  { %1777 = vmatprep.subr.bf16.mxu0 %v6261_v38  ;;  %1941 = vmatprep.subr.bf16.mxu1 %v6264_v39  ;;  %v6351_v38 = vld [vmem:[#allocation2 + $0x6c4] ss:$16 sps:$4 sm:$0xff]   ;;  %v6354_v39 = vld [vmem:[#allocation2 + $0x6cc] ss:$16 sps:$4 sm:$0xff]  }
  0xea   :  { %1778 = vmatpush1.bf16.msra.mxu0 %v6259_v40  ;;  %1942 = vmatpush1.bf16.msra.mxu1 %v6262_v41  ;;  %v6349_v40 = vld [vmem:[#allocation2 + $0x6c0] ss:$16 sps:$4 sm:$0xff]   ;;  %v6352_v41 = vld [vmem:[#allocation2 + $0x6c8] ss:$16 sps:$4 sm:$0xff]  }
  0xeb   :  { %1779 = vmatprep.subr.bf16.mxu0 %v6267_v42  ;;  %1943 = vmatprep.subr.bf16.mxu1 %v6270_v43  ;;  %v6357_v42 = vld [vmem:[#allocation2 + $0x6e4] ss:$16 sps:$4 sm:$0xff]   ;;  %v6360_v43 = vld [vmem:[#allocation2 + $0x6ec] ss:$16 sps:$4 sm:$0xff]  }
  0xee   :  { %1780 = vmatpush1.bf16.msra.mxu0 %v6265_v44  ;;  %1944 = vmatpush1.bf16.msra.mxu1 %v6268_v45  ;;  %v6355_v44 = vld [vmem:[#allocation2 + $0x6e0] ss:$16 sps:$4 sm:$0xff]   ;;  %v6358_v45 = vld [vmem:[#allocation2 + $0x6e8] ss:$16 sps:$4 sm:$0xff]  }
  0xef   :  { %1781 = vmatprep.subr.bf16.mxu0 %v6273_v46  ;;  %1945 = vmatprep.subr.bf16.mxu1 %v6276_v47  ;;  %v6363_v46 = vld [vmem:[#allocation2 + $0x704] ss:$16 sps:$4 sm:$0xff]   ;;  %v6366_v47 = vld [vmem:[#allocation2 + $0x70c] ss:$16 sps:$4 sm:$0xff]  }
  0xf2   :  { %1782 = vmatpush1.bf16.msra.mxu0 %v6271_v48  ;;  %1946 = vmatpush1.bf16.msra.mxu1 %v6274_v49  ;;  %v6361_v48 = vld [vmem:[#allocation2 + $0x700] ss:$16 sps:$4 sm:$0xff]   ;;  %v6364_v49 = vld [vmem:[#allocation2 + $0x708] ss:$16 sps:$4 sm:$0xff]  }
  0xf3   :  { %1783 = vmatprep.subr.bf16.mxu0 %v6279_v50  ;;  %1947 = vmatprep.subr.bf16.mxu1 %v6282_v51  ;;  %v6369_v50 = vld [vmem:[#allocation2 + $0x724] ss:$16 sps:$4 sm:$0xff]   ;;  %v6372_v51 = vld [vmem:[#allocation2 + $0x72c] ss:$16 sps:$4 sm:$0xff]  }
  0xf6   :  { %1784 = vmatpush1.bf16.msra.mxu0 %v6277_v52  ;;  %1948 = vmatpush1.bf16.msra.mxu1 %v6280_v53  ;;  %v6367_v52 = vld [vmem:[#allocation2 + $0x720] ss:$16 sps:$4 sm:$0xff]   ;;  %v6370_v53 = vld [vmem:[#allocation2 + $0x728] ss:$16 sps:$4 sm:$0xff]  }
  0xf7   :  { %1785 = vmatprep.subr.bf16.mxu0 %v6285_v54  ;;  %1949 = vmatprep.subr.bf16.mxu1 %v6288_v55  ;;  %v6375_v54 = vld [vmem:[#allocation2 + $0x744] ss:$16 sps:$4 sm:$0xff]   ;;  %v6378_v55 = vld [vmem:[#allocation2 + $0x74c] ss:$16 sps:$4 sm:$0xff]  }
  0xfa   :  { %1786 = vmatpush1.bf16.msra.mxu0 %v6283_v56  ;;  %1950 = vmatpush1.bf16.msra.mxu1 %v6286_v57  ;;  %v6373_v56 = vld [vmem:[#allocation2 + $0x740] ss:$16 sps:$4 sm:$0xff]   ;;  %v6376_v57 = vld [vmem:[#allocation2 + $0x748] ss:$16 sps:$4 sm:$0xff]  }
  0xfb   :  { %1787 = vmatprep.subr.bf16.mxu0 %v6291_v58  ;;  %1951 = vmatprep.subr.bf16.mxu1 %v6294_v59  ;;  %v6381_v58 = vld [vmem:[#allocation2 + $0x764] ss:$16 sps:$4 sm:$0xff]   ;;  %v6384_v59 = vld [vmem:[#allocation2 + $0x76c] ss:$16 sps:$4 sm:$0xff]  }
  0xfe   :  { %1788 = vmatpush1.bf16.msra.mxu0 %v6289_v60  ;;  %1952 = vmatpush1.bf16.msra.mxu1 %v6292_v61  ;;  %v6379_v60 = vld [vmem:[#allocation2 + $0x760] ss:$16 sps:$4 sm:$0xff]   ;;  %v6382_v61 = vld [vmem:[#allocation2 + $0x768] ss:$16 sps:$4 sm:$0xff]  }
  0xff   :  { %1789 = vmatprep.subr.bf16.mxu0 %v6297_v62  ;;  %1953 = vmatprep.subr.bf16.mxu1 %v6300_v63  ;;  %v6387_v62 = vld [vmem:[#allocation2 + $0x784] ss:$16 sps:$4 sm:$0xff]   ;;  %v6390_v63 = vld [vmem:[#allocation2 + $0x78c] ss:$16 sps:$4 sm:$0xff]  }
 0x102   :  { %1790 = vmatpush1.bf16.msra.mxu0 %v6295_v0  ;;  %1954 = vmatpush1.bf16.msra.mxu1 %v6298_v1  ;;  %v6385_v0 = vld [vmem:[#allocation2 + $0x780] ss:$16 sps:$4 sm:$0xff]   ;;  %v6388_v1 = vld [vmem:[#allocation2 + $0x788] ss:$16 sps:$4 sm:$0xff]  }
 0x103   :  { %1791 = vmatprep.subr.bf16.mxu0 %v6303_v2  ;;  %1955 = vmatprep.subr.bf16.mxu1 %v6306_v3  ;;  %v6393_v2 = vld [vmem:[#allocation2 + $0x7a4] ss:$16 sps:$4 sm:$0xff]   ;;  %v6396_v3 = vld [vmem:[#allocation2 + $0x7ac] ss:$16 sps:$4 sm:$0xff]  }
 0x106   :  { %1792 = vmatpush1.bf16.msra.mxu0 %v6301_v4  ;;  %1956 = vmatpush1.bf16.msra.mxu1 %v6304_v5  ;;  %v6391_v4 = vld [vmem:[#allocation2 + $0x7a0] ss:$16 sps:$4 sm:$0xff]   ;;  %v6394_v5 = vld [vmem:[#allocation2 + $0x7a8] ss:$16 sps:$4 sm:$0xff]  }
 0x107   :  { %1793 = vmatprep.subr.bf16.mxu0 %v6309_v6  ;;  %1957 = vmatprep.subr.bf16.mxu1 %v6312_v7  ;;  %v6399_v6 = vld [vmem:[#allocation2 + $0x7c4] ss:$16 sps:$4 sm:$0xff]   ;;  %v6402_v7 = vld [vmem:[#allocation2 + $0x7cc] ss:$16 sps:$4 sm:$0xff]  }
 0x10a   :  { %1794 = vmatpush1.bf16.msra.mxu0 %v6307_v8  ;;  %1958 = vmatpush1.bf16.msra.mxu1 %v6310_v9  ;;  %v6397_v8 = vld [vmem:[#allocation2 + $0x7c0] ss:$16 sps:$4 sm:$0xff]   ;;  %v6400_v9 = vld [vmem:[#allocation2 + $0x7c8] ss:$16 sps:$4 sm:$0xff]  }
 0x10b   :  { %1804 = vmatprep.subr.bf16.mxu0 %v6315_v10  ;;  %1968 = vmatprep.subr.bf16.mxu1 %v6318_v12  ;;  %v6405_v10 = vld [vmem:[#allocation2 + $0x7e4] ss:$16 sps:$4 sm:$0xff]   ;;  %v6403_v12 = vld [vmem:[#allocation2 + $0x7e0] ss:$16 sps:$4 sm:$0xff]  }
 0x10d   :  { %1796 = vmatmul.mubr.bf16.vlgmr.msra.gmra.mrb[0].mxu0 %v119_v15  ;;  %1960 = vmatmul.mubr.bf16.vlgmr.msra.gmra.mrb[0].mxu1 %v119_v15  ;;  %v6411_v15 = vld [vmem:[#allocation5 + $0x4] ss:$8 sps:$4 sm:$0xff]  }
 0x10e   :  { %1805 = vmatpush1.bf16.msra.mxu0 %v6313_v13  ;;  %1969 = vmatpush1.bf16.msra.mxu1 %v6316_v14  ;;  %v6406_v13 = vld [vmem:[#allocation2 + $0x7e8] ss:$16 sps:$4 sm:$0xff]   ;;  %v113_v14 = vld [vmem:[%s7186_s0 + $0x30] sm:$0xff] }
 0x10f   :  { %1806 = vmatprep.subr.bf16.mxu0 %v6321_v16  ;;  %1970 = vmatprep.subr.bf16.mxu1 %v6324_v18  ;;  %v121_v16 = vpack.c.bf16 %v113_v14, %v113_v14  ;;  %v6414_v18 = vld [vmem:[#allocation5 + $0x14] ss:$8 sps:$4 sm:$0xff]   ;;  %v6465_v14 = vld [vmem:[#allocation5 + $0x124] ss:$8 sps:$4 sm:$0xff]  }
 0x110   :  { %1836 = vmatprep.mubr.bf16.mxu0 %v122_v21  ;;  %2000 = vmatprep.mubr.bf16.mxu1 %v122_v21  ;;  %v6415_v21 = vld [vmem:[#allocation5 + $0x20] ss:$8 sps:$4 sm:$0xff]  }
 0x112   :  { %1807 = vmatpush1.bf16.msra.mxu0 %v6319_v19  ;;  %1971 = vmatpush1.bf16.msra.mxu1 %v6322_v20  ;;  %v6412_v19 = vld [vmem:[#allocation5 + $0x10] ss:$8 sps:$4 sm:$0xff]   ;;  %v6417_v20 = vld [vmem:[#allocation5 + $0x24] ss:$8 sps:$4 sm:$0xff]  }
 0x113   :  { %1808 = vmatprep.subr.bf16.mxu0 %v6327_v22  ;;  %1972 = vmatprep.subr.bf16.mxu1 %v6330_v23  ;;  %v6420_v22 = vld [vmem:[#allocation5 + $0x34] ss:$8 sps:$4 sm:$0xff]   ;;  %v6418_v23 = vld [vmem:[#allocation5 + $0x30] ss:$8 sps:$4 sm:$0xff]  }
 0x116   :  { %1809 = vmatpush1.bf16.msra.mxu0 %v6325_v24  ;;  %1973 = vmatpush1.bf16.msra.mxu1 %v6328_v25  ;;  %v6423_v24 = vld [vmem:[#allocation5 + $0x44] ss:$8 sps:$4 sm:$0xff]   ;;  %v6421_v25 = vld [vmem:[#allocation5 + $0x40] ss:$8 sps:$4 sm:$0xff]  }
 0x117   :  { %1810 = vmatprep.subr.bf16.mxu0 %v6333_v26  ;;  %1974 = vmatprep.subr.bf16.mxu1 %v6336_v27  ;;  %v6426_v26 = vld [vmem:[#allocation5 + $0x54] ss:$8 sps:$4 sm:$0xff]   ;;  %v6424_v27 = vld [vmem:[#allocation5 + $0x50] ss:$8 sps:$4 sm:$0xff]  }
 0x11a   :  { %1811 = vmatpush1.bf16.msra.mxu0 %v6331_v28  ;;  %1975 = vmatpush1.bf16.msra.mxu1 %v6334_v29  ;;  %v6429_v28 = vld [vmem:[#allocation5 + $0x64] ss:$8 sps:$4 sm:$0xff]   ;;  %v6427_v29 = vld [vmem:[#allocation5 + $0x60] ss:$8 sps:$4 sm:$0xff]  }
 0x11b   :  { %1812 = vmatprep.subr.bf16.mxu0 %v6339_v30  ;;  %1976 = vmatprep.subr.bf16.mxu1 %v6342_v31  ;;  %v6432_v30 = vld [vmem:[#allocation5 + $0x74] ss:$8 sps:$4 sm:$0xff]   ;;  %v6430_v31 = vld [vmem:[#allocation5 + $0x70] ss:$8 sps:$4 sm:$0xff]  }
 0x11e   :  { %1813 = vmatpush1.bf16.msra.mxu0 %v6337_v32  ;;  %1977 = vmatpush1.bf16.msra.mxu1 %v6340_v33  ;;  %v6435_v32 = vld [vmem:[#allocation5 + $0x84] ss:$8 sps:$4 sm:$0xff]   ;;  %v6433_v33 = vld [vmem:[#allocation5 + $0x80] ss:$8 sps:$4 sm:$0xff]  }
 0x11f   :  { %1814 = vmatprep.subr.bf16.mxu0 %v6345_v34  ;;  %1978 = vmatprep.subr.bf16.mxu1 %v6348_v35  ;;  %v6438_v34 = vld [vmem:[#allocation5 + $0x94] ss:$8 sps:$4 sm:$0xff]   ;;  %v6436_v35 = vld [vmem:[#allocation5 + $0x90] ss:$8 sps:$4 sm:$0xff]  }
 0x122   :  { %1815 = vmatpush1.bf16.msra.mxu0 %v6343_v36  ;;  %1979 = vmatpush1.bf16.msra.mxu1 %v6346_v37  ;;  %v6441_v36 = vld [vmem:[#allocation5 + $0xa4] ss:$8 sps:$4 sm:$0xff]   ;;  %v6439_v37 = vld [vmem:[#allocation5 + $0xa0] ss:$8 sps:$4 sm:$0xff]  }
 0x123   :  { %1816 = vmatprep.subr.bf16.mxu0 %v6351_v38  ;;  %1980 = vmatprep.subr.bf16.mxu1 %v6354_v39  ;;  %v6444_v38 = vld [vmem:[#allocation5 + $0xb4] ss:$8 sps:$4 sm:$0xff]   ;;  %v6442_v39 = vld [vmem:[#allocation5 + $0xb0] ss:$8 sps:$4 sm:$0xff]  }
 0x126   :  { %1817 = vmatpush1.bf16.msra.mxu0 %v6349_v40  ;;  %1981 = vmatpush1.bf16.msra.mxu1 %v6352_v41  ;;  %v6447_v40 = vld [vmem:[#allocation5 + $0xc4] ss:$8 sps:$4 sm:$0xff]   ;;  %v6445_v41 = vld [vmem:[#allocation5 + $0xc0] ss:$8 sps:$4 sm:$0xff]  }
 0x127   :  { %1818 = vmatprep.subr.bf16.mxu0 %v6357_v42  ;;  %1982 = vmatprep.subr.bf16.mxu1 %v6360_v43  ;;  %v6450_v42 = vld [vmem:[#allocation5 + $0xd4] ss:$8 sps:$4 sm:$0xff]   ;;  %v6448_v43 = vld [vmem:[#allocation5 + $0xd0] ss:$8 sps:$4 sm:$0xff]  }
 0x12a   :  { %1819 = vmatpush1.bf16.msra.mxu0 %v6355_v44  ;;  %1983 = vmatpush1.bf16.msra.mxu1 %v6358_v45  ;;  %v6453_v44 = vld [vmem:[#allocation5 + $0xe4] ss:$8 sps:$4 sm:$0xff]   ;;  %v6451_v45 = vld [vmem:[#allocation5 + $0xe0] ss:$8 sps:$4 sm:$0xff]  }
 0x12b   :  { %1820 = vmatprep.subr.bf16.mxu0 %v6363_v46  ;;  %1984 = vmatprep.subr.bf16.mxu1 %v6366_v47  ;;  %v6456_v46 = vld [vmem:[#allocation5 + $0xf4] ss:$8 sps:$4 sm:$0xff]   ;;  %v6454_v47 = vld [vmem:[#allocation5 + $0xf0] ss:$8 sps:$4 sm:$0xff]  }
 0x12e   :  { %1821 = vmatpush1.bf16.msra.mxu0 %v6361_v48  ;;  %1985 = vmatpush1.bf16.msra.mxu1 %v6364_v49  ;;  %v6459_v48 = vld [vmem:[#allocation5 + $0x104] ss:$8 sps:$4 sm:$0xff]   ;;  %v381_v49 = vlaneseq }
 0x12f   :  { %1822 = vmatprep.subr.bf16.mxu0 %v6369_v50  ;;  %1986 = vmatprep.subr.bf16.mxu1 %v6372_v51 }
 0x130   :  { %v6972_v50 = vshrl.u32 %v381_v49, 7  ;;  %v6507_v49 = vld [vmem:[%s7192_s6 + $0x48] sm:$0xff]  }
 0x132   :  { %1823 = vmatpush1.bf16.msra.mxu0 %v6367_v52  ;;  %1987 = vmatpush1.bf16.msra.mxu1 %v6370_v53  ;;  %v6975_v51 = vsub.s32 0, %v6972_v50  ;;  %v6980_v52 = vld [vmem:[%s7189_s3] sm:$0xf]  ;;  %v6983_v53 = vsub.s32 1, %v6972_v50 }
 0x133   :  { %1824 = vmatprep.subr.bf16.mxu0 %v6375_v54  ;;  %1988 = vmatprep.subr.bf16.mxu1 %v6378_v55  ;;  %v6986_v54 = vsub.s32 3, %v6972_v50 }
 0x134   :  { %v384_v55 = vrot.slane %v6980_v52, %v6975_v51 }
 0x136   :  { %1825 = vmatpush1.bf16.msra.mxu0 %v6373_v56  ;;  %1989 = vmatpush1.bf16.msra.mxu1 %v6376_v57  ;;  %v388_v56 = vrot.slane %v6980_v52, %v6983_v53  ;;  %v396_v57 = vrot.slane %v6980_v52, %v6986_v54 }
 0x137   :  { %1826 = vmatprep.subr.bf16.mxu0 %v6381_v58  ;;  %1990 = vmatprep.subr.bf16.mxu1 %v6384_v59 }
 0x13a   :  { %1827 = vmatpush1.bf16.msra.mxu0 %v6379_v60  ;;  %1991 = vmatpush1.bf16.msra.mxu1 %v6382_v61 }
 0x13b   :  { %1828 = vmatprep.subr.bf16.mxu0 %v6387_v62  ;;  %1992 = vmatprep.subr.bf16.mxu1 %v6390_v63 }
 0x13e   :  { %1829 = vmatpush1.bf16.msra.mxu0 %v6385_v0  ;;  %1993 = vmatpush1.bf16.msra.mxu1 %v6388_v1 }
 0x13f   :  { %1830 = vmatprep.subr.bf16.mxu0 %v6393_v2  ;;  %1994 = vmatprep.subr.bf16.mxu1 %v6396_v3 }
 0x142   :  { %1831 = vmatpush1.bf16.msra.mxu0 %v6391_v4  ;;  %1995 = vmatpush1.bf16.msra.mxu1 %v6394_v5 }
 0x143   :  { %1832 = vmatprep.subr.bf16.mxu0 %v6399_v6  ;;  %1996 = vmatprep.subr.bf16.mxu1 %v6402_v7 }
 0x146   :  { %1833 = vmatpush1.bf16.msra.mxu0 %v6397_v8  ;;  %1997 = vmatpush1.bf16.msra.mxu1 %v6400_v9  ;;  %v6457_v9 = vld [vmem:[#allocation5 + $0x100] ss:$8 sps:$4 sm:$0xff]  }
 0x147   :  { %1834 = vmatprep.subr.bf16.mxu0 %v6405_v10  ;;  %1998 = vmatprep.subr.bf16.mxu1 %v6408_v11  ;;  %v6462_v11 = vld [vmem:[#allocation5 + $0x114] ss:$8 sps:$4 sm:$0xff]  }
 0x14a   :  { %1835 = vmatpush1.bf16.msra.mxu0 %v6403_v12  ;;  %1999 = vmatpush1.bf16.msra.mxu1 %v6406_v13  ;;  %v6460_v13 = vld [vmem:[#allocation5 + $0x110] ss:$8 sps:$4 sm:$0xff]  }
 0x14b   :  { %2413 = vmatprep.subr.bf16.mxu0 %v6411_v15  ;;  %v6463_v15 = vld [vmem:[#allocation5 + $0x120] ss:$8 sps:$4 sm:$0xff]  }
 0x14d   :  { %1837 = vmatmul.mubr.bf16.vlgmr.msra.gmra.mrb[0].mxu0 %v121_v16  ;;  %2001 = vmatmul.mubr.bf16.vlgmr.msra.gmra.mrb[0].mxu1 %v121_v16  ;;  %v6468_v16 = vld [vmem:[#allocation5 + $0x134] ss:$8 sps:$4 sm:$0xff]  }
 0x14e   :  { %2414 = vmatpush1.bf16.msra.mxu0 %v6409_v17  ;;  %v6466_v17 = vld [vmem:[#allocation5 + $0x130] ss:$8 sps:$4 sm:$0xff]  }
 0x14f   :  { %2415 = vmatprep.subr.bf16.mxu0 %v6414_v18  ;;  %v6471_v18 = vld [vmem:[#allocation5 + $0x144] ss:$8 sps:$4 sm:$0xff]  }
 0x152   :  { %2416 = vmatpush1.bf16.msra.mxu0 %v6412_v19  ;;  %v6469_v19 = vld [vmem:[#allocation5 + $0x140] ss:$8 sps:$4 sm:$0xff]  }
 0x153   :  { %2417 = vmatprep.subr.bf16.mxu0 %v6417_v20  ;;  %v6474_v20 = vld [vmem:[#allocation5 + $0x154] ss:$8 sps:$4 sm:$0xff]  }
 0x156   :  { %2418 = vmatpush1.bf16.msra.mxu0 %v6415_v21  ;;  %v6472_v21 = vld [vmem:[#allocation5 + $0x150] ss:$8 sps:$4 sm:$0xff]  }
 0x157   :  { %2419 = vmatprep.subr.bf16.mxu0 %v6420_v22  ;;  %v6477_v22 = vld [vmem:[#allocation5 + $0x164] ss:$8 sps:$4 sm:$0xff]  }
 0x15a   :  { %2420 = vmatpush1.bf16.msra.mxu0 %v6418_v23  ;;  %v6475_v23 = vld [vmem:[#allocation5 + $0x160] ss:$8 sps:$4 sm:$0xff]  }
 0x15b   :  { %2421 = vmatprep.subr.bf16.mxu0 %v6423_v24  ;;  %v6480_v24 = vld [vmem:[#allocation5 + $0x174] ss:$8 sps:$4 sm:$0xff]  }
 0x15e   :  { %2422 = vmatpush1.bf16.msra.mxu0 %v6421_v25  ;;  %v6478_v25 = vld [vmem:[#allocation5 + $0x170] ss:$8 sps:$4 sm:$0xff]  }
 0x15f   :  { %2423 = vmatprep.subr.bf16.mxu0 %v6426_v26  ;;  %v6483_v26 = vld [vmem:[#allocation5 + $0x184] ss:$8 sps:$4 sm:$0xff]  }
 0x162   :  { %2424 = vmatpush1.bf16.msra.mxu0 %v6424_v27  ;;  %v6481_v27 = vld [vmem:[#allocation5 + $0x180] ss:$8 sps:$4 sm:$0xff]  }
 0x163   :  { %2425 = vmatprep.subr.bf16.mxu0 %v6429_v28  ;;  %v6486_v28 = vld [vmem:[#allocation5 + $0x194] ss:$8 sps:$4 sm:$0xff]  }
 0x166   :  { %2426 = vmatpush1.bf16.msra.mxu0 %v6427_v29  ;;  %v6484_v29 = vld [vmem:[#allocation5 + $0x190] ss:$8 sps:$4 sm:$0xff]  }
 0x167   :  { %2427 = vmatprep.subr.bf16.mxu0 %v6432_v30  ;;  %v6489_v30 = vld [vmem:[#allocation5 + $0x1a4] ss:$8 sps:$4 sm:$0xff]  }
 0x16a   :  { %2428 = vmatpush1.bf16.msra.mxu0 %v6430_v31  ;;  %v6487_v31 = vld [vmem:[#allocation5 + $0x1a0] ss:$8 sps:$4 sm:$0xff]  }
 0x16b   :  { %2429 = vmatprep.subr.bf16.mxu0 %v6435_v32  ;;  %v6492_v32 = vld [vmem:[#allocation5 + $0x1b4] ss:$8 sps:$4 sm:$0xff]  }
 0x16e   :  { %2430 = vmatpush1.bf16.msra.mxu0 %v6433_v33  ;;  %v6490_v33 = vld [vmem:[#allocation5 + $0x1b0] ss:$8 sps:$4 sm:$0xff]  }
 0x16f   :  { %2431 = vmatprep.subr.bf16.mxu0 %v6438_v34  ;;  %v6495_v34 = vld [vmem:[#allocation5 + $0x1c4] ss:$8 sps:$4 sm:$0xff]  }
 0x172   :  { %2432 = vmatpush1.bf16.msra.mxu0 %v6436_v35  ;;  %v6493_v35 = vld [vmem:[#allocation5 + $0x1c0] ss:$8 sps:$4 sm:$0xff]  }
 0x173   :  { %2433 = vmatprep.subr.bf16.mxu0 %v6441_v36  ;;  %v6997_v36 = vsub.s32 2, %v6972_v50 }
 0x176   :  { %2434 = vmatpush1.bf16.msra.mxu0 %v6439_v37  ;;  %v6498_v37 = vld [vmem:[#allocation5 + $0x1d4] ss:$8 sps:$4 sm:$0xff]  }
 0x177   :  { %2435 = vmatprep.subr.bf16.mxu0 %v6444_v38  ;;  %v6496_v38 = vld [vmem:[#allocation5 + $0x1d0] ss:$8 sps:$4 sm:$0xff]  }
 0x17a   :  { %2436 = vmatpush1.bf16.msra.mxu0 %v6442_v39  ;;  %v392_v39 = vrot.slane %v6980_v52, %v6997_v36  ;;  %v6508_v52 = vld [vmem:[%s7192_s6 + $0x8] sm:$0xff]  }
 0x17b   :  { %2437 = vmatprep.subr.bf16.mxu0 %v6447_v40  ;;  %v6501_v40 = vld [vmem:[#allocation5 + $0x1e4] ss:$8 sps:$4 sm:$0xff]  }
 0x17e   :  { %2438 = vmatpush1.bf16.msra.mxu0 %v6445_v41  ;;  %v6499_v41 = vld [vmem:[#allocation5 + $0x1e0] ss:$8 sps:$4 sm:$0xff]  }
 0x17f   :  { %2439 = vmatprep.subr.bf16.mxu0 %v6450_v42 }
 0x182   :  { %2440 = vmatpush1.bf16.msra.mxu0 %v6448_v43  ;;  %v6504_v43 = vld [vmem:[#allocation5 + $0x1f4] ss:$8 sps:$4 sm:$0xff]  }
 0x183   :  { %2441 = vmatprep.subr.bf16.mxu0 %v6453_v44  ;;  %v6502_v44 = vld [vmem:[#allocation5 + $0x1f0] ss:$8 sps:$4 sm:$0xff]  }
 0x186   :  { %2442 = vmatpush1.bf16.msra.mxu0 %v6451_v45 }
 0x187   :  { %2443 = vmatprep.subr.bf16.mxu0 %v6456_v46  ;;  %v6505_v46 = vld [vmem:[%s7192_s6 + $0x40] sm:$0xff]  }
 0x18a   :  { %2444 = vmatpush1.bf16.msra.mxu0 %v6454_v47  ;;  %v6506_v47 = vld [vmem:[%s7192_s6] sm:$0xff]  }
 0x18b   :  { %2454 = vmatprep.subr.bf16.mxu0 %v6459_v48 }
 0x220   :  { %v1838_v58 = vpop.f32.mrb[0].mxu0  ;;  %v6994_v59 = vpop.f32.mrb[0].mxu1 }
 0x221   :  { %v5953_v60 = vadd.f32 %v1838_v58, %v384_v55  ;;  %v1840_v61 = vpop.f32.mrb[1].mxu0  ;;  %v2004_v62 = vpop.f32.mrb[1].mxu1  ;;  %v5955_v42 = vadd.f32 %v6994_v59, %v392_v39  ;;  %v6509_v55 = vld [vmem:[%s7192_s6 + $0x50] sm:$0xff]   ;;  %v6512_v58 = vld [vmem:[%s7192_s6 + $0x18] sm:$0xff]   ;;  %v6513_v59 = vld [vmem:[%s7192_s6 + $0x60] sm:$0xff]  }
 0x222   :  { %v5954_v63 = vadd.f32 %v1840_v61, %v388_v56  ;;  %v5956_v0 = vadd.f32 %v2004_v62, %v396_v57  ;;  %v1842_v1 = vpop.f32.mrb[2].mxu0  ;;  %v2006_v2 = vpop.f32.mrb[2].mxu1  ;;  %v6510_v56 = vld [vmem:[%s7192_s6 + $0x10] sm:$0xff]   ;;  %v6511_v57 = vld [vmem:[%s7192_s6 + $0x58] sm:$0xff]   ;;  %v6515_v61 = vld [vmem:[%s7192_s6 + $0x68] sm:$0xff]  }
 0x223   :  { %v2009_v3 = vmax.f32 %v5953_v60, 0.0  ;;  %v1843_v4 = vpop.f32.mrb[3].mxu0  ;;  %v2007_v5 = vpop.f32.mrb[3].mxu1  ;;  %v2011_v45 = vmax.f32 %v5955_v42, 0.0  ;;  %v6514_v60 = vld [vmem:[%s7192_s6 + $0x20] sm:$0xff]   ;;  %v6516_v62 = vld [vmem:[%s7192_s6 + $0x28] sm:$0xff]  }
 0x224   :  { %v2010_v6 = vmax.f32 %v5954_v63, 0.0  ;;  %v2012_v7 = vmax.f32 %v5956_v0, 0.0  ;;  %v6517_v63 = vld [vmem:[%s7192_s6 + $0x70] sm:$0xff]   ;;  %v6519_v1 = vld [vmem:[%s7192_s6 + $0x78] sm:$0xff]  }
 0x225   :  { %v2013_v10 = vpack.c.bf16 %v2009_v3, %v2009_v3  ;;  %v2015_v48 = vpack.c.bf16 %v2011_v45, %v2011_v45  ;;  %v6518_v0 = vld [vmem:[%s7192_s6 + $0x30] sm:$0xff]   ;;  %v6520_v2 = vld [vmem:[%s7192_s6 + $0x38] sm:$0xff]   ;;  %v2081_v3 = vld [vmem:[%s7191_s5] sm:$0x3] }
 0x226   :  { %v2014_v8 = vpack.c.bf16 %v2010_v6, %v2010_v6  ;;  %v2016_v12 = vpack.c.bf16 %v2012_v7, %v2012_v7  ;;  %v2086_v4 = vrot.slane %v2081_v3, %v6975_v51  ;;  %v2090_v5 = vrot.slane %v2081_v3, %v6983_v53  ;;  %v6532_v39 = vld [vmem:[#allocation7 + $0x24] ss:$16 sps:$4 sm:$0xff]   ;;  %v6533_v42 = vld [vmem:[#allocation7 + $0x40] ss:$16 sps:$4 sm:$0xff]  }
 0x227   :  { %v6541_v45 = vld [vmem:[#allocation7 + $0x84] ss:$16 sps:$4 sm:$0xff]  }
 0x228   :  { %2445 = vmatprep.mubr.bf16.mxu0 %v2014_v8  ;;  %v6568_v3 = vld [vmem:[#allocation7 + $0x1a4] ss:$16 sps:$4 sm:$0xff]  }
 0x229   :  { %2446 = vmatmul.mubr.bf16.vlgmr.msra.gmra.mrb[4].mxu0 %v2013_v10 }
 0x22a   :  { %2455 = vmatpush1.bf16.msra.mxu0 %v6457_v9  ;;  %2486 = vmatprep.mubr.bf16.mxu0 %v2016_v12 }
 0x22b   :  { %2456 = vmatprep.subr.bf16.mxu0 %v6462_v11 }
 0x22e   :  { %2457 = vmatpush1.bf16.msra.mxu0 %v6460_v13 }
 0x22f   :  { %2458 = vmatprep.subr.bf16.mxu0 %v6465_v14 }
 0x232   :  { %2459 = vmatpush1.bf16.msra.mxu0 %v6463_v15 }
 0x233   :  { %2460 = vmatprep.subr.bf16.mxu0 %v6468_v16  ;;  %v6521_v16 = vld [vmem:[%s7194_s8] ss:$8 sps:$4 sm:$0xff]  }
 0x236   :  { %2461 = vmatpush1.bf16.msra.mxu0 %v6466_v17  ;;  %v6523_v17 = vld [vmem:[%s7194_s8 + $0x4] ss:$8 sps:$4 sm:$0xff]  }
 0x237   :  { %2462 = vmatprep.subr.bf16.mxu0 %v6471_v18  ;;  %2725 = vmatprep.subr.bf16.mxu1 %v6523_v17 }
 0x238   :  { %2726 = vmatpush1.bf16.msra.mxu1 %v6521_v16 }
 0x23a   :  { %2463 = vmatpush1.bf16.msra.mxu0 %v6469_v19  ;;  %v5581_v19 = vld [vmem:[%s7193_s7] ss:$0 sm:$0xff]  ;;  %s6810_s7 = smov 96  }
 0x23b   :  { %2464 = vmatprep.subr.bf16.mxu0 %v6474_v20 }
 0x23e   :  { %2465 = vmatpush1.bf16.msra.mxu0 %v6472_v21 }
 0x23f   :  { %2466 = vmatprep.subr.bf16.mxu0 %v6477_v22 }
 0x242   :  { %2467 = vmatpush1.bf16.msra.mxu0 %v6475_v23 }
 0x243   :  { %2468 = vmatprep.subr.bf16.mxu0 %v6480_v24 }
 0x246   :  { %2469 = vmatpush1.bf16.msra.mxu0 %v6478_v25 }
 0x247   :  { %2470 = vmatprep.subr.bf16.mxu0 %v6483_v26 }
 0x24a   :  { %2471 = vmatpush1.bf16.msra.mxu0 %v6481_v27  ;;  %v6526_v27 = vld [vmem:[%s7194_s8 + $0x14] ss:$8 sps:$4 sm:$0xff]  }
 0x24b   :  { %2472 = vmatprep.subr.bf16.mxu0 %v6486_v28  ;;  %v6524_v28 = vld [vmem:[%s7194_s8 + $0x10] ss:$8 sps:$4 sm:$0xff]   ;;  %2727 = vmatprep.subr.bf16.mxu1 %v6526_v27  ;;  %v3302_v27 = vld [vmem:[#allocation8 + $0x120] sm:$0xff] }
 0x24c   :  { %2728 = vmatpush1.bf16.msra.mxu1 %v6524_v28 }
 0x24e   :  { %2473 = vmatpush1.bf16.msra.mxu0 %v6484_v29  ;;  %v6809_v29 = vmov 0  }
 0x24f   :  { %2474 = vmatprep.subr.bf16.mxu0 %v6489_v30  ;;  %2757 = vmatprep.mubr.bf16.mxu1 %v6809_v29  ;;  %v6529_v30 = vld [vmem:[#allocation7 + $0x4] ss:$16 sps:$4 sm:$0xff]  }
 0x250   :  { %3176 = vmatprep.subr.bf16.mxu1 %v6529_v30  ;;  %v3306_v30 = vld [vmem:[#allocation8 + $0x140] sm:$0xff] }
 0x252   :  { %2475 = vmatpush1.bf16.msra.mxu0 %v6487_v31 }
 0x253   :  { %2476 = vmatprep.subr.bf16.mxu0 %v6492_v32  ;;  %v2677_v32 = vld [vmem:[%s7187_s1] sm:$0xff] }
 0x256   :  { %2477 = vmatpush1.bf16.msra.mxu0 %v6490_v33 }
 0x257   :  { %2478 = vmatprep.subr.bf16.mxu0 %v6495_v34 }
 0x25a   :  { %2479 = vmatpush1.bf16.msra.mxu0 %v6493_v35 }
 0x25b   :  { %2480 = vmatprep.subr.bf16.mxu0 %v6498_v37  ;;  %v6527_v37 = vld [vmem:[#allocation7] ss:$16 sps:$4 sm:$0xff]  }
 0x25e   :  { %2481 = vmatpush1.bf16.msra.mxu0 %v6496_v38 }
 0x25f   :  { %2482 = vmatprep.subr.bf16.mxu0 %v6501_v40  ;;  %v6530_v40 = vld [vmem:[#allocation7 + $0x20] ss:$16 sps:$4 sm:$0xff]  }
 0x262   :  { %2483 = vmatpush1.bf16.msra.mxu0 %v6499_v41  ;;  %v6535_v41 = vld [vmem:[#allocation7 + $0x44] ss:$16 sps:$4 sm:$0xff]  }
 0x263   :  { %2484 = vmatprep.subr.bf16.mxu0 %v6504_v43  ;;  %v6538_v43 = vld [vmem:[#allocation7 + $0x64] ss:$16 sps:$4 sm:$0xff]  }
 0x266   :  { %2485 = vmatpush1.bf16.msra.mxu0 %v6502_v44  ;;  %v6536_v44 = vld [vmem:[#allocation7 + $0x60] ss:$16 sps:$4 sm:$0xff]  }
 0x267   :  { %5931 = vmatprep.subr.bf16.mxu0 %v6505_v46  ;;  %v6539_v46 = vld [vmem:[#allocation7 + $0x80] ss:$16 sps:$4 sm:$0xff]  }
 0x269   :  { %2487 = vmatmul.mubr.bf16.vlgmr.msra.gmra.mrb[4].mxu0 %v2015_v48  ;;  %v6542_v48 = vld [vmem:[#allocation7 + $0xa0] ss:$16 sps:$4 sm:$0xff]  }
 0x26a   :  { %5932 = vmatpush3.bf16.msra.mxu0 %v6506_v47  ;;  %v6544_v47 = vld [vmem:[#allocation7 + $0xa4] ss:$16 sps:$4 sm:$0xff]  }
 0x26b   :  { %5933 = vmatprep.subr.bf16.mxu0 %v6507_v49  ;;  %v6547_v49 = vld [vmem:[#allocation7 + $0xc4] ss:$16 sps:$4 sm:$0xff]  }
 0x26e   :  { %5934 = vmatpush3.bf16.msra.mxu0 %v6508_v52  ;;  %v6545_v52 = vld [vmem:[#allocation7 + $0xc0] ss:$16 sps:$4 sm:$0xff]  }
 0x26f   :  { %5935 = vmatprep.subr.bf16.mxu0 %v6509_v55  ;;  %v6550_v55 = vld [vmem:[#allocation7 + $0xe4] ss:$16 sps:$4 sm:$0xff]  }
 0x272   :  { %5936 = vmatpush3.bf16.msra.mxu0 %v6510_v56  ;;  %v6548_v56 = vld [vmem:[#allocation7 + $0xe0] ss:$16 sps:$4 sm:$0xff]  }
 0x273   :  { %5937 = vmatprep.subr.bf16.mxu0 %v6511_v57  ;;  %v6553_v57 = vld [vmem:[#allocation7 + $0x104] ss:$16 sps:$4 sm:$0xff]  }
 0x276   :  { %5938 = vmatpush3.bf16.msra.mxu0 %v6512_v58  ;;  %v6551_v58 = vld [vmem:[#allocation7 + $0x100] ss:$16 sps:$4 sm:$0xff]  }
 0x277   :  { %5939 = vmatprep.subr.bf16.mxu0 %v6513_v59  ;;  %v6556_v59 = vld [vmem:[#allocation7 + $0x124] ss:$16 sps:$4 sm:$0xff]  }
 0x27a   :  { %5940 = vmatpush3.bf16.msra.mxu0 %v6514_v60  ;;  %v6554_v60 = vld [vmem:[#allocation7 + $0x120] ss:$16 sps:$4 sm:$0xff]  }
 0x27b   :  { %5941 = vmatprep.subr.bf16.mxu0 %v6515_v61  ;;  %v6559_v61 = vld [vmem:[#allocation7 + $0x144] ss:$16 sps:$4 sm:$0xff]  }
 0x27e   :  { %5942 = vmatpush3.bf16.msra.mxu0 %v6516_v62  ;;  %v6557_v62 = vld [vmem:[#allocation7 + $0x140] ss:$16 sps:$4 sm:$0xff]  }
 0x27f   :  { %5943 = vmatprep.subr.bf16.mxu0 %v6517_v63  ;;  %v6562_v63 = vld [vmem:[#allocation7 + $0x164] ss:$16 sps:$4 sm:$0xff]  }
 0x282   :  { %5944 = vmatpush3.bf16.msra.mxu0 %v6518_v0  ;;  %v6560_v0 = vld [vmem:[#allocation7 + $0x160] ss:$16 sps:$4 sm:$0xff]  }
 0x283   :  { %5945 = vmatprep.subr.bf16.mxu0 %v6519_v1  ;;  %v6565_v1 = vld [vmem:[#allocation7 + $0x184] ss:$16 sps:$4 sm:$0xff]  }
 0x286   :  { %5946 = vmatpush3.bf16.msra.mxu0 %v6520_v2  ;;  %v6563_v2 = vld [vmem:[#allocation7 + $0x180] ss:$16 sps:$4 sm:$0xff]  }
 0x33c   :  { %v2488_v6 = vpop.f32.mrb[4].mxu0 }
 0x33d   :  { %v5957_v7 = vadd.f32 %v2488_v6, %v2086_v4  ;;  %v2490_v8 = vpop.f32.mrb[5].mxu0  ;;  %v6566_v4 = vld [vmem:[#allocation7 + $0x1a0] ss:$16 sps:$4 sm:$0xff]  }
 0x33e   :  { %v5958_v9 = vadd.f32 %v2490_v8, %v2090_v5  ;;  %v2492_v10 = vpop.f32.mrb[6].mxu0  ;;  %v6571_v5 = vld [vmem:[#allocation7 + $0x1c4] ss:$16 sps:$4 sm:$0xff]   ;;  %v6569_v6 = vld [vmem:[#allocation7 + $0x1c0] ss:$16 sps:$4 sm:$0xff]  }
 0x33f   :  { %v2495_v11 = vmax.f32 %v5957_v7, 0.0  ;;  %v2493_v12 = vpop.f32.mrb[7].mxu0  ;;  %v6574_v7 = vld [vmem:[#allocation7 + $0x1e4] ss:$16 sps:$4 sm:$0xff]   ;;  %v6572_v8 = vld [vmem:[#allocation7 + $0x1e0] ss:$16 sps:$4 sm:$0xff]  }
 0x340   :  { %v2496_v13 = vmax.f32 %v5958_v9, 0.0  ;;  %v6577_v9 = vld [vmem:[#allocation7 + $0xc] ss:$16 sps:$4 sm:$0xff]   ;;  %v3266_v10 = vld [vmem:[#allocation8] sm:$0xff] }
 0x341   :  { %v2497_v15 = vpack.c.bf16 %v2495_v11, %v2495_v11  ;;  %v3270_v11 = vld [vmem:[#allocation8 + $0x20] sm:$0xff] }
 0x342   :  { %v2498_v14 = vpack.c.bf16 %v2496_v13, %v2496_v13  ;;  %v5667_v12 = vcombine.low %v3266_v10, %v3270_v11  ;;  %v5668_v13 = vcombine.high %v3266_v10, %v3270_v11 }
 0x344   :  { %2666 = vmatprep.mubr.bf16.mxu0 %v2498_v14  ;;  %v3274_v14 = vld [vmem:[#allocation8 + $0x40] sm:$0xff]  ;;  %4844 = vmatprep.subr.bf16.mxu0 %v5668_v13 }
 0x345   :  { %2667 = vmatmul.mubr.bf16.vlgmr.msra.gmra.mrb[8].mxu0 %v2497_v15  ;;  %v3278_v15 = vld [vmem:[#allocation8 + $0x60] sm:$0xff] }
 0x346   :  { %v5676_v16 = vcombine.high %v3274_v14, %v3278_v15  ;;  %4845 = vmatpush1.bf16.msra.mxu0 %v5667_v12  ;;  %v5675_v17 = vcombine.low %v3274_v14, %v3278_v15 }
 0x348   :  { %4846 = vmatprep.subr.bf16.mxu0 %v5676_v16 }
 0x34a   :  { %4847 = vmatpush1.bf16.msra.mxu0 %v5675_v17 }
 0x418   :  { %v5947_v18 = vpop.f32.mrb[8].mxu0 }
 0x419   :  { %v5948_v20 = vpop.f32.mrb[9].mxu0 }
 0x41a   :  { %v5949_v21 = vadd.f32 %v5948_v20, %v5947_v18  ;;  %v5950_v22 = vpop.f32.mrb[10].mxu0  ;;  %v3282_v18 = vld [vmem:[#allocation8 + $0x80] sm:$0xff] }
 0x41b   :  { %v5951_v23 = vpop.f32.mrb[11].mxu0  ;;  %v3290_v22 = vld [vmem:[#allocation8 + $0xc0] sm:$0xff] }
 0x41c   :  { %v2669_v24 = vadd.f32 %v5949_v21, %v5581_v19  ;;  %v3286_v19 = vld [vmem:[#allocation8 + $0xa0] sm:$0xff] }
 0x41d   :  { %v5684_v20 = vcombine.high %v3282_v18, %v3286_v19  ;;  %v5683_v21 = vcombine.low %v3282_v18, %v3286_v19  ;;  %v3294_v23 = vld [vmem:[#allocation8 + $0xe0] sm:$0xff]  ;;  %v6575_v19 = vld [vmem:[#allocation7 + $0x8] ss:$16 sps:$4 sm:$0xff]  }
 0x41e   :  { %v2674_v25 = vmul.f32 0.5, %v2669_v24  ;;  %5229 = vst.msk [vmem:[#allocation11] sm:$0xff] %vm5228_vm0, %v2669_v24 }
 0x41f   :  { %4848 = vmatprep.subr.bf16.mxu0 %v5684_v20 }
 0x420   :  { %v2675_v26 = vmul.f32 1.442695, %v2674_v25  ;;  %4849 = vmatpush1.bf16.msra.mxu0 %v5683_v21  ;;  %v5691_v25 = vcombine.low %v3290_v22, %v3294_v23  ;;  %v6580_v21 = vld [vmem:[#allocation7 + $0x2c] ss:$16 sps:$4 sm:$0xff]  }
 0x422   :  { %6623 = vpow2.f32 %v2675_v26  ;;  %v3298_v26 = vld [vmem:[#allocation8 + $0x100] sm:$0xff] }
 0x423   :  { %v5700_v28 = vcombine.high %v3298_v26, %v3302_v27  ;;  %v5699_v29 = vcombine.low %v3298_v26, %v3302_v27  ;;  %v6584_v26 = vld [vmem:[#allocation7 + $0x68] ss:$16 sps:$4 sm:$0xff]   ;;  %v6589_v27 = vld [vmem:[#allocation7 + $0x8c] ss:$16 sps:$4 sm:$0xff]  }
 0x42c   :  { %v6624_v31 = vpop.eup %6623 }
 0x42d   :  { %2679 = vrot.lane.b32.xlu0 %v6624_v31, %s6810_s7  ;;  %v3310_v31 = vld [vmem:[#allocation8 + $0x160] sm:$0xff] }
 0x49f   :  { %v2680_v33 = vpop.permute.xlu0 %2679 }
 0x4a0   :  { %v2682_v34 = vmul.f32 %v2680_v33, %v2677_v32  ;;  %v5708_v32 = vcombine.high %v3306_v30, %v3310_v31  ;;  %v5707_v33 = vcombine.low %v3306_v30, %v3310_v31  ;;  %v6590_v30 = vld [vmem:[#allocation7 + $0xa8] ss:$16 sps:$4 sm:$0xff]   ;;  %v6595_v31 = vld [vmem:[#allocation7 + $0xcc] ss:$16 sps:$4 sm:$0xff]  }
 0x4a2   :  { %v2683_v35 = vadd.f32 %v2682_v34, %v2669_v24  ;;  %v5692_v24 = vcombine.high %v3290_v22, %v3294_v23  ;;  %v3314_v34 = vld [vmem:[#allocation8 + $0x180] sm:$0xff]  ;;  %v6578_v22 = vld [vmem:[#allocation7 + $0x28] ss:$16 sps:$4 sm:$0xff]   ;;  %v6583_v23 = vld [vmem:[#allocation7 + $0x4c] ss:$16 sps:$4 sm:$0xff]  }
 0x4a4   :  { %v2684_v38 = vpack.c.bf16 %v2683_v35, %v2683_v35  ;;  %4850 = vmatprep.subr.bf16.mxu0 %v5692_v24  ;;  %v3318_v35 = vld [vmem:[#allocation8 + $0x1a0] sm:$0xff]  ;;  %v6581_v24 = vld [vmem:[#allocation7 + $0x48] ss:$16 sps:$4 sm:$0xff]  }
 0x4a5   :  { %4851 = vmatpush1.bf16.msra.mxu0 %v5691_v25  ;;  %v6586_v25 = vld [vmem:[#allocation7 + $0x6c] ss:$16 sps:$4 sm:$0xff]  }
 0x4a6   :  { %5602 = vmatmul.mubr.msk.bf16.vlgmr.msra.gmra.mrb[4].mxu1 %vm2721_vm1, %v2684_v38  ;;  %4852 = vmatprep.subr.bf16.mxu0 %v5700_v28  ;;  %v5715_v38 = vcombine.low %v3314_v34, %v3318_v35  ;;  %v6587_v28 = vld [vmem:[#allocation7 + $0x88] ss:$16 sps:$4 sm:$0xff]  }
 0x4a7   :  { %3177 = vmatpush1.bf16.msra.mxu1 %v6527_v37  ;;  %v5716_v37 = vcombine.high %v3314_v34, %v3318_v35  ;;  %v6596_v34 = vld [vmem:[#allocation7 + $0xe8] ss:$16 sps:$4 sm:$0xff]   ;;  %v6601_v35 = vld [vmem:[#allocation7 + $0x10c] ss:$16 sps:$4 sm:$0xff]  }
 0x4a8   :  { %3178 = vmatprep.subr.bf16.mxu1 %v6532_v39  ;;  %v3322_v39 = vld [vmem:[#allocation8 + $0x1c0] sm:$0xff] }
 0x4a9   :  { %4853 = vmatpush1.bf16.msra.mxu0 %v5699_v29  ;;  %v6592_v29 = vld [vmem:[#allocation7 + $0xac] ss:$16 sps:$4 sm:$0xff]  }
 0x4aa   :  { %4854 = vmatprep.subr.bf16.mxu0 %v5708_v32  ;;  %v6593_v32 = vld [vmem:[#allocation7 + $0xc8] ss:$16 sps:$4 sm:$0xff]  }
 0x4ab   :  { %3179 = vmatpush1.bf16.msra.mxu1 %v6530_v40  ;;  %v3326_v40 = vld [vmem:[#allocation8 + $0x1e0] sm:$0xff] }
 0x4ac   :  { %3180 = vmatprep.subr.bf16.mxu1 %v6535_v41  ;;  %v5724_v41 = vcombine.high %v3322_v39, %v3326_v40 }
 0x4ad   :  { %4855 = vmatpush1.bf16.msra.mxu0 %v5707_v33  ;;  %v6598_v33 = vld [vmem:[#allocation7 + $0xec] ss:$16 sps:$4 sm:$0xff]  }
 0x4ae   :  { %4856 = vmatprep.subr.bf16.mxu0 %v5716_v37  ;;  %v6599_v37 = vld [vmem:[#allocation7 + $0x108] ss:$16 sps:$4 sm:$0xff]  }
 0x4af   :  { %3181 = vmatpush1.bf16.msra.mxu1 %v6533_v42  ;;  %v5723_v42 = vcombine.low %v3322_v39, %v3326_v40  ;;  %v6602_v39 = vld [vmem:[#allocation7 + $0x128] ss:$16 sps:$4 sm:$0xff]   ;;  %v6607_v40 = vld [vmem:[#allocation7 + $0x14c] ss:$16 sps:$4 sm:$0xff]  }
 0x4b0   :  { %3182 = vmatprep.subr.bf16.mxu1 %v6538_v43  ;;  %v3330_v43 = vld [vmem:[#allocation8 + $0x200] sm:$0xff] }
 0x4b1   :  { %4857 = vmatpush1.bf16.msra.mxu0 %v5715_v38  ;;  %v6604_v38 = vld [vmem:[#allocation7 + $0x12c] ss:$16 sps:$4 sm:$0xff]  }
 0x4b2   :  { %4858 = vmatprep.subr.bf16.mxu0 %v5724_v41  ;;  %v6605_v41 = vld [vmem:[#allocation7 + $0x148] ss:$16 sps:$4 sm:$0xff]  }
 0x4b3   :  { %3183 = vmatpush1.bf16.msra.mxu1 %v6536_v44  ;;  %v3334_v44 = vld [vmem:[#allocation8 + $0x220] sm:$0xff] }
 0x4b4   :  { %3184 = vmatprep.subr.bf16.mxu1 %v6541_v45  ;;  %v5732_v45 = vcombine.high %v3330_v43, %v3334_v44 }
 0x4b5   :  { %4859 = vmatpush1.bf16.msra.mxu0 %v5723_v42  ;;  %v6610_v42 = vld [vmem:[#allocation7 + $0x16c] ss:$16 sps:$4 sm:$0xff]  }
 0x4b6   :  { %4860 = vmatprep.subr.bf16.mxu0 %v5732_v45  ;;  %v6611_v45 = vld [vmem:[#allocation7 + $0x188] ss:$16 sps:$4 sm:$0xff]  }
 0x4b7   :  { %3185 = vmatpush1.bf16.msra.mxu1 %v6539_v46  ;;  %v5731_v46 = vcombine.low %v3330_v43, %v3334_v44  ;;  %v6608_v43 = vld [vmem:[#allocation7 + $0x168] ss:$16 sps:$4 sm:$0xff]   ;;  %v6613_v44 = vld [vmem:[#allocation7 + $0x18c] ss:$16 sps:$4 sm:$0xff]  }
 0x4b8   :  { %3186 = vmatprep.subr.bf16.mxu1 %v6544_v47  ;;  %v3338_v47 = vld [vmem:[#allocation8 + $0x240] sm:$0xff] }
 0x4b9   :  { %4861 = vmatpush1.bf16.msra.mxu0 %v5731_v46  ;;  %v6616_v46 = vld [vmem:[#allocation7 + $0x1ac] ss:$16 sps:$4 sm:$0xff]  }
 0x4bb   :  { %3187 = vmatpush1.bf16.msra.mxu1 %v6542_v48  ;;  %v3342_v48 = vld [vmem:[#allocation8 + $0x260] sm:$0xff] }
 0x4bc   :  { %3188 = vmatprep.subr.bf16.mxu1 %v6547_v49  ;;  %v5740_v49 = vcombine.high %v3338_v47, %v3342_v48 }
 0x4be   :  { %4862 = vmatprep.subr.bf16.mxu0 %v5740_v49  ;;  %v6617_v49 = vld [vmem:[#allocation7 + $0x1c8] ss:$16 sps:$4 sm:$0xff]  }
 0x4bf   :  { %3189 = vmatpush1.bf16.msra.mxu1 %v6545_v52  ;;  %v5739_v52 = vcombine.low %v3338_v47, %v3342_v48  ;;  %v6614_v47 = vld [vmem:[#allocation7 + $0x1a8] ss:$16 sps:$4 sm:$0xff]   ;;  %v6619_v48 = vld [vmem:[#allocation7 + $0x1cc] ss:$16 sps:$4 sm:$0xff]  }
 0x4c0   :  { %3190 = vmatprep.subr.bf16.mxu1 %v6550_v55  ;;  %v3346_v55 = vld [vmem:[#allocation8 + $0x280] sm:$0xff] }
 0x4c1   :  { %4863 = vmatpush1.bf16.msra.mxu0 %v5739_v52  ;;  %v6622_v52 = vld [vmem:[#allocation7 + $0x1ec] ss:$16 sps:$4 sm:$0xff]  }
 0x4c3   :  { %3191 = vmatpush1.bf16.msra.mxu1 %v6548_v56  ;;  %v3350_v56 = vld [vmem:[#allocation8 + $0x2a0] sm:$0xff] }
 0x4c4   :  { %3192 = vmatprep.subr.bf16.mxu1 %v6553_v57  ;;  %v5748_v57 = vcombine.high %v3346_v55, %v3350_v56 }
 0x4c6   :  { %4864 = vmatprep.subr.bf16.mxu0 %v5748_v57  ;;  %v6620_v57 = vld [vmem:[#allocation7 + $0x1e8] ss:$16 sps:$4 sm:$0xff]  }
 0x4c7   :  { %3193 = vmatpush1.bf16.msra.mxu1 %v6551_v58  ;;  %v5747_v58 = vcombine.low %v3346_v55, %v3350_v56  ;;  %v3267_v55 = vld [vmem:[#allocation8 + $0x8] sm:$0xff] }
 0x4c8   :  { %3194 = vmatprep.subr.bf16.mxu1 %v6556_v59  ;;  %v3354_v59 = vld [vmem:[#allocation8 + $0x2c0] sm:$0xff]  ;;  %v3271_v56 = vld [vmem:[#allocation8 + $0x28] sm:$0xff] }
 0x4c9   :  { %4865 = vmatpush1.bf16.msra.mxu0 %v5747_v58  ;;  %v5670_v58 = vcombine.high %v3267_v55, %v3271_v56 }
 0x4cb   :  { %3195 = vmatpush1.bf16.msra.mxu1 %v6554_v60  ;;  %v3358_v60 = vld [vmem:[#allocation8 + $0x2e0] sm:$0xff] }
 0x4cc   :  { %3196 = vmatprep.subr.bf16.mxu1 %v6559_v61  ;;  %v5756_v61 = vcombine.high %v3354_v59, %v3358_v60 }
 0x4ce   :  { %4866 = vmatprep.subr.bf16.mxu0 %v5756_v61  ;;  %v5669_v61 = vcombine.low %v3267_v55, %v3271_v56  ;;  %v3355_v55 = vld [vmem:[#allocation8 + $0x2c8] sm:$0xff] }
 0x4cf   :  { %3197 = vmatpush1.bf16.msra.mxu1 %v6557_v62  ;;  %v5755_v62 = vcombine.low %v3354_v59, %v3358_v60  ;;  %v3275_v59 = vld [vmem:[#allocation8 + $0x48] sm:$0xff] }
 0x4d0   :  { %3198 = vmatprep.subr.bf16.mxu1 %v6562_v63  ;;  %v3362_v63 = vld [vmem:[#allocation8 + $0x300] sm:$0xff]  ;;  %v3279_v60 = vld [vmem:[#allocation8 + $0x68] sm:$0xff] }
 0x4d1   :  { %4867 = vmatpush1.bf16.msra.mxu0 %v5755_v62  ;;  %v5678_v62 = vcombine.high %v3275_v59, %v3279_v60  ;;  %v3359_v56 = vld [vmem:[#allocation8 + $0x2e8] sm:$0xff] }
 0x4d3   :  { %3199 = vmatpush1.bf16.msra.mxu1 %v6560_v0  ;;  %v3366_v0 = vld [vmem:[#allocation8 + $0x320] sm:$0xff] }
 0x4d4   :  { %3200 = vmatprep.subr.bf16.mxu1 %v6565_v1  ;;  %v5764_v1 = vcombine.high %v3362_v63, %v3366_v0 }
 0x4d6   :  { %4868 = vmatprep.subr.bf16.mxu0 %v5764_v1  ;;  %v5677_v1 = vcombine.low %v3275_v59, %v3279_v60  ;;  %v3363_v59 = vld [vmem:[#allocation8 + $0x308] sm:$0xff] }
 0x4d7   :  { %3201 = vmatpush1.bf16.msra.mxu1 %v6563_v2  ;;  %v5763_v2 = vcombine.low %v3362_v63, %v3366_v0  ;;  %v3283_v63 = vld [vmem:[#allocation8 + $0x88] sm:$0xff] }
 0x4d8   :  { %3202 = vmatprep.subr.bf16.mxu1 %v6568_v3  ;;  %v2689_v3 = vld [vmem:[%s7195_s9] sm:$0x3]  ;;  %v3287_v0 = vld [vmem:[#allocation8 + $0xa8] sm:$0xff] }
 0x4d9   :  { %4869 = vmatpush1.bf16.msra.mxu0 %v5763_v2  ;;  %v5686_v2 = vcombine.high %v3283_v63, %v3287_v0  ;;  %v3367_v60 = vld [vmem:[#allocation8 + $0x328] sm:$0xff] }
 0x4db   :  { %3203 = vmatpush1.bf16.msra.mxu1 %v6566_v4  ;;  %v3370_v4 = vld [vmem:[#allocation8 + $0x340] sm:$0xff] }
 0x4dc   :  { %3204 = vmatprep.subr.bf16.mxu1 %v6571_v5  ;;  %v3374_v5 = vld [vmem:[#allocation8 + $0x360] sm:$0xff] }
 0x4df   :  { %3205 = vmatpush1.bf16.msra.mxu1 %v6569_v6  ;;  %v5772_v6 = vcombine.high %v3370_v4, %v3374_v5 }
 0x4e0   :  { %3206 = vmatprep.subr.bf16.mxu1 %v6574_v7  ;;  %v2694_v7 = vrot.slane %v2689_v3, %v6975_v51 }
 0x4e1   :  { %4870 = vmatprep.subr.bf16.mxu0 %v5772_v6 }
 0x4e3   :  { %3207 = vmatpush1.bf16.msra.mxu1 %v6572_v8  ;;  %v5771_v8 = vcombine.low %v3370_v4, %v3374_v5  ;;  %v3295_v4 = vld [vmem:[#allocation8 + $0xe8] sm:$0xff]  ;;  %v5685_v5 = vcombine.low %v3283_v63, %v3287_v0 }
 0x4e4   :  { %3217 = vmatprep.subr.bf16.mxu1 %v6577_v9  ;;  %v2698_v9 = vrot.slane %v2689_v3, %v6983_v53  ;;  %v3291_v3 = vld [vmem:[#allocation8 + $0xc8] sm:$0xff] }
 0x4e5   :  { %4871 = vmatpush1.bf16.msra.mxu0 %v5771_v8  ;;  %v5694_v6 = vcombine.high %v3291_v3, %v3295_v4  ;;  %v3303_v8 = vld [vmem:[#allocation8 + $0x128] sm:$0xff] }
 0x4e6   :  { %v3371_v63 = vld [vmem:[#allocation8 + $0x348] sm:$0xff] }
 0x4e7   :  { %v3375_v0 = vld [vmem:[#allocation8 + $0x368] sm:$0xff] }
 0x579   :  { %v2759_v10 = vpop.f32.mrb[4].mxu1 }
 0x57a   :  { %v2760_v11 = vadd.f32 %v2759_v10, %v2694_v7  ;;  %v2761_v12 = vpop.f32.mrb[5].mxu1  ;;  %v3299_v7 = vld [vmem:[#allocation8 + $0x108] sm:$0xff] }
 0x57b   :  { %v2762_v13 = vadd.f32 %v2761_v12, %v2698_v9  ;;  %v2763_v14 = vpop.f32.mrb[6].mxu1  ;;  %v5693_v9 = vcombine.low %v3291_v3, %v3295_v4  ;;  %v5702_v10 = vcombine.high %v3299_v7, %v3303_v8  ;;  %v3311_v12 = vld [vmem:[#allocation8 + $0x168] sm:$0xff] }
 0x57c   :  { %v2766_v15 = vmax.f32 %v2760_v11, 0.0  ;;  %v2764_v16 = vpop.f32.mrb[7].mxu1  ;;  %v3307_v11 = vld [vmem:[#allocation8 + $0x148] sm:$0xff] }
 0x57d   :  { %v2767_v17 = vmax.f32 %v2762_v13, 0.0  ;;  %v5701_v13 = vcombine.low %v3299_v7, %v3303_v8  ;;  %v5710_v14 = vcombine.high %v3307_v11, %v3311_v12  ;;  %v3319_v16 = vld [vmem:[#allocation8 + $0x1a8] sm:$0xff] }
 0x57e   :  { %v7078_v20 = vpack.c.bf16 %v2766_v15, %v2766_v15  ;;  %v3315_v15 = vld [vmem:[#allocation8 + $0x188] sm:$0xff] }
 0x57f   :  { %v2769_v18 = vpack.c.bf16 %v2767_v17, %v2767_v17  ;;  %v5709_v17 = vcombine.low %v3307_v11, %v3311_v12  ;;  %v3379_v3 = vld [vmem:[#allocation8 + $0x388] sm:$0xff] }
 0x580   :  { %v3383_v4 = vld [vmem:[#allocation8 + $0x3a8] sm:$0xff] }
 0x581   :  { %3208 = vmatprep.mubr.bf16.mxu1 %v2769_v18  ;;  %v3387_v7 = vld [vmem:[#allocation8 + $0x3c8] sm:$0xff] }
 0x582   :  { %3209 = vmatmul.mubr.bf16.vlgmr.msra.gmra.mrb[8].mxu1 %v7078_v20  ;;  %v3391_v8 = vld [vmem:[#allocation8 + $0x3e8] sm:$0xff] }
 0x583   :  { %3218 = vmatpush1.bf16.msra.mxu1 %v6575_v19  ;;  %3249 = vmatprep.mubr.bf16.mxu1 %v2769_v18  ;;  %v3378_v18 = vld [vmem:[#allocation8 + $0x380] sm:$0xff]  ;;  %v5789_v11 = vcombine.low %v3387_v7, %v3391_v8 }
 0x584   :  { %3219 = vmatprep.subr.bf16.mxu1 %v6580_v21  ;;  %v3382_v19 = vld [vmem:[#allocation8 + $0x3a0] sm:$0xff] }
 0x585   :  { %v5780_v21 = vcombine.high %v3378_v18, %v3382_v19 }
 0x587   :  { %3220 = vmatpush1.bf16.msra.mxu1 %v6578_v22  ;;  %v3323_v22 = vld [vmem:[#allocation8 + $0x1c8] sm:$0xff]  ;;  %4872 = vmatprep.subr.bf16.mxu0 %v5780_v21 }
 0x588   :  { %3221 = vmatprep.subr.bf16.mxu1 %v6583_v23  ;;  %v3327_v23 = vld [vmem:[#allocation8 + $0x1e8] sm:$0xff] }
 0x58b   :  { %3222 = vmatpush1.bf16.msra.mxu1 %v6581_v24  ;;  %v5779_v24 = vcombine.low %v3378_v18, %v3382_v19 }
 0x58c   :  { %3223 = vmatprep.subr.bf16.mxu1 %v6586_v25  ;;  %v5717_v25 = vcombine.low %v3315_v15, %v3319_v16 }
 0x58d   :  { %4873 = vmatpush1.bf16.msra.mxu0 %v5779_v24 }
 0x58f   :  { %3224 = vmatpush1.bf16.msra.mxu1 %v6584_v26  ;;  %v3386_v26 = vld [vmem:[#allocation8 + $0x3c0] sm:$0xff] }
 0x590   :  { %3225 = vmatprep.subr.bf16.mxu1 %v6589_v27  ;;  %v3390_v27 = vld [vmem:[#allocation8 + $0x3e0] sm:$0xff] }
 0x593   :  { %3226 = vmatpush1.bf16.msra.mxu1 %v6587_v28  ;;  %v5726_v28 = vcombine.high %v3323_v22, %v3327_v23 }
 0x594   :  { %3227 = vmatprep.subr.bf16.mxu1 %v6592_v29  ;;  %v5788_v29 = vcombine.high %v3386_v26, %v3390_v27 }
 0x596   :  { %4874 = vmatprep.subr.bf16.mxu0 %v5788_v29 }
 0x597   :  { %3228 = vmatpush1.bf16.msra.mxu1 %v6590_v30  ;;  %v3331_v30 = vld [vmem:[#allocation8 + $0x208] sm:$0xff] }
 0x598   :  { %3229 = vmatprep.subr.bf16.mxu1 %v6595_v31  ;;  %v3335_v31 = vld [vmem:[#allocation8 + $0x228] sm:$0xff] }
 0x59b   :  { %3230 = vmatpush1.bf16.msra.mxu1 %v6593_v32  ;;  %v5787_v32 = vcombine.low %v3386_v26, %v3390_v27  ;;  %v3403_v26 = vld [vmem:[#allocation8 + $0x448] sm:$0xff] }
 0x59c   :  { %3231 = vmatprep.subr.bf16.mxu1 %v6598_v33  ;;  %v5725_v33 = vcombine.low %v3323_v22, %v3327_v23  ;;  %v3402_v23 = vld [vmem:[#allocation8 + $0x440] sm:$0xff]  ;;  %v3407_v27 = vld [vmem:[#allocation8 + $0x468] sm:$0xff] }
 0x59d   :  { %4875 = vmatpush1.bf16.msra.mxu0 %v5787_v32  ;;  %v3410_v32 = vld [vmem:[#allocation8 + $0x480] sm:$0xff] }
 0x59f   :  { %3232 = vmatpush1.bf16.msra.mxu1 %v6596_v34  ;;  %v7082_v34 = vld [vmem:[#allocation8 + $0x400] sm:$0xff] }
 0x5a0   :  { %3233 = vmatprep.subr.bf16.mxu1 %v6601_v35  ;;  %v7084_v35 = vld [vmem:[#allocation8 + $0x420] sm:$0xff] }
 0x5a3   :  { %3234 = vmatpush1.bf16.msra.mxu1 %v6599_v37  ;;  %v7086_v37 = vld [vmem:[#allocation8 + $0x408] sm:$0xff] }
 0x5a4   :  { %3235 = vmatprep.subr.bf16.mxu1 %v6604_v38  ;;  %v5734_v38 = vcombine.high %v3331_v30, %v3335_v31 }
 0x5a7   :  { %3236 = vmatpush1.bf16.msra.mxu1 %v6602_v39  ;;  %v5796_v39 = vcombine.high %v7082_v34, %v7084_v35 }
 0x5a8   :  { %3237 = vmatprep.subr.bf16.mxu1 %v6607_v40  ;;  %v7090_v40 = vld [vmem:[#allocation8 + $0x428] sm:$0xff] }
 0x5a9   :  { %4885 = vmatprep.subr.bf16.mxu0 %v5796_v39  ;;  %v5798_v12 = vcombine.high %v7086_v37, %v7090_v40  ;;  %v3415_v39 = vld [vmem:[#allocation8 + $0x4a8] sm:$0xff] }
 0x5ab   :  { %3238 = vmatpush1.bf16.msra.mxu1 %v6605_v41  ;;  %v3339_v41 = vld [vmem:[#allocation8 + $0x248] sm:$0xff] }
 0x5ac   :  { %3239 = vmatprep.subr.bf16.mxu1 %v6610_v42  ;;  %v3343_v42 = vld [vmem:[#allocation8 + $0x268] sm:$0xff] }
 0x5af   :  { %3240 = vmatpush1.bf16.msra.mxu1 %v6608_v43  ;;  %v5795_v43 = vcombine.low %v7082_v34, %v7084_v35 }
 0x5b0   :  { %3241 = vmatprep.subr.bf16.mxu1 %v6613_v44  ;;  %v5797_v44 = vcombine.low %v7086_v37, %v7090_v40  ;;  %v3426_v37 = vld [vmem:[#allocation8 + $0x500] sm:$0xff] }
 0x5b1   :  { %v3430_v40 = vld [vmem:[#allocation8 + $0x520] sm:$0xff] }
 0x5b3   :  { %3242 = vmatpush1.bf16.msra.mxu1 %v6611_v45  ;;  %v5733_v45 = vcombine.low %v3331_v30, %v3335_v31  ;;  %v5806_v31 = vcombine.high %v3403_v26, %v3407_v27 }
 0x5b4   :  { %3243 = vmatprep.subr.bf16.mxu1 %v6616_v46  ;;  %v5742_v46 = vcombine.high %v3339_v41, %v3343_v42 }
 0x5b7   :  { %3244 = vmatpush1.bf16.msra.mxu1 %v6614_v47  ;;  %v3347_v47 = vld [vmem:[#allocation8 + $0x288] sm:$0xff] }
 0x5b8   :  { %3245 = vmatprep.subr.bf16.mxu1 %v6619_v48  ;;  %v3351_v48 = vld [vmem:[#allocation8 + $0x2a8] sm:$0xff] }
 0x5bb   :  { %3246 = vmatpush1.bf16.msra.mxu1 %v6617_v49  ;;  %v5741_v49 = vcombine.low %v3339_v41, %v3343_v42  ;;  %v5805_v42 = vcombine.low %v3403_v26, %v3407_v27 }
 0x5bc   :  { %3247 = vmatprep.subr.bf16.mxu1 %v6622_v52  ;;  %v5750_v52 = vcombine.high %v3347_v47, %v3351_v48 }
 0x5bf   :  { %3248 = vmatpush1.bf16.msra.mxu1 %v6620_v57  ;;  %v5749_v57 = vcombine.low %v3347_v47, %v3351_v48  ;;  %v3418_v47 = vld [vmem:[#allocation8 + $0x4c0] sm:$0xff] }
 0x5c0   :  { %4926 = vmatprep.subr.bf16.mxu1 %v5670_v58  ;;  %v5758_v58 = vcombine.high %v3355_v55, %v3359_v56  ;;  %v3422_v48 = vld [vmem:[#allocation8 + $0x4e0] sm:$0xff] }
 0x5c1   :  { %v5820_v34 = vcombine.high %v3418_v47, %v3422_v48 }
 0x5c2   :  { %3250 = vmatmul.mubr.bf16.vlgmr.msra.gmra.mrb[12].mxu1 %v7078_v20  ;;  %v5718_v20 = vcombine.high %v3315_v15, %v3319_v16 }
 0x5c3   :  { %4927 = vmatpush1.bf16.msra.mxu1 %v5669_v61  ;;  %v5757_v61 = vcombine.low %v3355_v55, %v3359_v56 }
 0x5c4   :  { %4928 = vmatprep.subr.bf16.mxu1 %v5678_v62  ;;  %v5766_v62 = vcombine.high %v3363_v59, %v3367_v60 }
 0x5c7   :  { %4929 = vmatpush1.bf16.msra.mxu1 %v5677_v1  ;;  %v5765_v1 = vcombine.low %v3363_v59, %v3367_v60  ;;  %v5828_v59 = vcombine.high %v3426_v37, %v3430_v40 }
 0x5c8   :  { %4930 = vmatprep.subr.bf16.mxu1 %v5686_v2  ;;  %v5774_v2 = vcombine.high %v3371_v63, %v3375_v0 }
 0x5cb   :  { %4931 = vmatpush1.bf16.msra.mxu1 %v5685_v5  ;;  %v5773_v5 = vcombine.low %v3371_v63, %v3375_v0  ;;  %v3435_v63 = vld [vmem:[#allocation8 + $0x548] sm:$0xff] }
 0x5cc   :  { %4932 = vmatprep.subr.bf16.mxu1 %v5694_v6  ;;  %v5782_v6 = vcombine.high %v3379_v3, %v3383_v4  ;;  %v3439_v0 = vld [vmem:[#allocation8 + $0x568] sm:$0xff] }
 0x5cf   :  { %4933 = vmatpush1.bf16.msra.mxu1 %v5693_v9  ;;  %v5781_v9 = vcombine.low %v3379_v3, %v3383_v4  ;;  %v5838_v4 = vcombine.high %v3435_v63, %v3439_v0 }
 0x5d0   :  { %4934 = vmatprep.subr.bf16.mxu1 %v5702_v10  ;;  %v5790_v10 = vcombine.high %v3387_v7, %v3391_v8  ;;  %v3443_v7 = vld [vmem:[#allocation8 + $0x588] sm:$0xff] }
 0x5d1   :  { %v3447_v8 = vld [vmem:[#allocation8 + $0x5a8] sm:$0xff] }
 0x5d3   :  { %4935 = vmatpush1.bf16.msra.mxu1 %v5701_v13  ;;  %v7101_v13 = vld [vmem:[%s7197_s11] sm:$0xf] }
 0x5d4   :  { %4936 = vmatprep.subr.bf16.mxu1 %v5710_v14  ;;  %v2839_v14 = vrot.slane %v7101_v13, %v6975_v51  ;;  %v2843_v15 = vrot.slane %v7101_v13, %v6983_v53 }
 0x5d7   :  { %4937 = vmatpush1.bf16.msra.mxu1 %v5709_v17 }
 0x5d8   :  { %4938 = vmatprep.subr.bf16.mxu1 %v5718_v20 }
 0x5db   :  { %4939 = vmatpush1.bf16.msra.mxu1 %v5717_v25  ;;  %v3406_v25 = vld [vmem:[#allocation8 + $0x460] sm:$0xff] }
 0x5dc   :  { %4940 = vmatprep.subr.bf16.mxu1 %v5726_v28  ;;  %v5804_v30 = vcombine.high %v3402_v23, %v3406_v25  ;;  %v5803_v41 = vcombine.low %v3402_v23, %v3406_v25  ;;  %v3462_v23 = vld [vmem:[#allocation8 + $0x620] sm:$0xff]  ;;  %v3463_v25 = vld [vmem:[#allocation8 + $0x628] sm:$0xff] }
 0x5df   :  { %4941 = vmatpush1.bf16.msra.mxu1 %v5725_v33  ;;  %v3414_v33 = vld [vmem:[#allocation8 + $0x4a0] sm:$0xff] }
 0x5e0   :  { %4942 = vmatprep.subr.bf16.mxu1 %v5734_v38  ;;  %v3411_v38 = vld [vmem:[#allocation8 + $0x488] sm:$0xff]  ;;  %v5811_v55 = vcombine.low %v3410_v32, %v3414_v33 }
 0x5e1   :  { %v5813_v56 = vcombine.low %v3411_v38, %v3415_v39 }
 0x5e3   :  { %4943 = vmatpush1.bf16.msra.mxu1 %v5733_v45  ;;  %v5812_v45 = vcombine.high %v3410_v32, %v3414_v33  ;;  %v3466_v32 = vld [vmem:[#allocation8 + $0x640] sm:$0xff] }
 0x5e4   :  { %4944 = vmatprep.subr.bf16.mxu1 %v5742_v46  ;;  %v5814_v46 = vcombine.high %v3411_v38, %v3415_v39  ;;  %v3470_v33 = vld [vmem:[#allocation8 + $0x660] sm:$0xff]  ;;  %v3467_v38 = vld [vmem:[#allocation8 + $0x648] sm:$0xff] }
 0x5e5   :  { %v3471_v39 = vld [vmem:[#allocation8 + $0x668] sm:$0xff] }
 0x5e7   :  { %4945 = vmatpush1.bf16.msra.mxu1 %v5741_v49  ;;  %v3419_v49 = vld [vmem:[#allocation8 + $0x4c8] sm:$0xff] }
 0x5e8   :  { %4946 = vmatprep.subr.bf16.mxu1 %v5750_v52  ;;  %v3423_v52 = vld [vmem:[#allocation8 + $0x4e8] sm:$0xff] }
 0x5e9   :  { %v5822_v35 = vcombine.high %v3419_v49, %v3423_v52 }
 0x5eb   :  { %4947 = vmatpush1.bf16.msra.mxu1 %v5749_v57  ;;  %v5819_v57 = vcombine.low %v3418_v47, %v3422_v48  ;;  %v3474_v47 = vld [vmem:[#allocation8 + $0x680] sm:$0xff] }
 0x5ec   :  { %4948 = vmatprep.subr.bf16.mxu1 %v5758_v58  ;;  %v5821_v58 = vcombine.low %v3419_v49, %v3423_v52  ;;  %v3478_v48 = vld [vmem:[#allocation8 + $0x6a0] sm:$0xff]  ;;  %v3475_v49 = vld [vmem:[#allocation8 + $0x688] sm:$0xff] }
 0x5ed   :  { %v3479_v52 = vld [vmem:[#allocation8 + $0x6a8] sm:$0xff] }
 0x5ef   :  { %4949 = vmatpush1.bf16.msra.mxu1 %v5757_v61  ;;  %v3434_v61 = vld [vmem:[#allocation8 + $0x540] sm:$0xff] }
 0x5f0   :  { %4950 = vmatprep.subr.bf16.mxu1 %v5766_v62  ;;  %v3438_v62 = vld [vmem:[#allocation8 + $0x560] sm:$0xff] }
 0x5f1   :  { %v5836_v3 = vcombine.high %v3434_v61, %v3438_v62 }
 0x5f3   :  { %4951 = vmatpush1.bf16.msra.mxu1 %v5765_v1  ;;  %v5827_v1 = vcombine.low %v3426_v37, %v3430_v40  ;;  %v3482_v37 = vld [vmem:[#allocation8 + $0x6c0] sm:$0xff] }
 0x5f4   :  { %4952 = vmatprep.subr.bf16.mxu1 %v5774_v2  ;;  %v3486_v40 = vld [vmem:[#allocation8 + $0x6e0] sm:$0xff] }
 0x5f7   :  { %4953 = vmatpush1.bf16.msra.mxu1 %v5773_v5  ;;  %v3442_v5 = vld [vmem:[#allocation8 + $0x580] sm:$0xff] }
 0x5f8   :  { %4954 = vmatprep.subr.bf16.mxu1 %v5782_v6  ;;  %v3446_v6 = vld [vmem:[#allocation8 + $0x5a0] sm:$0xff] }
 0x5fb   :  { %4955 = vmatpush1.bf16.msra.mxu1 %v5781_v9  ;;  %v5835_v9 = vcombine.low %v3434_v61, %v3438_v62  ;;  %v3490_v61 = vld [vmem:[#allocation8 + $0x700] sm:$0xff] }
 0x5fc   :  { %4956 = vmatprep.subr.bf16.mxu1 %v5790_v10  ;;  %v5837_v10 = vcombine.low %v3435_v63, %v3439_v0  ;;  %v3494_v62 = vld [vmem:[#allocation8 + $0x720] sm:$0xff]  ;;  %v3491_v63 = vld [vmem:[#allocation8 + $0x708] sm:$0xff] }
 0x5fd   :  { %v3495_v0 = vld [vmem:[#allocation8 + $0x728] sm:$0xff] }
 0x5ff   :  { %4957 = vmatpush1.bf16.msra.mxu1 %v5789_v11  ;;  %v5844_v11 = vcombine.high %v3442_v5, %v3446_v6 }
 0x600   :  { %4967 = vmatprep.subr.bf16.mxu1 %v5798_v12  ;;  %v5846_v12 = vcombine.high %v3443_v7, %v3447_v8 }
 0x655   :  { %v3210_v16 = vpop.f32.mrb[8].mxu1 }
 0x656   :  { %v3211_v17 = vadd.f32 %v3210_v16, %v2839_v14  ;;  %v3212_v18 = vpop.f32.mrb[9].mxu1  ;;  %v3450_v14 = vld [vmem:[#allocation8 + $0x5c0] sm:$0xff]  ;;  %v3451_v16 = vld [vmem:[#allocation8 + $0x5c8] sm:$0xff] }
 0x657   :  { %v3213_v19 = vadd.f32 %v3212_v18, %v2843_v15  ;;  %v3214_v20 = vpop.f32.mrb[10].mxu1  ;;  %v3454_v15 = vld [vmem:[#allocation8 + $0x5e0] sm:$0xff]  ;;  %v5843_v18 = vcombine.low %v3442_v5, %v3446_v6 }
 0x658   :  { %v3258_v21 = vmax.f32 %v3211_v17, 0.0  ;;  %v3215_v22 = vpop.f32.mrb[11].mxu1  ;;  %v3455_v17 = vld [vmem:[#allocation8 + $0x5e8] sm:$0xff]  ;;  %v5852_v20 = vcombine.high %v3450_v14, %v3454_v15  ;;  %v5851_v26 = vcombine.low %v3450_v14, %v3454_v15  ;;  %v3498_v5 = vld [vmem:[#allocation8 + $0x740] sm:$0xff] }
 0x659   :  { %v3259_v24 = vmax.f32 %v3213_v19, 0.0  ;;  %v5845_v19 = vcombine.low %v3443_v7, %v3447_v8  ;;  %v3458_v22 = vld [vmem:[#allocation8 + $0x600] sm:$0xff]  ;;  %v5853_v27 = vcombine.low %v3451_v16, %v3455_v17  ;;  %v3499_v7 = vld [vmem:[#allocation8 + $0x748] sm:$0xff] }
 0x65a   :  { %v7109_v29 = vpack.c.bf16 %v3258_v21, %v3258_v21  ;;  %v5854_v21 = vcombine.high %v3451_v16, %v3455_v17  ;;  %v3502_v6 = vld [vmem:[#allocation8 + $0x760] sm:$0xff]  ;;  %v3503_v8 = vld [vmem:[#allocation8 + $0x768] sm:$0xff] }
 0x65b   :  { %v7107_v28 = vpack.c.bf16 %v3259_v24, %v3259_v24  ;;  %v3459_v24 = vld [vmem:[#allocation8 + $0x608] sm:$0xff]  ;;  %v3506_v14 = vld [vmem:[#allocation8 + $0x780] sm:$0xff] }
 0x65c   :  { %v3510_v15 = vld [vmem:[#allocation8 + $0x7a0] sm:$0xff]  ;;  %v3507_v16 = vld [vmem:[#allocation8 + $0x788] sm:$0xff] }
 0x65d   :  { %4876 = vmatprep.mubr.bf16.mxu0 %v7107_v28  ;;  %4958 = vmatprep.mubr.bf16.mxu1 %v7107_v28  ;;  %v3511_v17 = vld [vmem:[#allocation8 + $0x7a8] sm:$0xff] }
 0x65e   :  { %4877 = vmatmul.mubr.bf16.vlgmr.msra.gmra.mrb[12].mxu0 %v7109_v29  ;;  %4959 = vmatmul.mubr.bf16.vlgmr.msra.gmra.mrb[16].mxu1 %v7109_v29 }
 0x65f   :  { %4886 = vmatpush1.bf16.msra.mxu0 %v5795_v43  ;;  %4968 = vmatpush1.bf16.msra.mxu1 %v5797_v44  ;;  %v3427_v43 = vld [vmem:[#allocation8 + $0x508] sm:$0xff] }
 0x660   :  { %4887 = vmatprep.subr.bf16.mxu0 %v5804_v30  ;;  %4969 = vmatprep.subr.bf16.mxu1 %v5806_v31  ;;  %v3431_v44 = vld [vmem:[#allocation8 + $0x528] sm:$0xff]  ;;  %v5860_v30 = vcombine.high %v3458_v22, %v3462_v23  ;;  %v5862_v31 = vcombine.high %v3459_v24, %v3463_v25 }
 0x661   :  { %v5830_v60 = vcombine.high %v3427_v43, %v3431_v44  ;;  %v5829_v2 = vcombine.low %v3427_v43, %v3431_v44  ;;  %v3483_v43 = vld [vmem:[#allocation8 + $0x6c8] sm:$0xff] }
 0x662   :  { %v3487_v44 = vld [vmem:[#allocation8 + $0x6e8] sm:$0xff] }
 0x663   :  { %4888 = vmatpush1.bf16.msra.mxu0 %v5803_v41  ;;  %4970 = vmatpush1.bf16.msra.mxu1 %v5805_v42  ;;  %v5859_v41 = vcombine.low %v3458_v22, %v3462_v23  ;;  %v5861_v42 = vcombine.low %v3459_v24, %v3463_v25  ;;  %v3514_v22 = vld [vmem:[#allocation8 + $0x7c0] sm:$0xff]  ;;  %v3515_v24 = vld [vmem:[#allocation8 + $0x7c8] sm:$0xff] }
 0x664   :  { %4889 = vmatprep.subr.bf16.mxu0 %v5812_v45  ;;  %4971 = vmatprep.subr.bf16.mxu1 %v5814_v46  ;;  %v5868_v45 = vcombine.high %v3466_v32, %v3470_v33  ;;  %v5870_v46 = vcombine.high %v3467_v38, %v3471_v39  ;;  %v3518_v23 = vld [vmem:[#allocation8 + $0x7e0] sm:$0xff]  ;;  %v3519_v25 = vld [vmem:[#allocation8 + $0x7e8] sm:$0xff] }
 0x667   :  { %4890 = vmatpush1.bf16.msra.mxu0 %v5811_v55  ;;  %4972 = vmatpush1.bf16.msra.mxu1 %v5813_v56  ;;  %v5867_v55 = vcombine.low %v3466_v32, %v3470_v33  ;;  %v5869_v56 = vcombine.low %v3467_v38, %v3471_v39  ;;  %v5916_v32 = vcombine.high %v3514_v22, %v3518_v23  ;;  %v3268_v38 = vld [vmem:[#allocation8 + $0x10] sm:$0xff] }
 0x668   :  { %4891 = vmatprep.subr.bf16.mxu0 %v5820_v34  ;;  %4973 = vmatprep.subr.bf16.mxu1 %v5822_v35  ;;  %v5876_v34 = vcombine.high %v3474_v47, %v3478_v48  ;;  %v5878_v35 = vcombine.high %v3475_v49, %v3479_v52  ;;  %v5918_v33 = vcombine.high %v3515_v24, %v3519_v25 }
 0x66b   :  { %4892 = vmatpush1.bf16.msra.mxu0 %v5819_v57  ;;  %4974 = vmatpush1.bf16.msra.mxu1 %v5821_v58  ;;  %v5875_v57 = vcombine.low %v3474_v47, %v3478_v48  ;;  %v5877_v58 = vcombine.low %v3475_v49, %v3479_v52  ;;  %v5915_v52 = vcombine.low %v3514_v22, %v3518_v23 }
 0x66c   :  { %4893 = vmatprep.subr.bf16.mxu0 %v5828_v59  ;;  %4975 = vmatprep.subr.bf16.mxu1 %v5830_v60  ;;  %v5884_v59 = vcombine.high %v3482_v37, %v3486_v40  ;;  %v5886_v60 = vcombine.high %v3483_v43, %v3487_v44 }
 0x66f   :  { %4894 = vmatpush1.bf16.msra.mxu0 %v5827_v1  ;;  %4976 = vmatpush1.bf16.msra.mxu1 %v5829_v2  ;;  %v5883_v1 = vcombine.low %v3482_v37, %v3486_v40  ;;  %v5885_v2 = vcombine.low %v3483_v43, %v3487_v44  ;;  %v3276_v40 = vld [vmem:[#allocation8 + $0x50] sm:$0xff]  ;;  %v3277_v44 = vld [vmem:[#allocation8 + $0x58] sm:$0xff] }
 0x670   :  { %4895 = vmatprep.subr.bf16.mxu0 %v5836_v3  ;;  %4977 = vmatprep.subr.bf16.mxu1 %v5838_v4  ;;  %v5892_v3 = vcombine.high %v3490_v61, %v3494_v62  ;;  %v5894_v4 = vcombine.high %v3491_v63, %v3495_v0  ;;  %v3280_v43 = vld [vmem:[#allocation8 + $0x70] sm:$0xff] }
 0x673   :  { %4896 = vmatpush1.bf16.msra.mxu0 %v5835_v9  ;;  %4978 = vmatpush1.bf16.msra.mxu1 %v5837_v10  ;;  %v5891_v9 = vcombine.low %v3490_v61, %v3494_v62  ;;  %v5893_v10 = vcombine.low %v3491_v63, %v3495_v0  ;;  %v5680_v62 = vcombine.high %v3276_v40, %v3280_v43  ;;  %v3284_v0 = vld [vmem:[#allocation8 + $0x90] sm:$0xff] }
 0x674   :  { %4897 = vmatprep.subr.bf16.mxu0 %v5844_v11  ;;  %4979 = vmatprep.subr.bf16.mxu1 %v5846_v12  ;;  %v5900_v11 = vcombine.high %v3498_v5, %v3502_v6  ;;  %v5902_v12 = vcombine.high %v3499_v7, %v3503_v8 }
 0x677   :  { %4898 = vmatpush1.bf16.msra.mxu0 %v5843_v18  ;;  %4980 = vmatpush1.bf16.msra.mxu1 %v5845_v19  ;;  %v5899_v18 = vcombine.low %v3498_v5, %v3502_v6  ;;  %v5901_v19 = vcombine.low %v3499_v7, %v3503_v8  ;;  %v3292_v8 = vld [vmem:[#allocation8 + $0xd0] sm:$0xff] }
 0x678   :  { %4899 = vmatprep.subr.bf16.mxu0 %v5852_v20  ;;  %4981 = vmatprep.subr.bf16.mxu1 %v5854_v21  ;;  %v5908_v20 = vcombine.high %v3506_v14, %v3510_v15  ;;  %v5910_v21 = vcombine.high %v3507_v16, %v3511_v17 }
 0x67b   :  { %4900 = vmatpush1.bf16.msra.mxu0 %v5851_v26  ;;  %4982 = vmatpush1.bf16.msra.mxu1 %v5853_v27  ;;  %v2847_v26 = vrot.slane %v7101_v13, %v6997_v36  ;;  %v2851_v27 = vrot.slane %v7101_v13, %v6986_v54 }
 0x67c   :  { %4901 = vmatprep.subr.bf16.mxu0 %v5860_v30  ;;  %4983 = vmatprep.subr.bf16.mxu1 %v5862_v31  ;;  %v5907_v30 = vcombine.low %v3506_v14, %v3510_v15  ;;  %v5909_v31 = vcombine.low %v3507_v16, %v3511_v17  ;;  %v3300_v17 = vld [vmem:[#allocation8 + $0x110] sm:$0xff] }
 0x67f   :  { %4902 = vmatpush1.bf16.msra.mxu0 %v5859_v41  ;;  %4984 = vmatpush1.bf16.msra.mxu1 %v5861_v42  ;;  %v3272_v41 = vld [vmem:[#allocation8 + $0x30] sm:$0xff]  ;;  %v3269_v42 = vld [vmem:[#allocation8 + $0x18] sm:$0xff] }
 0x680   :  { %4903 = vmatprep.subr.bf16.mxu0 %v5868_v45  ;;  %4985 = vmatprep.subr.bf16.mxu1 %v5870_v46  ;;  %v3273_v45 = vld [vmem:[#allocation8 + $0x38] sm:$0xff] }
 0x681   :  { %v5673_v61 = vcombine.low %v3269_v42, %v3273_v45 }
 0x683   :  { %4904 = vmatpush1.bf16.msra.mxu0 %v5867_v55  ;;  %4986 = vmatpush1.bf16.msra.mxu1 %v5869_v56  ;;  %v5917_v55 = vcombine.low %v3515_v24, %v3519_v25  ;;  %v3308_v24 = vld [vmem:[#allocation8 + $0x150] sm:$0xff] }
 0x684   :  { %4905 = vmatprep.subr.bf16.mxu0 %v5876_v34  ;;  %4987 = vmatprep.subr.bf16.mxu1 %v5878_v35  ;;  %v5672_v34 = vcombine.high %v3268_v38, %v3272_v41  ;;  %v5674_v35 = vcombine.high %v3269_v42, %v3273_v45  ;;  %v3312_v25 = vld [vmem:[#allocation8 + $0x170] sm:$0xff]  ;;  %v3321_v42 = vld [vmem:[#allocation8 + $0x1b8] sm:$0xff] }
 0x685   :  { %v5711_v45 = vcombine.low %v3308_v24, %v3312_v25 }
 0x687   :  { %4906 = vmatpush1.bf16.msra.mxu0 %v5875_v57  ;;  %4988 = vmatpush1.bf16.msra.mxu1 %v5877_v58  ;;  %v3281_v57 = vld [vmem:[#allocation8 + $0x78] sm:$0xff] }
 0x688   :  { %4907 = vmatprep.subr.bf16.mxu0 %v5884_v59  ;;  %4989 = vmatprep.subr.bf16.mxu1 %v5886_v60  ;;  %v5671_v59 = vcombine.low %v3268_v38, %v3272_v41  ;;  %v5682_v63 = vcombine.high %v3277_v44, %v3281_v57  ;;  %v5681_v5 = vcombine.low %v3277_v44, %v3281_v57  ;;  %v3316_v38 = vld [vmem:[#allocation8 + $0x190] sm:$0xff]  ;;  %v3317_v41 = vld [vmem:[#allocation8 + $0x198] sm:$0xff] }
 0x689   :  { %v3333_v44 = vld [vmem:[#allocation8 + $0x218] sm:$0xff] }
 0x68a   :  { %v3337_v57 = vld [vmem:[#allocation8 + $0x238] sm:$0xff] }
 0x68b   :  { %4908 = vmatpush1.bf16.msra.mxu0 %v5883_v1  ;;  %4990 = vmatpush1.bf16.msra.mxu1 %v5885_v2  ;;  %v3288_v1 = vld [vmem:[#allocation8 + $0xb0] sm:$0xff]  ;;  %v3285_v2 = vld [vmem:[#allocation8 + $0x98] sm:$0xff] }
 0x68c   :  { %4909 = vmatprep.subr.bf16.mxu0 %v5892_v3  ;;  %4991 = vmatprep.subr.bf16.mxu1 %v5894_v4  ;;  %v3289_v3 = vld [vmem:[#allocation8 + $0xb8] sm:$0xff]  ;;  %v5679_v4 = vcombine.low %v3276_v40, %v3280_v43  ;;  %v5688_v6 = vcombine.high %v3284_v0, %v3288_v1  ;;  %v3332_v40 = vld [vmem:[#allocation8 + $0x210] sm:$0xff] }
 0x68d   :  { %v5690_v7 = vcombine.high %v3285_v2, %v3289_v3  ;;  %v5689_v14 = vcombine.low %v3285_v2, %v3289_v3  ;;  %v3336_v43 = vld [vmem:[#allocation8 + $0x230] sm:$0xff]  ;;  %v3341_v2 = vld [vmem:[#allocation8 + $0x258] sm:$0xff] }
 0x68e   :  { %v3345_v3 = vld [vmem:[#allocation8 + $0x278] sm:$0xff] }
 0x68f   :  { %4910 = vmatpush1.bf16.msra.mxu0 %v5891_v9  ;;  %4992 = vmatpush1.bf16.msra.mxu1 %v5893_v10  ;;  %v3296_v9 = vld [vmem:[#allocation8 + $0xf0] sm:$0xff]  ;;  %v3293_v10 = vld [vmem:[#allocation8 + $0xd8] sm:$0xff] }
 0x690   :  { %4911 = vmatprep.subr.bf16.mxu0 %v5900_v11  ;;  %4993 = vmatprep.subr.bf16.mxu1 %v5902_v12  ;;  %v3297_v11 = vld [vmem:[#allocation8 + $0xf8] sm:$0xff]  ;;  %v5687_v12 = vcombine.low %v3284_v0, %v3288_v1  ;;  %v5696_v15 = vcombine.high %v3292_v8, %v3296_v9  ;;  %v3340_v0 = vld [vmem:[#allocation8 + $0x250] sm:$0xff] }
 0x691   :  { %v5698_v16 = vcombine.high %v3293_v10, %v3297_v11  ;;  %v3344_v1 = vld [vmem:[#allocation8 + $0x270] sm:$0xff] }
 0x693   :  { %4912 = vmatpush1.bf16.msra.mxu0 %v5899_v18  ;;  %4994 = vmatpush1.bf16.msra.mxu1 %v5901_v19  ;;  %v3304_v18 = vld [vmem:[#allocation8 + $0x130] sm:$0xff]  ;;  %v3305_v19 = vld [vmem:[#allocation8 + $0x138] sm:$0xff] }
 0x694   :  { %4913 = vmatprep.subr.bf16.mxu0 %v5908_v20  ;;  %4995 = vmatprep.subr.bf16.mxu1 %v5910_v21  ;;  %v5695_v20 = vcombine.low %v3292_v8, %v3296_v9  ;;  %v5697_v21 = vcombine.low %v3293_v10, %v3297_v11  ;;  %v5704_v22 = vcombine.high %v3300_v17, %v3304_v18  ;;  %v3348_v8 = vld [vmem:[#allocation8 + $0x290] sm:$0xff]  ;;  %v3349_v10 = vld [vmem:[#allocation8 + $0x298] sm:$0xff] }
 0x695   :  { %v3251_v39 = vpop.f32.mrb[12].mxu1  ;;  %v3352_v9 = vld [vmem:[#allocation8 + $0x2b0] sm:$0xff]  ;;  %v3353_v11 = vld [vmem:[#allocation8 + $0x2b8] sm:$0xff] }
 0x696   :  { %v3252_v46 = vadd.f32 %v3251_v39, %v2847_v26  ;;  %v3253_v47 = vpop.f32.mrb[13].mxu1  ;;  %v3309_v26 = vld [vmem:[#allocation8 + $0x158] sm:$0xff]  ;;  %v3320_v39 = vld [vmem:[#allocation8 + $0x1b0] sm:$0xff] }
 0x697   :  { %v3254_v48 = vadd.f32 %v3253_v47, %v2851_v27  ;;  %v3255_v49 = vpop.f32.mrb[14].mxu1  ;;  %4914 = vmatpush1.bf16.msra.mxu0 %v5907_v30  ;;  %4996 = vmatpush1.bf16.msra.mxu1 %v5909_v31  ;;  %v3313_v27 = vld [vmem:[#allocation8 + $0x178] sm:$0xff]  ;;  %v5703_v30 = vcombine.low %v3300_v17, %v3304_v18  ;;  %v5720_v47 = vcombine.high %v3316_v38, %v3320_v39  ;;  %v3356_v17 = vld [vmem:[#allocation8 + $0x2d0] sm:$0xff] }
 0x698   :  { %v3260_v13 = vmax.f32 %v3252_v46, 0.0  ;;  %v3256_v56 = vpop.f32.mrb[15].mxu1  ;;  %4915 = vmatprep.subr.bf16.mxu0 %v5916_v32  ;;  %4997 = vmatprep.subr.bf16.mxu1 %v5918_v33  ;;  %v5712_v32 = vcombine.high %v3308_v24, %v3312_v25  ;;  %v5714_v33 = vcombine.high %v3309_v26, %v3313_v27  ;;  %v5713_v46 = vcombine.low %v3309_v26, %v3313_v27  ;;  %v3324_v49 = vld [vmem:[#allocation8 + $0x1d0] sm:$0xff]  ;;  %v3365_v26 = vld [vmem:[#allocation8 + $0x318] sm:$0xff] }
 0x699   :  { %v3261_v37 = vmax.f32 %v3254_v48, 0.0  ;;  %v5722_v48 = vcombine.high %v3317_v41, %v3321_v42  ;;  %v5719_v56 = vcombine.low %v3316_v38, %v3320_v39  ;;  %v3360_v18 = vld [vmem:[#allocation8 + $0x2f0] sm:$0xff]  ;;  %v3369_v27 = vld [vmem:[#allocation8 + $0x338] sm:$0xff] }
 0x69a   :  { %v7127_v60 = vpack.c.bf16 %v3260_v13, %v3260_v13  ;;  %v3329_v13 = vld [vmem:[#allocation8 + $0x1f8] sm:$0xff]  ;;  %v3364_v24 = vld [vmem:[#allocation8 + $0x310] sm:$0xff] }
 0x69b   :  { %v7125_v58 = vpack.c.bf16 %v3261_v37, %v3261_v37  ;;  %4916 = vmatpush1.bf16.msra.mxu0 %v5915_v52  ;;  %4998 = vmatpush1.bf16.msra.mxu1 %v5917_v55  ;;  %v3328_v52 = vld [vmem:[#allocation8 + $0x1f0] sm:$0xff]  ;;  %v3325_v55 = vld [vmem:[#allocation8 + $0x1d8] sm:$0xff] }
 0x69c   :  { %5008 = vmatprep.subr.bf16.mxu0 %v5672_v34  ;;  %5090 = vmatprep.subr.bf16.mxu1 %v5674_v35  ;;  %v5721_v34 = vcombine.low %v3317_v41, %v3321_v42  ;;  %v5728_v35 = vcombine.high %v3324_v49, %v3328_v52  ;;  %v5730_v37 = vcombine.high %v3325_v55, %v3329_v13  ;;  %v3368_v25 = vld [vmem:[#allocation8 + $0x330] sm:$0xff]  ;;  %v3373_v41 = vld [vmem:[#allocation8 + $0x358] sm:$0xff] }
 0x69d   :  { %4917 = vmatprep.mubr.bf16.mxu0 %v7125_v58  ;;  %4999 = vmatprep.mubr.bf16.mxu1 %v7125_v58  ;;  %v3372_v38 = vld [vmem:[#allocation8 + $0x350] sm:$0xff]  ;;  %v3377_v42 = vld [vmem:[#allocation8 + $0x378] sm:$0xff] }
 0x69e   :  { %4918 = vmatmul.mubr.bf16.vlgmr.msra.gmra.mrb[12].mxu0 %v7127_v60  ;;  %5000 = vmatmul.mubr.bf16.vlgmr.msra.gmra.mrb[16].mxu1 %v7127_v60  ;;  %v3376_v39 = vld [vmem:[#allocation8 + $0x370] sm:$0xff] }
 0x69f   :  { %5009 = vmatpush1.bf16.msra.mxu0 %v5671_v59  ;;  %5040 = vmatprep.mubr.bf16.mxu0 %v7107_v28  ;;  %v5727_v59 = vcombine.low %v3324_v49, %v3328_v52  ;;  %v3380_v49 = vld [vmem:[#allocation8 + $0x390] sm:$0xff] }
 0x6a0   :  { %5091 = vmatpush1.bf16.msra.mxu1 %v5673_v61  ;;  %5122 = vmatprep.mubr.bf16.mxu1 %v7107_v28  ;;  %v3301_v28 = vld [vmem:[#allocation8 + $0x118] sm:$0xff]  ;;  %v5729_v61 = vcombine.low %v3325_v55, %v3329_v13  ;;  %v3384_v52 = vld [vmem:[#allocation8 + $0x3b0] sm:$0xff] }
 0x6a1   :  { %5010 = vmatprep.subr.bf16.mxu0 %v5680_v62  ;;  %5092 = vmatprep.subr.bf16.mxu1 %v5682_v63  ;;  %v5706_v23 = vcombine.high %v3301_v28, %v3305_v19  ;;  %v5705_v31 = vcombine.low %v3301_v28, %v3305_v19  ;;  %v5736_v62 = vcombine.high %v3332_v40, %v3336_v43  ;;  %v3357_v28 = vld [vmem:[#allocation8 + $0x2d8] sm:$0xff] }
 0x6a2   :  { %v5738_v63 = vcombine.high %v3333_v44, %v3337_v57  ;;  %v3361_v19 = vld [vmem:[#allocation8 + $0x2f8] sm:$0xff] }
 0x6a3   :  { %5011 = vmatpush1.bf16.msra.mxu0 %v5679_v4  ;;  %v5735_v4 = vcombine.low %v3332_v40, %v3336_v43  ;;  %v3381_v55 = vld [vmem:[#allocation8 + $0x398] sm:$0xff]  ;;  %v3388_v40 = vld [vmem:[#allocation8 + $0x3d0] sm:$0xff] }
 0x6a4   :  { %5093 = vmatpush1.bf16.msra.mxu1 %v5681_v5  ;;  %5012 = vmatprep.subr.bf16.mxu0 %v5688_v6  ;;  %v5737_v5 = vcombine.low %v3333_v44, %v3337_v57  ;;  %v5744_v6 = vcombine.high %v3340_v0, %v3344_v1  ;;  %v3385_v13 = vld [vmem:[#allocation8 + $0x3b8] sm:$0xff]  ;;  %v3392_v43 = vld [vmem:[#allocation8 + $0x3f0] sm:$0xff] }
 0x6a5   :  { %5094 = vmatprep.subr.bf16.mxu1 %v5690_v7  ;;  %v5746_v7 = vcombine.high %v3341_v2, %v3345_v3  ;;  %v3389_v44 = vld [vmem:[#allocation8 + $0x3d8] sm:$0xff] }
 0x6a6   :  { %v3393_v57 = vld [vmem:[#allocation8 + $0x3f8] sm:$0xff] }
 0x6a7   :  { %5013 = vmatpush1.bf16.msra.mxu0 %v5687_v12  ;;  %v5743_v12 = vcombine.low %v3340_v0, %v3344_v1  ;;  %v3396_v0 = vld [vmem:[#allocation8 + $0x410] sm:$0xff] }
 0x6a8   :  { %5095 = vmatpush1.bf16.msra.mxu1 %v5689_v14  ;;  %5014 = vmatprep.subr.bf16.mxu0 %v5696_v15  ;;  %v5745_v14 = vcombine.low %v3341_v2, %v3345_v3  ;;  %v5752_v15 = vcombine.high %v3348_v8, %v3352_v9  ;;  %v3400_v1 = vld [vmem:[#allocation8 + $0x430] sm:$0xff]  ;;  %v3397_v2 = vld [vmem:[#allocation8 + $0x418] sm:$0xff] }
 0x6a9   :  { %5096 = vmatprep.subr.bf16.mxu1 %v5698_v16  ;;  %v5754_v16 = vcombine.high %v3349_v10, %v3353_v11  ;;  %v3401_v3 = vld [vmem:[#allocation8 + $0x438] sm:$0xff] }
 0x6ab   :  { %5015 = vmatpush1.bf16.msra.mxu0 %v5695_v20  ;;  %v5751_v20 = vcombine.low %v3348_v8, %v3352_v9  ;;  %v3404_v8 = vld [vmem:[#allocation8 + $0x450] sm:$0xff] }
 0x6ac   :  { %5097 = vmatpush1.bf16.msra.mxu1 %v5697_v21  ;;  %5016 = vmatprep.subr.bf16.mxu0 %v5704_v22  ;;  %v5753_v21 = vcombine.low %v3349_v10, %v3353_v11  ;;  %v5760_v22 = vcombine.high %v3356_v17, %v3360_v18  ;;  %v3408_v9 = vld [vmem:[#allocation8 + $0x470] sm:$0xff]  ;;  %v5799_v10 = vcombine.low %v3396_v0, %v3400_v1  ;;  %v3405_v11 = vld [vmem:[#allocation8 + $0x458] sm:$0xff] }
 0x6ad   :  { %5098 = vmatprep.subr.bf16.mxu1 %v5706_v23  ;;  %v5762_v23 = vcombine.high %v3357_v28, %v3361_v19 }
 0x6af   :  { %5017 = vmatpush1.bf16.msra.mxu0 %v5703_v30  ;;  %v5759_v30 = vcombine.low %v3356_v17, %v3360_v18  ;;  %v3416_v17 = vld [vmem:[#allocation8 + $0x4b0] sm:$0xff] }
 0x6b0   :  { %5099 = vmatpush1.bf16.msra.mxu1 %v5705_v31  ;;  %5018 = vmatprep.subr.bf16.mxu0 %v5712_v32  ;;  %v5761_v31 = vcombine.low %v3357_v28, %v3361_v19  ;;  %v5768_v32 = vcombine.high %v3364_v24, %v3368_v25  ;;  %v3413_v28 = vld [vmem:[#allocation8 + $0x498] sm:$0xff] }
 0x6b1   :  { %5100 = vmatprep.subr.bf16.mxu1 %v5714_v33  ;;  %v5770_v33 = vcombine.high %v3365_v26, %v3369_v27  ;;  %v3417_v19 = vld [vmem:[#allocation8 + $0x4b8] sm:$0xff] }
 0x6b3   :  { %5019 = vmatpush1.bf16.msra.mxu0 %v5711_v45  ;;  %v5767_v45 = vcombine.low %v3364_v24, %v3368_v25  ;;  %v3420_v24 = vld [vmem:[#allocation8 + $0x4d0] sm:$0xff] }
 0x6b4   :  { %5101 = vmatpush1.bf16.msra.mxu1 %v5713_v46  ;;  %5020 = vmatprep.subr.bf16.mxu0 %v5720_v47  ;;  %v5769_v46 = vcombine.low %v3365_v26, %v3369_v27  ;;  %v5776_v47 = vcombine.high %v3372_v38, %v3376_v39  ;;  %v3424_v25 = vld [vmem:[#allocation8 + $0x4f0] sm:$0xff]  ;;  %v3421_v26 = vld [vmem:[#allocation8 + $0x4d8] sm:$0xff] }
 0x6b5   :  { %5102 = vmatprep.subr.bf16.mxu1 %v5722_v48  ;;  %v5778_v48 = vcombine.high %v3373_v41, %v3377_v42  ;;  %v3425_v27 = vld [vmem:[#allocation8 + $0x4f8] sm:$0xff] }
 0x6b7   :  { %5021 = vmatpush1.bf16.msra.mxu0 %v5719_v56  ;;  %v5775_v56 = vcombine.low %v3372_v38, %v3376_v39  ;;  %v3432_v38 = vld [vmem:[#allocation8 + $0x530] sm:$0xff]  ;;  %v3429_v39 = vld [vmem:[#allocation8 + $0x518] sm:$0xff] }
 0x6b8   :  { %5103 = vmatpush1.bf16.msra.mxu1 %v5721_v34  ;;  %5022 = vmatprep.subr.bf16.mxu0 %v5728_v35  ;;  %v5777_v34 = vcombine.low %v3373_v41, %v3377_v42  ;;  %v5784_v35 = vcombine.high %v3380_v49, %v3384_v52  ;;  %v3433_v41 = vld [vmem:[#allocation8 + $0x538] sm:$0xff]  ;;  %v5825_v42 = vcombine.low %v3421_v26, %v3425_v27 }
 0x6b9   :  { %5104 = vmatprep.subr.bf16.mxu1 %v5730_v37  ;;  %v5786_v37 = vcombine.high %v3381_v55, %v3385_v13 }
 0x6bb   :  { %5023 = vmatpush1.bf16.msra.mxu0 %v5727_v59  ;;  %v5783_v59 = vcombine.low %v3380_v49, %v3384_v52  ;;  %v3437_v49 = vld [vmem:[#allocation8 + $0x558] sm:$0xff] }
 0x6bc   :  { %5105 = vmatpush1.bf16.msra.mxu1 %v5729_v61  ;;  %5024 = vmatprep.subr.bf16.mxu0 %v5736_v62  ;;  %v5785_v61 = vcombine.low %v3381_v55, %v3385_v13  ;;  %v5792_v62 = vcombine.high %v3388_v40, %v3392_v43  ;;  %v3441_v52 = vld [vmem:[#allocation8 + $0x578] sm:$0xff]  ;;  %v5833_v13 = vcombine.low %v3429_v39, %v3433_v41 }
 0x6bd   :  { %5106 = vmatprep.subr.bf16.mxu1 %v5738_v63  ;;  %v5794_v63 = vcombine.high %v3389_v44, %v3393_v57 }
 0x6bf   :  { %5025 = vmatpush1.bf16.msra.mxu0 %v5735_v4  ;;  %v5791_v4 = vcombine.low %v3388_v40, %v3392_v43  ;;  %v3445_v40 = vld [vmem:[#allocation8 + $0x598] sm:$0xff] }
 0x6c0   :  { %5107 = vmatpush1.bf16.msra.mxu1 %v5737_v5  ;;  %5026 = vmatprep.subr.bf16.mxu0 %v5744_v6  ;;  %v5793_v5 = vcombine.low %v3389_v44, %v3393_v57  ;;  %v5800_v6 = vcombine.high %v3396_v0, %v3400_v1  ;;  %v3449_v43 = vld [vmem:[#allocation8 + $0x5b8] sm:$0xff]  ;;  %v5841_v57 = vcombine.low %v3437_v49, %v3441_v52 }
 0x6c1   :  { %5108 = vmatprep.subr.bf16.mxu1 %v5746_v7  ;;  %v5802_v7 = vcombine.high %v3397_v2, %v3401_v3  ;;  %v3453_v0 = vld [vmem:[#allocation8 + $0x5d8] sm:$0xff] }
 0x6c2   :  { %v3457_v1 = vld [vmem:[#allocation8 + $0x5f8] sm:$0xff] }
 0x6c3   :  { %5027 = vmatpush1.bf16.msra.mxu0 %v5743_v12  ;;  %v3409_v12 = vld [vmem:[#allocation8 + $0x478] sm:$0xff] }
 0x6c4   :  { %5109 = vmatpush1.bf16.msra.mxu1 %v5745_v14  ;;  %5028 = vmatprep.subr.bf16.mxu0 %v5752_v15  ;;  %v5801_v14 = vcombine.low %v3397_v2, %v3401_v3  ;;  %v5808_v15 = vcombine.high %v3404_v8, %v3408_v9  ;;  %v5810_v18 = vcombine.high %v3405_v11, %v3409_v12 }
 0x6c5   :  { %5110 = vmatprep.subr.bf16.mxu1 %v5754_v16  ;;  %v3412_v16 = vld [vmem:[#allocation8 + $0x490] sm:$0xff]  ;;  %v5849_v3 = vcombine.low %v3445_v40, %v3449_v43 }
 0x6c7   :  { %5029 = vmatpush1.bf16.msra.mxu0 %v5751_v20  ;;  %v5807_v20 = vcombine.low %v3404_v8, %v3408_v9  ;;  %v3461_v8 = vld [vmem:[#allocation8 + $0x618] sm:$0xff] }
 0x6c8   :  { %5111 = vmatpush1.bf16.msra.mxu1 %v5753_v21  ;;  %5030 = vmatprep.subr.bf16.mxu0 %v5760_v22  ;;  %v5809_v21 = vcombine.low %v3405_v11, %v3409_v12  ;;  %v5816_v22 = vcombine.high %v3412_v16, %v3416_v17  ;;  %v3465_v9 = vld [vmem:[#allocation8 + $0x638] sm:$0xff]  ;;  %v5857_v11 = vcombine.low %v3453_v0, %v3457_v1 }
 0x6c9   :  { %5112 = vmatprep.subr.bf16.mxu1 %v5762_v23  ;;  %v5818_v23 = vcombine.high %v3413_v28, %v3417_v19 }
 0x6cb   :  { %5031 = vmatpush1.bf16.msra.mxu0 %v5759_v30  ;;  %v5815_v30 = vcombine.low %v3412_v16, %v3416_v17  ;;  %v3472_v16 = vld [vmem:[#allocation8 + $0x670] sm:$0xff]  ;;  %v3469_v17 = vld [vmem:[#allocation8 + $0x658] sm:$0xff] }
 0x6cc   :  { %5113 = vmatpush1.bf16.msra.mxu1 %v5761_v31  ;;  %5032 = vmatprep.subr.bf16.mxu0 %v5768_v32  ;;  %v5824_v31 = vcombine.high %v3420_v24, %v3424_v25  ;;  %v5826_v32 = vcombine.high %v3421_v26, %v3425_v27 }
 0x6cd   :  { %5114 = vmatprep.subr.bf16.mxu1 %v5770_v33  ;;  %v3428_v33 = vld [vmem:[#allocation8 + $0x510] sm:$0xff] }
 0x6ce   :  { %v5831_v55 = vcombine.low %v3428_v33, %v3432_v38 }
 0x6cf   :  { %5033 = vmatpush1.bf16.msra.mxu0 %v5767_v45  ;;  %v5832_v45 = vcombine.high %v3428_v33, %v3432_v38  ;;  %v3485_v33 = vld [vmem:[#allocation8 + $0x6d8] sm:$0xff] }
 0x6d0   :  { %5115 = vmatpush1.bf16.msra.mxu1 %v5769_v46  ;;  %5034 = vmatprep.subr.bf16.mxu0 %v5776_v47  ;;  %v5834_v46 = vcombine.high %v3429_v39, %v3433_v41  ;;  %v3436_v47 = vld [vmem:[#allocation8 + $0x550] sm:$0xff]  ;;  %v3489_v38 = vld [vmem:[#allocation8 + $0x6f8] sm:$0xff] }
 0x6d1   :  { %5116 = vmatprep.subr.bf16.mxu1 %v5778_v48  ;;  %v3440_v48 = vld [vmem:[#allocation8 + $0x570] sm:$0xff] }
 0x6d2   :  { %v5839_v44 = vcombine.low %v3436_v47, %v3440_v48 }
 0x6d3   :  { %5035 = vmatpush1.bf16.msra.mxu0 %v5775_v56  ;;  %v5840_v56 = vcombine.high %v3436_v47, %v3440_v48  ;;  %v3493_v47 = vld [vmem:[#allocation8 + $0x718] sm:$0xff] }
 0x6d4   :  { %5117 = vmatpush1.bf16.msra.mxu1 %v5777_v34  ;;  %5036 = vmatprep.subr.bf16.mxu0 %v5784_v35  ;;  %v5842_v34 = vcombine.high %v3437_v49, %v3441_v52  ;;  %v3444_v35 = vld [vmem:[#allocation8 + $0x590] sm:$0xff]  ;;  %v3497_v48 = vld [vmem:[#allocation8 + $0x738] sm:$0xff]  ;;  %v5889_v52 = vcombine.low %v3485_v33, %v3489_v38 }
 0x6d5   :  { %5118 = vmatprep.subr.bf16.mxu1 %v5786_v37  ;;  %v3448_v37 = vld [vmem:[#allocation8 + $0x5b0] sm:$0xff] }
 0x6d6   :  { %v5847_v2 = vcombine.low %v3444_v35, %v3448_v37 }
 0x6d7   :  { %5037 = vmatpush1.bf16.msra.mxu0 %v5783_v59  ;;  %v5848_v59 = vcombine.high %v3444_v35, %v3448_v37  ;;  %v3501_v35 = vld [vmem:[#allocation8 + $0x758] sm:$0xff] }
 0x6d8   :  { %5119 = vmatpush1.bf16.msra.mxu1 %v5785_v61  ;;  %5038 = vmatprep.subr.bf16.mxu0 %v5792_v62  ;;  %v5850_v61 = vcombine.high %v3445_v40, %v3449_v43  ;;  %v3452_v62 = vld [vmem:[#allocation8 + $0x5d0] sm:$0xff]  ;;  %v3505_v37 = vld [vmem:[#allocation8 + $0x778] sm:$0xff]  ;;  %v5897_v43 = vcombine.low %v3493_v47, %v3497_v48 }
 0x6d9   :  { %5120 = vmatprep.subr.bf16.mxu1 %v5794_v63  ;;  %v3456_v63 = vld [vmem:[#allocation8 + $0x5f0] sm:$0xff] }
 0x6db   :  { %5039 = vmatpush1.bf16.msra.mxu0 %v5791_v4  ;;  %v5856_v4 = vcombine.high %v3452_v62, %v3456_v63 }
 0x6dc   :  { %5121 = vmatpush1.bf16.msra.mxu1 %v5793_v5  ;;  %5049 = vmatprep.subr.bf16.mxu0 %v5800_v6  ;;  %v5858_v5 = vcombine.high %v3453_v0, %v3457_v1  ;;  %v3460_v6 = vld [vmem:[#allocation8 + $0x610] sm:$0xff]  ;;  %v5905_v1 = vcombine.low %v3501_v35, %v3505_v37 }
 0x6dd   :  { %5131 = vmatprep.subr.bf16.mxu1 %v5802_v7  ;;  %v3464_v7 = vld [vmem:[#allocation8 + $0x630] sm:$0xff] }
 0x6de   :  { %5041 = vmatmul.mubr.bf16.vlgmr.msra.gmra.mrb[16].mxu0 %v7109_v29  ;;  %v5864_v12 = vcombine.high %v3460_v6, %v3464_v7 }
 0x6df   :  { %5123 = vmatmul.mubr.bf16.vlgmr.msra.gmra.mrb[20].mxu1 %v7109_v29  ;;  %5050 = vmatpush1.bf16.msra.mxu0 %v5799_v10  ;;  %v5817_v29 = vcombine.low %v3413_v28, %v3417_v19  ;;  %v5855_v10 = vcombine.low %v3452_v62, %v3456_v63  ;;  %v5863_v28 = vcombine.low %v3460_v6, %v3464_v7  ;;  %v3509_v62 = vld [vmem:[#allocation8 + $0x798] sm:$0xff] }
 0x6e0   :  { %5081 = vmatprep.mubr.bf16.mxu0 %v7125_v58  ;;  %5132 = vmatpush1.bf16.msra.mxu1 %v5801_v14  ;;  %v5866_v14 = vcombine.high %v3461_v8, %v3465_v9  ;;  %v5865_v19 = vcombine.low %v3461_v8, %v3465_v9  ;;  %v3513_v63 = vld [vmem:[#allocation8 + $0x7b8] sm:$0xff] }
 0x6e1   :  { %5163 = vmatprep.mubr.bf16.mxu1 %v7125_v58  ;;  %5051 = vmatprep.subr.bf16.mxu0 %v5808_v15  ;;  %v5823_v58 = vcombine.low %v3420_v24, %v3424_v25  ;;  %v3468_v15 = vld [vmem:[#allocation8 + $0x650] sm:$0xff]  ;;  %v3477_v24 = vld [vmem:[#allocation8 + $0x698] sm:$0xff]  ;;  %v5913_v9 = vcombine.low %v3509_v62, %v3513_v63 }
 0x6e2   :  { %5133 = vmatprep.subr.bf16.mxu1 %v5810_v18  ;;  %v3473_v18 = vld [vmem:[#allocation8 + $0x678] sm:$0xff]  ;;  %v5871_v26 = vcombine.low %v3468_v15, %v3472_v16 }
 0x6e3   :  { %5052 = vmatpush1.bf16.msra.mxu0 %v5807_v20  ;;  %v5872_v20 = vcombine.high %v3468_v15, %v3472_v16  ;;  %v3481_v25 = vld [vmem:[#allocation8 + $0x6b8] sm:$0xff]  ;;  %v5873_v27 = vcombine.low %v3469_v17, %v3473_v18  ;;  %v7144_v15 = vld [vmem:[%s7199_s13] sm:$0xff]  ;;  %s6811_s13 = smov [#allocation11]  }
 0x6e4   :  { %5134 = vmatpush1.bf16.msra.mxu1 %v5809_v21  ;;  %5053 = vmatprep.subr.bf16.mxu0 %v5816_v22  ;;  %v5874_v21 = vcombine.high %v3469_v17, %v3473_v18  ;;  %v3476_v22 = vld [vmem:[#allocation8 + $0x690] sm:$0xff]  ;;  %v5881_v41 = vcombine.low %v3477_v24, %v3481_v25  ;;  %v3517_v6 = vld [vmem:[#allocation8 + $0x7d8] sm:$0xff]  ;;  %v3527_v16 = vrot.slane %v7144_v15, %v6975_v51  ;;  %s5246_s20 = sshll.u32 %s6811_s13, 4  ;;  %s5247_s20 = int_to_ptr.vmem [resolvable:$true] %s5246_s20 }
 0x6e5   :  { %5135 = vmatprep.subr.bf16.mxu1 %v5818_v23  ;;  %v3480_v23 = vld [vmem:[#allocation8 + $0x6b0] sm:$0xff]  ;;  %v3521_v7 = vld [vmem:[#allocation8 + $0x7f8] sm:$0xff]  ;;  %v3535_v17 = vrot.slane %v7144_v15, %v6997_v36  ;;  %v3531_v18 = vrot.slane %v7144_v15, %v6983_v53  ;;  %s6745_s26 = scalar_lea.vmem %s5247_s20, 128  ;;  %p6750_p5 = scmp.lt.s32.totalorder %s5247_s20, %s5247_s20 }
 0x6e6   :  { %v5879_v39 = vcombine.low %v3476_v22, %v3480_v23  ;;  %p6746_p4 = scmp.ne.s32.totalorder %s5247_s20, %s6745_s26  ;;  %p6751_p6 = scmp.lt.s32.totalorder %s6745_s26, %s6745_s26 }
 0x6e7   :  { %5054 = vmatpush1.bf16.msra.mxu0 %v5815_v30  ;;  %v5880_v30 = vcombine.high %v3476_v22, %v3480_v23 }
 0x6e8   :  { %5136 = vmatpush1.bf16.msra.mxu1 %v5817_v29  ;;  %5055 = vmatprep.subr.bf16.mxu0 %v5824_v31  ;;  %v5882_v29 = vcombine.high %v3477_v24, %v3481_v25  ;;  %v3484_v31 = vld [vmem:[#allocation8 + $0x6d0] sm:$0xff]  ;;  %p6752_p7 = por %p6751_p6, %p6750_p5 }
 0x6e9   :  { %5137 = vmatprep.subr.bf16.mxu1 %v5826_v32  ;;  %v3488_v32 = vld [vmem:[#allocation8 + $0x6f0] sm:$0xff] }
 0x6ea   :  { %v5887_v49 = vcombine.low %v3484_v31, %v3488_v32  ;;  %p6753_p8 = pnand %p6752_p7, %p6746_p4 }
 0x6eb   :  { %5056 = vmatpush1.bf16.msra.mxu0 %v5823_v58  ;;  %v5888_v58 = vcombine.high %v3484_v31, %v3488_v32 }
 0x6ec   :  { %5138 = vmatpush1.bf16.msra.mxu1 %v5825_v42  ;;  %5057 = vmatprep.subr.bf16.mxu0 %v5832_v45  ;;  %v5890_v42 = vcombine.high %v3485_v33, %v3489_v38  ;;  %v3492_v45 = vld [vmem:[#allocation8 + $0x710] sm:$0xff] }
 0x6ed   :  { %5139 = vmatprep.subr.bf16.mxu1 %v5834_v46  ;;  %v3496_v46 = vld [vmem:[#allocation8 + $0x730] sm:$0xff] }
 0x6ee   :  { %v5895_v40 = vcombine.low %v3492_v45, %v3496_v46 }
 0x6ef   :  { %5058 = vmatpush1.bf16.msra.mxu0 %v5831_v55  ;;  %v5896_v55 = vcombine.high %v3492_v45, %v3496_v46 }
 0x6f0   :  { %5140 = vmatpush1.bf16.msra.mxu1 %v5833_v13  ;;  %5059 = vmatprep.subr.bf16.mxu0 %v5840_v56  ;;  %v5898_v13 = vcombine.high %v3493_v47, %v3497_v48  ;;  %v3500_v56 = vld [vmem:[#allocation8 + $0x750] sm:$0xff] }
 0x6f1   :  { %5141 = vmatprep.subr.bf16.mxu1 %v5842_v34  ;;  %v3504_v34 = vld [vmem:[#allocation8 + $0x770] sm:$0xff] }
 0x6f2   :  { %v5903_v0 = vcombine.low %v3500_v56, %v3504_v34 }
 0x6f3   :  { %5060 = vmatpush1.bf16.msra.mxu0 %v5839_v44  ;;  %v5904_v44 = vcombine.high %v3500_v56, %v3504_v34 }
 0x6f4   :  { %5142 = vmatpush1.bf16.msra.mxu1 %v5841_v57  ;;  %5061 = vmatprep.subr.bf16.mxu0 %v5848_v59  ;;  %v5906_v57 = vcombine.high %v3501_v35, %v3505_v37  ;;  %v3508_v59 = vld [vmem:[#allocation8 + $0x790] sm:$0xff] }
 0x6f5   :  { %5143 = vmatprep.subr.bf16.mxu1 %v5850_v61  ;;  %v3512_v61 = vld [vmem:[#allocation8 + $0x7b0] sm:$0xff] }
 0x6f6   :  { %v5911_v8 = vcombine.low %v3508_v59, %v3512_v61 }
 0x6f7   :  { %5062 = vmatpush1.bf16.msra.mxu0 %v5847_v2  ;;  %v5912_v2 = vcombine.high %v3508_v59, %v3512_v61 }
 0x6f8   :  { %5144 = vmatpush1.bf16.msra.mxu1 %v5849_v3  ;;  %5063 = vmatprep.subr.bf16.mxu0 %v5856_v4  ;;  %v5914_v3 = vcombine.high %v3509_v62, %v3513_v63  ;;  %v3516_v4 = vld [vmem:[#allocation8 + $0x7d0] sm:$0xff] }
 0x6f9   :  { %5145 = vmatprep.subr.bf16.mxu1 %v5858_v5  ;;  %v3520_v5 = vld [vmem:[#allocation8 + $0x7f0] sm:$0xff] }
 0x6fb   :  { %5064 = vmatpush1.bf16.msra.mxu0 %v5855_v10  ;;  %v5920_v10 = vcombine.high %v3516_v4, %v3520_v5 }
 0x6fc   :  { %5146 = vmatpush1.bf16.msra.mxu1 %v5857_v11  ;;  %5065 = vmatprep.subr.bf16.mxu0 %v5864_v12  ;;  %v5922_v11 = vcombine.high %v3517_v6, %v3521_v7  ;;  %v5919_v12 = vcombine.low %v3516_v4, %v3520_v5 }
 0x6fd   :  { %5147 = vmatprep.subr.bf16.mxu1 %v5866_v14  ;;  %v5921_v14 = vcombine.low %v3517_v6, %v3521_v7 }
 0x6ff   :  { %5066 = vmatpush1.bf16.msra.mxu0 %v5863_v28  ;;  %v3539_v28 = vrot.slane %v7144_v15, %v6986_v54 }
 0x700   :  { %5148 = vmatpush1.bf16.msra.mxu1 %v5865_v19  ;;  %5067 = vmatprep.subr.bf16.mxu0 %v5872_v20 }
 0x701   :  { %5149 = vmatprep.subr.bf16.mxu1 %v5874_v21 }
 0x703   :  { %5068 = vmatpush1.bf16.msra.mxu0 %v5871_v26 }
 0x704   :  { %5150 = vmatpush1.bf16.msra.mxu1 %v5873_v27  ;;  %5069 = vmatprep.subr.bf16.mxu0 %v5880_v30 }
 0x705   :  { %5151 = vmatprep.subr.bf16.mxu1 %v5882_v29 }
 0x707   :  { %5070 = vmatpush1.bf16.msra.mxu0 %v5879_v39 }
 0x708   :  { %5152 = vmatpush1.bf16.msra.mxu1 %v5881_v41  ;;  %5071 = vmatprep.subr.bf16.mxu0 %v5888_v58 }
 0x709   :  { %5153 = vmatprep.subr.bf16.mxu1 %v5890_v42 }
 0x70b   :  { %5072 = vmatpush1.bf16.msra.mxu0 %v5887_v49 }
 0x70c   :  { %5154 = vmatpush1.bf16.msra.mxu1 %v5889_v52  ;;  %5073 = vmatprep.subr.bf16.mxu0 %v5896_v55 }
 0x70d   :  { %5155 = vmatprep.subr.bf16.mxu1 %v5898_v13 }
 0x70f   :  { %5074 = vmatpush1.bf16.msra.mxu0 %v5895_v40 }
 0x710   :  { %5156 = vmatpush1.bf16.msra.mxu1 %v5897_v43  ;;  %5075 = vmatprep.subr.bf16.mxu0 %v5904_v44 }
 0x711   :  { %5157 = vmatprep.subr.bf16.mxu1 %v5906_v57 }
 0x713   :  { %5076 = vmatpush1.bf16.msra.mxu0 %v5903_v0 }
 0x714   :  { %5158 = vmatpush1.bf16.msra.mxu1 %v5905_v1  ;;  %5077 = vmatprep.subr.bf16.mxu0 %v5912_v2 }
 0x715   :  { %5159 = vmatprep.subr.bf16.mxu1 %v5914_v3 }
 0x717   :  { %5078 = vmatpush1.bf16.msra.mxu0 %v5911_v8 }
 0x718   :  { %5160 = vmatpush1.bf16.msra.mxu1 %v5913_v9  ;;  %5079 = vmatprep.subr.bf16.mxu0 %v5920_v10 }
 0x719   :  { %5161 = vmatprep.subr.bf16.mxu1 %v5922_v11 }
 0x71b   :  { %5080 = vmatpush1.bf16.msra.mxu0 %v5919_v12 }
 0x71c   :  { %5162 = vmatpush1.bf16.msra.mxu1 %v5921_v14 }
 0x71e   :  { %5082 = vmatmul.mubr.bf16.vlgmr.msra.gmra.mrb[16].mxu0 %v7127_v60 }
 0x71f   :  { %5164 = vmatmul.mubr.bf16.vlgmr.msra.gmra.mrb[20].mxu1 %v7127_v60 }
 0x771   :  { %v4919_v19 = vpop.f32.mrb[12].mxu0  ;;  %v5001_v20 = vpop.f32.mrb[16].mxu1 }
 0x772   :  { %v5959_v60 = vadd.f32 %v4919_v19, %v3527_v16  ;;  %v5961_v21 = vadd.f32 %v5001_v20, %v3535_v17  ;;  %v4921_v22 = vpop.f32.mrb[13].mxu0  ;;  %v5003_v23 = vpop.f32.mrb[17].mxu1 }
 0x773   :  { %v5960_v24 = vadd.f32 %v4921_v22, %v3531_v18  ;;  %v5962_v25 = vadd.f32 %v5003_v23, %v3539_v28  ;;  %v4923_v26 = vpop.f32.mrb[14].mxu0  ;;  %v5005_v27 = vpop.f32.mrb[18].mxu1 }
 0x774   :  { %v5923_v51 = vmul.f32 -1.442695, %v5959_v60  ;;  %v5925_v30 = vmul.f32 -1.442695, %v5961_v21  ;;  %v4924_v29 = vpop.f32.mrb[15].mxu0  ;;  %v5006_v36 = vpop.f32.mrb[19].mxu1 }
 0x775   :  { %v5924_v31 = vmul.f32 -1.442695, %v5960_v24  ;;  %v5926_v32 = vmul.f32 -1.442695, %v5962_v25 }
 0x776   :  { %6625 = vpow2.f32 %v5923_v51 }
 0x777   :  { %6627 = vpow2.f32 %v5925_v30 }
 0x778   :  { %6629 = vpow2.f32 %v5924_v31 }
 0x779   :  { %6631 = vpow2.f32 %v5926_v32 }
 0x780   :  { %v6626_v53 = vpop.eup %6625 }
 0x781   :  { %v6628_v54 = vpop.eup %6627  ;;  %v5196_v33 = vadd.f32 1.0, %v6626_v53 }
 0x782   :  { %v6630_v38 = vpop.eup %6629  ;;  %v5198_v39 = vadd.f32 1.0, %v6628_v54 }
 0x783   :  { %v6632_v41 = vpop.eup %6631  ;;  %6633 = vrcp.f32 %v5196_v33  ;;  %v5197_v58 = vadd.f32 1.0, %v6630_v38 }
 0x784   :  { %6635 = vrcp.f32 %v5198_v39  ;;  %v5199_v42 = vadd.f32 1.0, %v6632_v41 }
 0x785   :  { %6637 = vrcp.f32 %v5197_v58 }
 0x786   :  { %6639 = vrcp.f32 %v5199_v42 }
 0x78d   :  { %v6634_v45 = vpop.eup %6633 }
 0x78e   :  { %v6636_v46 = vpop.eup %6635  ;;  %5220 = vst [vmem:[#allocation10] sm:$0xff] %v6634_v45 }
 0x78f   :  { %v6638_v47 = vpop.eup %6637  ;;  %5222 = vst [vmem:[#allocation10 + $0x10] sm:$0xff] %v6636_v46 }
 0x790   :  { %v6640_v48 = vpop.eup %6639  ;;  %5221 = vst [vmem:[#allocation10 + $0x8] sm:$0xff] %v6638_v47 }
 0x791   :  { %5223 = vst [vmem:[#allocation10 + $0x18] sm:$0xff] %v6640_v48 }
 0x792   :  { %6756 = shalt.err (!%p6753_p8)
}
 0x793   :  { %s6757_s18 = scalar_lea.hbm %s7201_s15, 128 }
 0x794   :  { %p6758_p9 = scmp.ne.s32.totalorder %s7201_s15, %s6757_s18  ;;  %p6761_p10 = scmp.lt.u32.totalorder %s6757_s18, %s7201_s15 }
 0x796   :  { %p6763_p11 = pnand %p6761_p10, %p6758_p9 }
 0x798   :  { %6766 = shalt.err (!%p6763_p11)
}
 0x799   :  { %5249 = dma.vmem_to_hbm [thread:$0]  %s5247_s20, 128, %s7201_s15, [#allocation12]   ;;  %v3542_v49 = vsub.s32 4, %v6972_v50  ;;  %v3550_v52 = vsub.s32 6, %v6972_v50  ;;  %v3546_v55 = vsub.s32 5, %v6972_v50  ;;  %v3554_v13 = vsub.s32 7, %v6972_v50 }
 0x79a   :  { %s6812_s15 = smov [#allocation10]  }
 0x79b   :  { %v3543_v56 = vrot.slane %v7144_v15, %v3542_v49  ;;  %v3551_v34 = vrot.slane %v7144_v15, %v3550_v52  ;;  %v3547_v35 = vrot.slane %v7144_v15, %v3546_v55  ;;  %v3555_v37 = vrot.slane %v7144_v15, %v3554_v13  ;;  %s5236_s5 = sshll.u32 %s6812_s15, 4  ;;  %s5237_s5 = int_to_ptr.vmem [resolvable:$true] %s5236_s5 }
 0x79c   :  { %s6767_s22 = scalar_lea.vmem %s5237_s5, 1024  ;;  %p6772_p13 = scmp.lt.s32.totalorder %s5237_s5, %s5237_s5 }
 0x79d   :  { %p6768_p12 = scmp.ne.s32.totalorder %s5237_s5, %s6767_s22  ;;  %p6773_p0 = scmp.lt.s32.totalorder %s6767_s22, %s6767_s22 }
 0x79f   :  { %p6774_p1 = por %p6773_p0, %p6772_p13 }
 0x7a1   :  { %p6775_p2 = pnand %p6774_p1, %p6768_p12 }
 0x7f1   :  { %v5083_v40 = vpop.f32.mrb[16].mxu0 }
 0x7f2   :  { %v5963_v43 = vadd.f32 %v5083_v40, %v3543_v56  ;;  %v5165_v44 = vpop.f32.mrb[20].mxu1  ;;  %v5085_v57 = vpop.f32.mrb[17].mxu0 }
 0x7f3   :  { %v5965_v59 = vadd.f32 %v5165_v44, %v3551_v34  ;;  %v5964_v61 = vadd.f32 %v5085_v57, %v3547_v35  ;;  %v5167_v62 = vpop.f32.mrb[21].mxu1  ;;  %v5087_v63 = vpop.f32.mrb[18].mxu0 }
 0x7f4   :  { %v5927_v0 = vmul.f32 -1.442695, %v5963_v43  ;;  %v5966_v1 = vadd.f32 %v5167_v62, %v3555_v37  ;;  %v5169_v2 = vpop.f32.mrb[22].mxu1  ;;  %v5088_v50 = vpop.f32.mrb[19].mxu0 }
 0x7f5   :  { %v5929_v3 = vmul.f32 -1.442695, %v5965_v59  ;;  %v5928_v4 = vmul.f32 -1.442695, %v5964_v61  ;;  %v5170_v5 = vpop.f32.mrb[23].mxu1 }
 0x7f6   :  { %6641 = vpow2.f32 %v5927_v0  ;;  %v5930_v6 = vmul.f32 -1.442695, %v5966_v1 }
 0x7f7   :  { %6643 = vpow2.f32 %v5929_v3 }
 0x7f8   :  { %6645 = vpow2.f32 %v5928_v4 }
 0x7f9   :  { %6647 = vpow2.f32 %v5930_v6 }
 0x800   :  { %v6642_v7 = vpop.eup %6641 }
 0x801   :  { %v6644_v8 = vpop.eup %6643  ;;  %v5200_v9 = vadd.f32 1.0, %v6642_v7 }
 0x802   :  { %v6646_v10 = vpop.eup %6645  ;;  %v5202_v11 = vadd.f32 1.0, %v6644_v8 }
 0x803   :  { %v6648_v12 = vpop.eup %6647  ;;  %6649 = vrcp.f32 %v5200_v9  ;;  %v5201_v14 = vadd.f32 1.0, %v6646_v10 }
 0x804   :  { %6651 = vrcp.f32 %v5202_v11  ;;  %v5203_v15 = vadd.f32 1.0, %v6648_v12 }
 0x805   :  { %6653 = vrcp.f32 %v5201_v14 }
 0x806   :  { %6655 = vrcp.f32 %v5203_v15 }
 0x80d   :  { %v6650_v16 = vpop.eup %6649 }
 0x80e   :  { %v6652_v17 = vpop.eup %6651  ;;  %5224 = vst [vmem:[#allocation10 + $0x20] sm:$0xff] %v6650_v16 }
 0x80f   :  { %v6654_v18 = vpop.eup %6653  ;;  %5226 = vst [vmem:[#allocation10 + $0x30] sm:$0xff] %v6652_v17 }
 0x810   :  { %v6656_v28 = vpop.eup %6655  ;;  %5225 = vst [vmem:[#allocation10 + $0x28] sm:$0xff] %v6654_v18 }
 0x811   :  { %5227 = vst [vmem:[#allocation10 + $0x38] sm:$0xff] %v6656_v28 }
 0x812   :  { %6778 = shalt.err (!%p6775_p2)
}
 0x813   :  { %s6779_s25 = scalar_lea.hbm %s7200_s14, 1024 }
 0x814   :  { %p6780_p3 = scmp.ne.s32.totalorder %s7200_s14, %s6779_s25  ;;  %p6783_p4 = scmp.lt.u32.totalorder %s6779_s25, %s7200_s14 }
 0x816   :  { %p6785_p5 = pnand %p6783_p4, %p6780_p3 }
 0x818   :  { %6788 = shalt.err (!%p6785_p5)
}
 0x819   :  { %5239 = dma.vmem_to_hbm [thread:$0]  %s5237_s5, 1024, %s7200_s14, [#allocation4]  }
 0x81a   :  { %6795 = dma.done.wait [#allocation4], 1024  }
 0x81b   :  { %6796 = vsyncadd [#allocation4], 4294966272 }
 0x81c   :  { %6797 = dma.done.wait [#allocation12], 128  }
 0x81d   :  { %6798 = vsyncadd [#allocation12], 4294967168 }
 0x81e   :  { %5256 = vsyncpa [#allocation3], 1 }
 0x81f   :  { %5257 = vsyncpa [#allocation6], 1 }
 0x820   :  { %5258 = vsyncpa [#allocation9], 1 }
 0x821   :  { %5259 = vsyncpa [#allocation4], 1 }
 0x822   :  { %5260 = vsyncpa [#allocation12], 1 }

</bundles_post_ra>
